<compile_context>
chip_gen: v7x
topology: tpu7x:2x2x1
jax: 0.10.0
libtpu: 0.0.40
codegen_flags: <defaults>
</compile_context>

<pallas_src>
import functools

import jax
import jax.numpy as jnp
import numpy as np
from jax import lax
from jax.experimental import pallas as pl
from jax.experimental.pallas import tpu as pltpu

EPS = 1e-5
LANE = 128


def _round_up(x, m):
    return ((x + m - 1) // m) * m


# ------------------------------ fused Pallas kernel ------------------------------ #

def _make_bottleneck_kernel(d, T, he, hh, wpch, DP):
    """d: dilation, T: output rows per tile (flat, padded domain), he: halo rows loaded per
    side, hh: kh tap shift (= d*wpad, 8-aligned), wpch: padded conv1/conv2 channel width,
    DP: small 8-aligned pad so the +-d shifted reads of the y1 staging buffer stay in-bounds."""
    E = T + 2 * he  # halo-extended rows processed by conv1 per tile

    def kernel(xc_ref, xt_ref, xb_ref, mc_ref, mt_ref, mb_ref,
               w1_ref, b1_ref, w2_ref, b2_ref, w3_ref, b3_ref,
               o_ref, y1e_ref, cat_ref, acc_ref):

        def conv1(x_blk, m_blk):
            y = jnp.dot(x_blk, w1_ref[...], preferred_element_type=jnp.float32)
            # mask zeroes y1 on the image's zero-padding ring (enforces conv2's padding=d)
            return (jnp.maximum(y + b1_ref[...], 0.0) * m_blk).astype(jnp.bfloat16)

        # ---- conv1 (1x1, BN folded) + ReLU over the halo-extended rows; stage into y1e ----
        y1e_ref[0:DP, :] = jnp.zeros((DP, wpch), jnp.bfloat16)
        y1e_ref[DP + E:DP + E + DP, :] = jnp.zeros((DP, wpch), jnp.bfloat16)
        y1e_ref[DP:DP + he, :] = conv1(xt_ref[...], mt_ref[...])
        y1e_ref[DP + he:DP + he + T, :] = conv1(xc_ref[...], mc_ref[...])
        y1e_ref[DP + he + T:DP + E, :] = conv1(xb_ref[...], mb_ref[...])

        # ---- lane-concatenate the three kw taps: cat[e] = [y1[e-d] | y1[e] | y1[e+d]] ----
        # (only the two +-d reads are sublane-shifted; every matmul operand read below is
        #  fully (8,128)-aligned)
        cat_ref[:, 0:wpch] = y1e_ref[DP - d:DP - d + E, :]
        cat_ref[:, wpch:2 * wpch] = y1e_ref[DP:DP + E, :]
        cat_ref[:, 2 * wpch:3 * wpch] = y1e_ref[DP + d:DP + d + E, :]

        # ---- conv2 (3x3): 3 MXU matmuls (one per kh row), K = 3*wpch, f32 scratch acc ----
        acc_ref[...] = jnp.dot(cat_ref[he - hh:he - hh + T, :], w2_ref[0],
                               preferred_element_type=jnp.float32)
        acc_ref[...] += jnp.dot(cat_ref[he:he + T, :], w2_ref[1],
                                preferred_element_type=jnp.float32)
        acc_ref[...] += jnp.dot(cat_ref[he + hh:he + hh + T, :], w2_ref[2],
                                preferred_element_type=jnp.float32)
        y2 = jnp.maximum(acc_ref[...] + b2_ref[...], 0.0).astype(jnp.bfloat16)

        # ---- conv3 (1x1) + bias + residual add + ReLU; bf16 output ----
        y3 = jnp.dot(y2, w3_ref[...], preferred_element_type=jnp.float32)
        out = jnp.maximum(y3 + b3_ref[...] + xc_ref[...].astype(jnp.float32), 0.0)
        o_ref[...] = out.astype(o_ref.dtype)

    return kernel


# --------------------------------- wrapper ---------------------------------------- #

def _fold_bn(w, gamma, beta, mean, var, eps=EPS):
    """Fold eval-mode BN into the conv weight's output-channel (last) axis + a bias."""
    scale = gamma / jnp.sqrt(var + eps)
    return w * scale, (beta - mean * scale)[None, :]


def _pad_axis(a, axis, size):
    pads = [(0, 0)] * a.ndim
    pads[axis] = (0, size - a.shape[axis])
    return jnp.pad(a, pads)


@functools.partial(jax.jit, static_argnames=("stride", "dilation", "groups", "tile_rows"))
def bottleneck_forward(x_nchw, p, stride=1, dilation=1, groups=1, tile_rows=None):
    """Bottleneck.forward with downsample=None (so stride==1, inplanes==planes*4)."""
    assert stride == 1, "downsample=None requires stride==1 for the residual add"
    assert groups == 1, "grouped conv2 not implemented"  # TODO(synk): groups>1 path
    n, cin, h, w = x_nchw.shape
    width = p["conv1_w"].shape[0]
    out_c = p["conv3_w"].shape[0]
    assert out_c == cin, "downsample=None requires inplanes == planes*expansion"

    d = dilation
    hpad = h + 2 * d                       # spatial halo rows for the 3x3 conv
    wpad = _round_up(w + 2 * d, 8)         # sublane-aligned flattened row width
    mp_raw = hpad * wpad                   # flattened padded rows per image
    hh = d * wpad                          # kh tap shift in flat rows (multiple of 8)
    he = _round_up(hh + d, 8)              # halo rows loaded per tile side (kh + kw reach)
    DP = _round_up(d, 8)                   # staging pad so the +-d reads stay in-bounds
    cp = _round_up(cin, LANE)
    wpch = _round_up(width, LANE)
    op = _round_up(out_c, LANE)            # == cp (inplanes == planes*4)

    # ---- row-tile sizing (flat rows per grid step); T and mp_pad multiples of he ----
    target = tile_rows if tile_rows is not None else 1024
    T = _round_up(min(mp_raw, max(target, he)), he)
    mp_pad = _round_up(mp_raw, T)
    nt = mp_pad // T
    Rh = T // he
    nb = mp_pad // he
    E = T + 2 * he

    # ---- fold BN into weights, zero-pad channels to lane multiples, bf16 MXU inputs ----
    w1 = jnp.transpose(p["conv1_w"][:, :, 0, 0], (1, 0))                      # (cin, width)
    w1, b1 = _fold_bn(w1, p["bn1_gamma"], p["bn1_beta"], p["bn1_mean"], p["bn1_var"])
    w1 = _pad_axis(_pad_axis(w1, 0, cp), 1, wpch).astype(jnp.bfloat16)
    b1 = _pad_axis(b1, 1, wpch)

    w2 = jnp.transpose(p["conv2_w"], (2, 3, 1, 0))                            # (kh,kw,ci,co)
    w2, b2 = _fold_bn(w2, p["bn2_gamma"], p["bn2_beta"], p["bn2_mean"], p["bn2_var"])
    w2 = _pad_axis(_pad_axis(w2, 2, wpch), 3, wpch)                           # (3,3,wpch,wpch)
    w2 = w2.reshape(3, 3 * wpch, wpch).astype(jnp.bfloat16)                   # kw stacked in K
    b2 = _pad_axis(b2, 1, wpch)

    w3 = jnp.transpose(p["conv3_w"][:, :, 0, 0], (1, 0))                      # (width, out)
    w3, b3 = _fold_bn(w3, p["bn3_gamma"], p["bn3_beta"], p["bn3_mean"], p["bn3_var"])
    w3 = _pad_axis(_pad_axis(w3, 0, wpch), 1, op).astype(jnp.bfloat16)
    b3 = _pad_axis(b3, 1, op)

    # ---- activations: NCHW -> NHWC, zero halo + channel pad, flatten rows, bf16 ----
    x = jnp.transpose(x_nchw, (0, 2, 3, 1))
    x = jnp.pad(x, ((0, 0), (d, hpad - h - d), (d, wpad - w - d), (0, cp - cin)))
    x = x.reshape(n, mp_raw, cp)
    x = jnp.pad(x, ((0, 0), (0, mp_pad - mp_raw), (0, 0))).astype(jnp.bfloat16)

    # 1.0 on interior pixels, 0.0 on all padding (enforces the 3x3 zero padding).
    mask = jnp.pad(jnp.ones((h, w), jnp.float32),
                   ((d, hpad - h - d), (d, wpad - w - d))).reshape(mp_raw, 1)
    mask = jnp.pad(mask, ((0, mp_pad - mp_raw), (0, 0)))

    kernel = _make_bottleneck_kernel(d, T, he, hh, wpch, DP)

    # Halo block indices are clamped at the domain boundaries: the resulting "wrong" halo
    # data only ever influences output rows inside the padding ring, which are trimmed.
    x_top = lambda i, t: (i, jnp.maximum(t * Rh - 1, 0), 0)
    x_bot = lambda i, t: (i, jnp.minimum((t + 1) * Rh, nb - 1), 0)
    m_top = lambda i, t: (jnp.maximum(t * Rh - 1, 0), 0)
    m_bot = lambda i, t: (jnp.minimum((t + 1) * Rh, nb - 1), 0)

    flops = 2 * n * nt * (E * cp * wpch + 3 * T * (3 * wpch) * wpch + T * wpch * op)
    bytes_accessed = (n * nt * E * (cp * 2 + 4)                 # x + mask reads (with halo)
                      + n * mp_pad * op * 2                     # bf16 output write
                      + (cp * wpch + 9 * wpch * wpch + wpch * op) * 2
                      + 4 * (2 * wpch + op))

    out_flat = pl.pallas_call(
        kernel,
        out_shape=jax.ShapeDtypeStruct((n, mp_pad, op), jnp.bfloat16),
        grid=(n, nt),
        in_specs=[
            pl.BlockSpec((None, T, cp), lambda i, t: (i, t, 0)),        # x center rows
            pl.BlockSpec((None, he, cp), x_top),                        # x top halo rows
            pl.BlockSpec((None, he, cp), x_bot),                        # x bottom halo rows
            pl.BlockSpec((T, 1), lambda i, t: (t, 0)),                  # mask center
            pl.BlockSpec((he, 1), m_top),                               # mask top halo
            pl.BlockSpec((he, 1), m_bot),                               # mask bottom halo
            pl.BlockSpec((cp, wpch), lambda i, t: (0, 0)),              # w1' (BN folded)
            pl.BlockSpec((1, wpch), lambda i, t: (0, 0)),               # b1
            pl.BlockSpec((3, 3 * wpch, wpch), lambda i, t: (0, 0, 0)),  # w2' (kh, 3*ci, co)
            pl.BlockSpec((1, wpch), lambda i, t: (0, 0)),               # b2
            pl.BlockSpec((wpch, op), lambda i, t: (0, 0)),              # w3'
            pl.BlockSpec((1, op), lambda i, t: (0, 0)),                 # b3
        ],
        out_specs=pl.BlockSpec((None, T, op), lambda i, t: (i, t, 0)),
        scratch_shapes=[
            pltpu.VMEM((2 * DP + E, wpch), jnp.bfloat16),   # haloed y1 staging
            pltpu.VMEM((E, 3 * wpch), jnp.bfloat16),        # kw-concatenated conv2 LHS
            pltpu.VMEM((T, wpch), jnp.float32),             # conv2 f32 accumulator
        ],
        compiler_params=pltpu.CompilerParams(
            dimension_semantics=("parallel", "parallel"),
            vmem_limit_bytes=48 * 1024 * 1024,
        ),
        cost_estimate=pl.CostEstimate(flops=flops, transcendentals=0,
                                      bytes_accessed=bytes_accessed),
    )(x, x, x, mask, mask, mask, w1, b1, w2, b2, w3, b3)

    out = out_flat[:, :mp_raw, :].reshape(n, hpad, wpad, op)[:, d:d + h, d:d + w, :out_c]
    return jnp.transpose(out, (0, 3, 1, 2)).astype(jnp.float32)   # back to NCHW, f32


# ----------------------------- params & pure-JAX reference ------------------------ #

def init_params(key, inplanes, planes, groups=1, base_width=64):
    width = int(planes * (base_width / 64.0)) * groups
    out_c = planes * 4
    ks = iter(jax.random.split(key, 16))

    def conv_w(k, co, ci, kh, kw):
        bound = 1.0 / np.sqrt(ci * kh * kw)
        return jax.random.uniform(k, (co, ci, kh, kw), jnp.float32, -bound, bound)

    def bn(prefix, c):
        return {
            f"{prefix}_gamma": 1.0 + 0.1 * jax.random.normal(next(ks), (c,), jnp.float32),
            f"{prefix}_beta": 0.1 * jax.random.normal(next(ks), (c,), jnp.float32),
            f"{prefix}_mean": 0.1 * jax.random.normal(next(ks), (c,), jnp.float32),
            f"{prefix}_var": 1.0 + 0.5 * jax.random.uniform(next(ks), (c,), jnp.float32),
        }

    p = {
        "conv1_w": conv_w(next(ks), width, inplanes, 1, 1),
        "conv2_w": conv_w(next(ks), width, width // groups, 3, 3),
        "conv3_w": conv_w(next(ks), out_c, width, 1, 1),
    }
    p.update(bn("bn1", width))
    p.update(bn("bn2", width))
    p.update(bn("bn3", out_c))
    return p


def reference_forward(x, p, stride=1, dilation=1):
    """Pure-JAX reference (eval-mode BN), same semantics as the PyTorch module."""
    def conv(x, w, stride, padding, dilation):
        return lax.conv_general_dilated(
            x, w, (stride, stride), ((padding, padding), (padding, padding)),
            rhs_dilation=(dilation, dilation),
            dimension_numbers=("NCHW", "OIHW", "NCHW"))

    def bn(x, g, b, m, v):
        s = g / jnp.sqrt(v + EPS)
        return x * s[None, :, None, None] + (b - m * s)[None, :, None, None]

    out = jax.nn.relu(bn(conv(x, p["conv1_w"], 1, 0, 1),
                         p["bn1_gamma"], p["bn1_beta"], p["bn1_mean"], p["bn1_var"]))
    out = jax.nn.relu(bn(conv(out, p["conv2_w"], stride, dilation, dilation),
                         p["bn2_gamma"], p["bn2_beta"], p["bn2_mean"], p["bn2_var"]))
    out = bn(conv(out, p["conv3_w"], 1, 0, 1),
             p["bn3_gamma"], p["bn3_beta"], p["bn3_mean"], p["bn3_var"])
    return jax.nn.relu(out + x)


# ----------------------------------- main ------------------------------------------ #

if __name__ == "__main__":
    key = jax.random.PRNGKey(0)
    kx, kp, kx2, kp2 = jax.random.split(key, 4)

    # Config A: small shapes (inplanes must equal planes*4 since downsample=None).
    N, inplanes, H, W = 2, 16, 16, 16
    planes = 4  # width = 4, out channels = 16 == inplanes
    x = jax.random.normal(kx, (N, inplanes, H, W), jnp.float32)
    params = init_params(kp, inplanes, planes)
    ref = reference_forward(x, params)

    out = jax.block_until_ready(bottleneck_forward(x, params))                  # 1 row tile
    np.testing.assert_allclose(np.asarray(out), np.asarray(ref), rtol=2e-2, atol=3e-2)
    assert out.shape == (N, planes * 4, H, W)

    out_t = jax.block_until_ready(bottleneck_forward(x, params, tile_rows=128))  # 4 row tiles
    np.testing.assert_allclose(np.asarray(out_t), np.asarray(ref), rtol=2e-2, atol=3e-2)

    # Config B: real ResNet-50 channel widths (256 -> 64 -> 256) at a small spatial size,
    # exercising the multi-tile path with unpadded channel counts.
    xb = jax.random.normal(kx2, (1, 256, 16, 16), jnp.float32)
    pb = init_params(kp2, 256, 64)
    refb = reference_forward(xb, pb)
    outb = jax.block_until_ready(bottleneck_forward(xb, pb, tile_rows=256))      # 2 row tiles
    np.testing.assert_allclose(np.asarray(outb), np.asarray(refb), rtol=2e-2, atol=3e-2)

    print("KERNEL_OK")
</pallas_src>

<mosaic_0001>
module attributes {stable_mosaic.version = 11 : i64} {
  func.func @kernel(%arg0: i32, %arg1: i32, %arg2: memref<1x448x128xbf16, #tpu.memory_space<vmem>>, %arg3: memref<1x32x128xbf16, #tpu.memory_space<vmem>>, %arg4: memref<1x32x128xbf16, #tpu.memory_space<vmem>>, %arg5: memref<448x1xf32, #tpu.memory_space<vmem>>, %arg6: memref<32x1xf32, #tpu.memory_space<vmem>>, %arg7: memref<32x1xf32, #tpu.memory_space<vmem>>, %arg8: memref<128x128xbf16, #tpu.memory_space<vmem>>, %arg9: memref<1x128xf32, #tpu.memory_space<vmem>>, %arg10: memref<3x384x128xbf16, #tpu.memory_space<vmem>>, %arg11: memref<1x128xf32, #tpu.memory_space<vmem>>, %arg12: memref<128x128xbf16, #tpu.memory_space<vmem>>, %arg13: memref<1x128xf32, #tpu.memory_space<vmem>>, %arg14: memref<1x448x128xbf16, #tpu.memory_space<vmem>>, %arg15: memref<528x128xbf16, #tpu.memory_space<vmem>>, %arg16: memref<512x384xbf16, #tpu.memory_space<vmem>>, %arg17: memref<448x128xf32, #tpu.memory_space<vmem>>) attributes {dimension_semantics = [#tpu.dimension_semantics<parallel>, #tpu.dimension_semantics<parallel>], iteration_bounds = array<i64: 2, 1>, scalar_prefetch = 0 : i64, scratch_operands = 3 : i64, tpu.core_type = #tpu.core_type<tc>, window_params = [{transform_indices = @transform_0, window_bounds = array<i64: 1, 448, 128>}, {transform_indices = @transform_1, window_bounds = array<i64: 1, 32, 128>}, {transform_indices = @transform_2, window_bounds = array<i64: 1, 32, 128>}, {transform_indices = @transform_3, window_bounds = array<i64: 448, 1>}, {transform_indices = @transform_4, window_bounds = array<i64: 32, 1>}, {transform_indices = @transform_5, window_bounds = array<i64: 32, 1>}, {pipeline_mode = #tpu.pipeline_mode<synchronous>, transform_indices = @transform_6, window_bounds = array<i64: 128, 128>}, {pipeline_mode = #tpu.pipeline_mode<synchronous>, transform_indices = @transform_7, window_bounds = array<i64: 1, 128>}, {pipeline_mode = #tpu.pipeline_mode<synchronous>, transform_indices = @transform_8, window_bounds = array<i64: 3, 384, 128>}, {pipeline_mode = #tpu.pipeline_mode<synchronous>, transform_indices = @transform_9, window_bounds = array<i64: 1, 128>}, {pipeline_mode = #tpu.pipeline_mode<synchronous>, transform_indices = @transform_10, window_bounds = array<i64: 128, 128>}, {pipeline_mode = #tpu.pipeline_mode<synchronous>, transform_indices = @transform_11, window_bounds = array<i64: 1, 128>}, {transform_indices = @transform_12, window_bounds = array<i64: 1, 448, 128>}]} {
    %cst = arith.constant 0.000000e+00 : bf16
    %0 = vector.broadcast %cst : bf16 to vector<8x128xbf16>
    %c0 = arith.constant 0 : index
    %c0_0 = arith.constant 0 : index
    %1 = vector.load %arg15[%c0, %c0_0] : memref<528x128xbf16, #tpu.memory_space<vmem>>, vector<8x128xbf16>
    tpu.vector_store %arg15[%c0, %c0_0], %0 {strides = array<i32>} : memref<528x128xbf16, #tpu.memory_space<vmem>>, vector<8x128xbf16>,
    %cst_1 = arith.constant 0.000000e+00 : bf16
    %2 = vector.broadcast %cst_1 : bf16 to vector<8x128xbf16>
    %c520 = arith.constant 520 : index
    %c0_2 = arith.constant 0 : index
    %3 = vector.load %arg15[%c520, %c0_2] : memref<528x128xbf16, #tpu.memory_space<vmem>>, vector<8x128xbf16>
    tpu.vector_store %arg15[%c520, %c0_2], %2 {strides = array<i32>} : memref<528x128xbf16, #tpu.memory_space<vmem>>, vector<8x128xbf16>,
    %c0_3 = arith.constant 0 : index
    %c0_4 = arith.constant 0 : index
    %c0_5 = arith.constant 0 : index
    %4 = vector.load %arg3[%c0_3, %c0_4, %c0_5] : memref<1x32x128xbf16, #tpu.memory_space<vmem>>, vector<1x32x128xbf16>
    %5 = vector.shape_cast %4 : vector<1x32x128xbf16> to vector<32x128xbf16>
    %c0_6 = arith.constant 0 : index
    %c0_7 = arith.constant 0 : index
    %6 = vector.load %arg6[%c0_6, %c0_7] : memref<32x1xf32, #tpu.memory_space<vmem>>, vector<32x1xf32>
    %c0_8 = arith.constant 0 : index
    %c0_9 = arith.constant 0 : index
    %7 = vector.load %arg8[%c0_8, %c0_9] : memref<128x128xbf16, #tpu.memory_space<vmem>>, vector<128x128xbf16>
    %cst_10 = arith.constant dense<0.000000e+00> : vector<32x128xf32>
    %8 = tpu.matmul %5, %7, %cst_10 {dimension_numbers = #tpu.dot_dimension_numbers<[1], [0], [0], [1], [0, 0, 1, 1], [], []>} : vector<32x128xbf16>, vector<128x128xbf16>, vector<32x128xf32> -> vector<32x128xf32>
    %c0_11 = arith.constant 0 : index
    %c0_12 = arith.constant 0 : index
    %9 = vector.load %arg9[%c0_11, %c0_12] : memref<1x128xf32, #tpu.memory_space<vmem>>, vector<1x128xf32>
    %10 = vector.broadcast %9 : vector<1x128xf32> to vector<32x128xf32>
    %11 = arith.addf %8, %10 : vector<32x128xf32>
    %cst_13 = arith.constant 0.000000e+00 : f32
    %12 = vector.broadcast %cst_13 : f32 to vector<32x128xf32>
    %13 = arith.maximumf %11, %12 : vector<32x128xf32>
    %14 = vector.broadcast %6 : vector<32x1xf32> to vector<32x128xf32>
    %15 = arith.mulf %13, %14 : vector<32x128xf32>
    %16 = arith.truncf %15 : vector<32x128xf32> to vector<32x128xbf16>
    %c8 = arith.constant 8 : index
    %c0_14 = arith.constant 0 : index
    %17 = vector.load %arg15[%c8, %c0_14] : memref<528x128xbf16, #tpu.memory_space<vmem>>, vector<32x128xbf16>
    tpu.vector_store %arg15[%c8, %c0_14], %16 {strides = array<i32>} : memref<528x128xbf16, #tpu.memory_space<vmem>>, vector<32x128xbf16>,
    %c0_15 = arith.constant 0 : index
    %c0_16 = arith.constant 0 : index
    %c0_17 = arith.constant 0 : index
    %18 = vector.load %arg2[%c0_15, %c0_16, %c0_17] : memref<1x448x128xbf16, #tpu.memory_space<vmem>>, vector<1x448x128xbf16>
    %19 = vector.shape_cast %18 : vector<1x448x128xbf16> to vector<448x128xbf16>
    %c0_18 = arith.constant 0 : index
    %c0_19 = arith.constant 0 : index
    %20 = vector.load %arg5[%c0_18, %c0_19] : memref<448x1xf32, #tpu.memory_space<vmem>>, vector<448x1xf32>
    %c0_20 = arith.constant 0 : index
    %c0_21 = arith.constant 0 : index
    %21 = vector.load %arg8[%c0_20, %c0_21] : memref<128x128xbf16, #tpu.memory_space<vmem>>, vector<128x128xbf16>
    %cst_22 = arith.constant dense<0.000000e+00> : vector<448x128xf32>
    %22 = tpu.matmul %19, %21, %cst_22 {dimension_numbers = #tpu.dot_dimension_numbers<[1], [0], [0], [1], [0, 0, 1, 1], [], []>} : vector<448x128xbf16>, vector<128x128xbf16>, vector<448x128xf32> -> vector<448x128xf32>
    %c0_23 = arith.constant 0 : index
    %c0_24 = arith.constant 0 : index
    %23 = vector.load %arg9[%c0_23, %c0_24] : memref<1x128xf32, #tpu.memory_space<vmem>>, vector<1x128xf32>
    %24 = vector.broadcast %23 : vector<1x128xf32> to vector<448x128xf32>
    %25 = arith.addf %22, %24 : vector<448x128xf32>
    %cst_25 = arith.constant 0.000000e+00 : f32
    %26 = vector.broadcast %cst_25 : f32 to vector<448x128xf32>
    %27 = arith.maximumf %25, %26 : vector<448x128xf32>
    %28 = vector.broadcast %20 : vector<448x1xf32> to vector<448x128xf32>
    %29 = arith.mulf %27, %28 : vector<448x128xf32>
    %30 = arith.truncf %29 : vector<448x128xf32> to vector<448x128xbf16>
    %c40 = arith.constant 40 : index
    %c0_26 = arith.constant 0 : index
    %31 = vector.load %arg15[%c40, %c0_26] : memref<528x128xbf16, #tpu.memory_space<vmem>>, vector<448x128xbf16>
    tpu.vector_store %arg15[%c40, %c0_26], %30 {strides = array<i32>} : memref<528x128xbf16, #tpu.memory_space<vmem>>, vector<448x128xbf16>,
    %c0_27 = arith.constant 0 : index
    %c0_28 = arith.constant 0 : index
    %c0_29 = arith.constant 0 : index
    %32 = vector.load %arg4[%c0_27, %c0_28, %c0_29] : memref<1x32x128xbf16, #tpu.memory_space<vmem>>, vector<1x32x128xbf16>
    %33 = vector.shape_cast %32 : vector<1x32x128xbf16> to vector<32x128xbf16>
    %c0_30 = arith.constant 0 : index
    %c0_31 = arith.constant 0 : index
    %34 = vector.load %arg7[%c0_30, %c0_31] : memref<32x1xf32, #tpu.memory_space<vmem>>, vector<32x1xf32>
    %c0_32 = arith.constant 0 : index
    %c0_33 = arith.constant 0 : index
    %35 = vector.load %arg8[%c0_32, %c0_33] : memref<128x128xbf16, #tpu.memory_space<vmem>>, vector<128x128xbf16>
    %cst_34 = arith.constant dense<0.000000e+00> : vector<32x128xf32>
    %36 = tpu.matmul %33, %35, %cst_34 {dimension_numbers = #tpu.dot_dimension_numbers<[1], [0], [0], [1], [0, 0, 1, 1], [], []>} : vector<32x128xbf16>, vector<128x128xbf16>, vector<32x128xf32> -> vector<32x128xf32>
    %c0_35 = arith.constant 0 : index
    %c0_36 = arith.constant 0 : index
    %37 = vector.load %arg9[%c0_35, %c0_36] : memref<1x128xf32, #tpu.memory_space<vmem>>, vector<1x128xf32>
    %38 = vector.broadcast %37 : vector<1x128xf32> to vector<32x128xf32>
    %39 = arith.addf %36, %38 : vector<32x128xf32>
    %cst_37 = arith.constant 0.000000e+00 : f32
    %40 = vector.broadcast %cst_37 : f32 to vector<32x128xf32>
    %41 = arith.maximumf %39, %40 : vector<32x128xf32>
    %42 = vector.broadcast %34 : vector<32x1xf32> to vector<32x128xf32>
    %43 = arith.mulf %41, %42 : vector<32x128xf32>
    %44 = arith.truncf %43 : vector<32x128xf32> to vector<32x128xbf16>
    %c488 = arith.constant 488 : index
    %c0_38 = arith.constant 0 : index
    %45 = vector.load %arg15[%c488, %c0_38] : memref<528x128xbf16, #tpu.memory_space<vmem>>, vector<32x128xbf16>
    tpu.vector_store %arg15[%c488, %c0_38], %44 {strides = array<i32>} : memref<528x128xbf16, #tpu.memory_space<vmem>>, vector<32x128xbf16>,
    %c7 = arith.constant 7 : index
    %c0_39 = arith.constant 0 : index
    %46 = vector.load %arg15[%c7, %c0_39] : memref<528x128xbf16, #tpu.memory_space<vmem>>, vector<512x128xbf16>
    %c0_40 = arith.constant 0 : index
    %c0_41 = arith.constant 0 : index
    %47 = vector.load %arg16[%c0_40, %c0_41] : memref<512x384xbf16, #tpu.memory_space<vmem>>, vector<512x128xbf16>
    tpu.vector_store %arg16[%c0_40, %c0_41], %46 {strides = array<i32>} : memref<512x384xbf16, #tpu.memory_space<vmem>>, vector<512x128xbf16>,
    %c8_42 = arith.constant 8 : index
    %c0_43 = arith.constant 0 : index
    %48 = vector.load %arg15[%c8_42, %c0_43] : memref<528x128xbf16, #tpu.memory_space<vmem>>, vector<512x128xbf16>
    %c0_44 = arith.constant 0 : index
    %c128 = arith.constant 128 : index
    %49 = vector.load %arg16[%c0_44, %c128] : memref<512x384xbf16, #tpu.memory_space<vmem>>, vector<512x128xbf16>
    tpu.vector_store %arg16[%c0_44, %c128], %48 {strides = array<i32>} : memref<512x384xbf16, #tpu.memory_space<vmem>>, vector<512x128xbf16>,
    %c9 = arith.constant 9 : index
    %c0_45 = arith.constant 0 : index
    %50 = vector.load %arg15[%c9, %c0_45] : memref<528x128xbf16, #tpu.memory_space<vmem>>, vector<512x128xbf16>
    %c0_46 = arith.constant 0 : index
    %c256 = arith.constant 256 : index
    %51 = vector.load %arg16[%c0_46, %c256] : memref<512x384xbf16, #tpu.memory_space<vmem>>, vector<512x128xbf16>
    tpu.vector_store %arg16[%c0_46, %c256], %50 {strides = array<i32>} : memref<512x384xbf16, #tpu.memory_space<vmem>>, vector<512x128xbf16>,
    %c8_47 = arith.constant 8 : index
    %c0_48 = arith.constant 0 : index
    %52 = vector.load %arg16[%c8_47, %c0_48] : memref<512x384xbf16, #tpu.memory_space<vmem>>, vector<448x384xbf16>
    %c0_49 = arith.constant 0 : index
    %c0_50 = arith.constant 0 : index
    %c0_51 = arith.constant 0 : index
    %53 = vector.load %arg10[%c0_49, %c0_50, %c0_51] : memref<3x384x128xbf16, #tpu.memory_space<vmem>>, vector<1x384x128xbf16>
    %54 = vector.shape_cast %53 : vector<1x384x128xbf16> to vector<384x128xbf16>
    %cst_52 = arith.constant dense<0.000000e+00> : vector<448x128xf32>
    %55 = tpu.matmul %52, %54, %cst_52 {dimension_numbers = #tpu.dot_dimension_numbers<[1], [0], [0], [1], [0, 0, 1, 1], [], []>} : vector<448x384xbf16>, vector<384x128xbf16>, vector<448x128xf32> -> vector<448x128xf32>
    %c0_53 = arith.constant 0 : index
    %c0_54 = arith.constant 0 : index
    %56 = vector.load %arg17[%c0_53, %c0_54] : memref<448x128xf32, #tpu.memory_space<vmem>>, vector<448x128xf32>
    tpu.vector_store %arg17[%c0_53, %c0_54], %55 {strides = array<i32>} : memref<448x128xf32, #tpu.memory_space<vmem>>, vector<448x128xf32>,
    %c0_55 = arith.constant 0 : index
    %c0_56 = arith.constant 0 : index
    %57 = vector.load %arg17[%c0_55, %c0_56] : memref<448x128xf32, #tpu.memory_space<vmem>>, vector<448x128xf32>
    %c32 = arith.constant 32 : index
    %c0_57 = arith.constant 0 : index
    %58 = vector.load %arg16[%c32, %c0_57] : memref<512x384xbf16, #tpu.memory_space<vmem>>, vector<448x384xbf16>
    %c1 = arith.constant 1 : index
    %c0_58 = arith.constant 0 : index
    %c0_59 = arith.constant 0 : index
    %59 = vector.load %arg10[%c1, %c0_58, %c0_59] : memref<3x384x128xbf16, #tpu.memory_space<vmem>>, vector<1x384x128xbf16>
    %60 = vector.shape_cast %59 : vector<1x384x128xbf16> to vector<384x128xbf16>
    %cst_60 = arith.constant dense<0.000000e+00> : vector<448x128xf32>
    %61 = tpu.matmul %58, %60, %cst_60 {dimension_numbers = #tpu.dot_dimension_numbers<[1], [0], [0], [1], [0, 0, 1, 1], [], []>} : vector<448x384xbf16>, vector<384x128xbf16>, vector<448x128xf32> -> vector<448x128xf32>
    %62 = arith.addf %57, %61 : vector<448x128xf32>
    %c0_61 = arith.constant 0 : index
    %c0_62 = arith.constant 0 : index
    %63 = vector.load %arg17[%c0_61, %c0_62] : memref<448x128xf32, #tpu.memory_space<vmem>>, vector<448x128xf32>
    tpu.vector_store %arg17[%c0_61, %c0_62], %62 {strides = array<i32>} : memref<448x128xf32, #tpu.memory_space<vmem>>, vector<448x128xf32>,
    %c0_63 = arith.constant 0 : index
    %c0_64 = arith.constant 0 : index
    %64 = vector.load %arg17[%c0_63, %c0_64] : memref<448x128xf32, #tpu.memory_space<vmem>>, vector<448x128xf32>
    %c56 = arith.constant 56 : index
    %c0_65 = arith.constant 0 : index
    %65 = vector.load %arg16[%c56, %c0_65] : memref<512x384xbf16, #tpu.memory_space<vmem>>, vector<448x384xbf16>
    %c2 = arith.constant 2 : index
    %c0_66 = arith.constant 0 : index
    %c0_67 = arith.constant 0 : index
    %66 = vector.load %arg10[%c2, %c0_66, %c0_67] : memref<3x384x128xbf16, #tpu.memory_space<vmem>>, vector<1x384x128xbf16>
    %67 = vector.shape_cast %66 : vector<1x384x128xbf16> to vector<384x128xbf16>
    %cst_68 = arith.constant dense<0.000000e+00> : vector<448x128xf32>
    %68 = tpu.matmul %65, %67, %cst_68 {dimension_numbers = #tpu.dot_dimension_numbers<[1], [0], [0], [1], [0, 0, 1, 1], [], []>} : vector<448x384xbf16>, vector<384x128xbf16>, vector<448x128xf32> -> vector<448x128xf32>
    %69 = arith.addf %64, %68 : vector<448x128xf32>
    %c0_69 = arith.constant 0 : index
    %c0_70 = arith.constant 0 : index
    %70 = vector.load %arg17[%c0_69, %c0_70] : memref<448x128xf32, #tpu.memory_space<vmem>>, vector<448x128xf32>
    tpu.vector_store %arg17[%c0_69, %c0_70], %69 {strides = array<i32>} : memref<448x128xf32, #tpu.memory_space<vmem>>, vector<448x128xf32>,
    %c0_71 = arith.constant 0 : index
    %c0_72 = arith.constant 0 : index
    %71 = vector.load %arg17[%c0_71, %c0_72] : memref<448x128xf32, #tpu.memory_space<vmem>>, vector<448x128xf32>
    %c0_73 = arith.constant 0 : index
    %c0_74 = arith.constant 0 : index
    %72 = vector.load %arg11[%c0_73, %c0_74] : memref<1x128xf32, #tpu.memory_space<vmem>>, vector<1x128xf32>
    %73 = vector.broadcast %72 : vector<1x128xf32> to vector<448x128xf32>
    %74 = arith.addf %71, %73 : vector<448x128xf32>
    %cst_75 = arith.constant 0.000000e+00 : f32
    %75 = vector.broadcast %cst_75 : f32 to vector<448x128xf32>
    %76 = arith.maximumf %74, %75 : vector<448x128xf32>
    %77 = arith.truncf %76 : vector<448x128xf32> to vector<448x128xbf16>
    %c0_76 = arith.constant 0 : index
    %c0_77 = arith.constant 0 : index
    %78 = vector.load %arg12[%c0_76, %c0_77] : memref<128x128xbf16, #tpu.memory_space<vmem>>, vector<128x128xbf16>
    %cst_78 = arith.constant dense<0.000000e+00> : vector<448x128xf32>
    %79 = tpu.matmul %77, %78, %cst_78 {dimension_numbers = #tpu.dot_dimension_numbers<[1], [0], [0], [1], [0, 0, 1, 1], [], []>} : vector<448x128xbf16>, vector<128x128xbf16>, vector<448x128xf32> -> vector<448x128xf32>
    %c0_79 = arith.constant 0 : index
    %c0_80 = arith.constant 0 : index
    %80 = vector.load %arg13[%c0_79, %c0_80] : memref<1x128xf32, #tpu.memory_space<vmem>>, vector<1x128xf32>
    %81 = vector.broadcast %80 : vector<1x128xf32> to vector<448x128xf32>
    %82 = arith.addf %79, %81 : vector<448x128xf32>
    %c0_81 = arith.constant 0 : index
    %c0_82 = arith.constant 0 : index
    %c0_83 = arith.constant 0 : index
    %83 = vector.load %arg2[%c0_81, %c0_82, %c0_83] : memref<1x448x128xbf16, #tpu.memory_space<vmem>>, vector<1x448x128xbf16>
    %84 = vector.shape_cast %83 : vector<1x448x128xbf16> to vector<448x128xbf16>
    %85 = arith.extf %84 : vector<448x128xbf16> to vector<448x128xf32>
    %86 = arith.addf %82, %85 : vector<448x128xf32>
    %cst_84 = arith.constant 0.000000e+00 : f32
    %87 = vector.broadcast %cst_84 : f32 to vector<448x128xf32>
    %88 = arith.maximumf %86, %87 : vector<448x128xf32>
    %89 = arith.truncf %88 : vector<448x128xf32> to vector<448x128xbf16>
    %c0_85 = arith.constant 0 : index
    %c0_86 = arith.constant 0 : index
    %c0_87 = arith.constant 0 : index
    %90 = vector.load %arg14[%c0_85, %c0_86, %c0_87] : memref<1x448x128xbf16, #tpu.memory_space<vmem>>, vector<1x448x128xbf16>
    %91 = vector.shape_cast %90 : vector<1x448x128xbf16> to vector<448x128xbf16>
    %92 = vector.shape_cast %89 : vector<448x128xbf16> to vector<1x448x128xbf16>
    tpu.vector_store %arg14[%c0_85, %c0_86, %c0_87], %92 {strides = array<i32>} : memref<1x448x128xbf16, #tpu.memory_space<vmem>>, vector<1x448x128xbf16>,
    return
  }
  func.func @transform_0(%arg0: i32, %arg1: i32) -> (i32, i32, i32) {
    %c0_i32 = arith.constant 0 : i32
    %c0_i32_0 = arith.constant 0 : i32
    return %arg0, %arg1, %c0_i32 : i32, i32, i32
  }
  func.func @transform_1(%arg0: i32, %arg1: i32) -> (i32, i32, i32) {
    %c14_i32 = arith.constant 14 : i32
    %0 = arith.muli %arg1, %c14_i32 : i32
    %c1_i32 = arith.constant 1 : i32
    %1 = arith.subi %0, %c1_i32 : i32
    %c0_i32 = arith.constant 0 : i32
    %2 = arith.maxsi %1, %c0_i32 : i32
    %c0_i32_0 = arith.constant 0 : i32
    %c0_i32_1 = arith.constant 0 : i32
    return %arg0, %2, %c0_i32_0 : i32, i32, i32
  }
  func.func @transform_2(%arg0: i32, %arg1: i32) -> (i32, i32, i32) {
    %c1_i32 = arith.constant 1 : i32
    %0 = arith.addi %arg1, %c1_i32 : i32
    %c14_i32 = arith.constant 14 : i32
    %1 = arith.muli %0, %c14_i32 : i32
    %c13_i32 = arith.constant 13 : i32
    %2 = arith.minsi %1, %c13_i32 : i32
    %c0_i32 = arith.constant 0 : i32
    %c0_i32_0 = arith.constant 0 : i32
    return %arg0, %2, %c0_i32 : i32, i32, i32
  }
  func.func @transform_3(%arg0: i32, %arg1: i32) -> (i32, i32) {
    %c0_i32 = arith.constant 0 : i32
    %c0_i32_0 = arith.constant 0 : i32
    return %arg1, %c0_i32 : i32, i32
  }
  func.func @transform_4(%arg0: i32, %arg1: i32) -> (i32, i32) {
    %c14_i32 = arith.constant 14 : i32
    %0 = arith.muli %arg1, %c14_i32 : i32
    %c1_i32 = arith.constant 1 : i32
    %1 = arith.subi %0, %c1_i32 : i32
    %c0_i32 = arith.constant 0 : i32
    %2 = arith.maxsi %1, %c0_i32 : i32
    %c0_i32_0 = arith.constant 0 : i32
    %c0_i32_1 = arith.constant 0 : i32
    return %2, %c0_i32_0 : i32, i32
  }
  func.func @transform_5(%arg0: i32, %arg1: i32) -> (i32, i32) {
    %c1_i32 = arith.constant 1 : i32
    %0 = arith.addi %arg1, %c1_i32 : i32
    %c14_i32 = arith.constant 14 : i32
    %1 = arith.muli %0, %c14_i32 : i32
    %c13_i32 = arith.constant 13 : i32
    %2 = arith.minsi %1, %c13_i32 : i32
    %c0_i32 = arith.constant 0 : i32
    %c0_i32_0 = arith.constant 0 : i32
    return %2, %c0_i32 : i32, i32
  }
  func.func @transform_6(%arg0: i32, %arg1: i32) -> (i32, i32) {
    %c0_i32 = arith.constant 0 : i32
    %c0_i32_0 = arith.constant 0 : i32
    %c0_i32_1 = arith.constant 0 : i32
    return %c0_i32, %c0_i32_0 : i32, i32
  }
  func.func @transform_7(%arg0: i32, %arg1: i32) -> (i32, i32) {
    %c0_i32 = arith.constant 0 : i32
    %c0_i32_0 = arith.constant 0 : i32
    %c0_i32_1 = arith.constant 0 : i32
    return %c0_i32, %c0_i32_0 : i32, i32
  }
  func.func @transform_8(%arg0: i32, %arg1: i32) -> (i32, i32, i32) {
    %c0_i32 = arith.constant 0 : i32
    %c0_i32_0 = arith.constant 0 : i32
    %c0_i32_1 = arith.constant 0 : i32
    %c0_i32_2 = arith.constant 0 : i32
    return %c0_i32, %c0_i32_0, %c0_i32_1 : i32, i32, i32
  }
  func.func @transform_9(%arg0: i32, %arg1: i32) -> (i32, i32) {
    %c0_i32 = arith.constant 0 : i32
    %c0_i32_0 = arith.constant 0 : i32
    %c0_i32_1 = arith.constant 0 : i32
    return %c0_i32, %c0_i32_0 : i32, i32
  }
  func.func @transform_10(%arg0: i32, %arg1: i32) -> (i32, i32) {
    %c0_i32 = arith.constant 0 : i32
    %c0_i32_0 = arith.constant 0 : i32
    %c0_i32_1 = arith.constant 0 : i32
    return %c0_i32, %c0_i32_0 : i32, i32
  }
  func.func @transform_11(%arg0: i32, %arg1: i32) -> (i32, i32) {
    %c0_i32 = arith.constant 0 : i32
    %c0_i32_0 = arith.constant 0 : i32
    %c0_i32_1 = arith.constant 0 : i32
    return %c0_i32, %c0_i32_0 : i32, i32
  }
  func.func @transform_12(%arg0: i32, %arg1: i32) -> (i32, i32, i32) {
    %c0_i32 = arith.constant 0 : i32
    %c0_i32_0 = arith.constant 0 : i32
    return %arg0, %arg1, %c0_i32 : i32, i32, i32
  }
}

</mosaic_0001>

<bundles_post_ra>
// kernel: bottleneck_forward.1
= control target key start
LH: loop header
LB: loop body
LE: loop exit
PB: predicated region body
PF: predicated region fallthrough
CT: control target
= control target key end

     0   :  { %s9430_s21 = smov 0   ;;  %s9432_s22 = smov 0   ;;  %s12848_s0 = inlined_call_operand.vmem [shape: bf16[2,448,128], index: 0, kind: input, shape index: {}, may-alias: {0,1,2}]   ;;  %s12849_s1 = inlined_call_operand.vmem [shape: bf16[2,448,128], index: 1, kind: input, shape index: {}, may-alias: {0,1,2}]   ;;  %s12850_s2 = inlined_call_operand.vmem [shape: bf16[2,448,128], index: 2, kind: input, shape index: {}, may-alias: {0,1,2}]   ;;  %s12851_s3 = inlined_call_operand.vmem [shape: f32[448,1], index: 3, kind: input, shape index: {}, may-alias: {3,4,5}]   ;;  %s12852_s4 = inlined_call_operand.vmem [shape: f32[448,1], index: 4, kind: input, shape index: {}, may-alias: {3,4,5}]   ;;  %s12853_s5 = inlined_call_operand.vmem [shape: f32[448,1], index: 5, kind: input, shape index: {}, may-alias: {3,4,5}]   ;;  %s12854_s6 = inlined_call_operand.vmem [shape: bf16[128,128], index: 6, kind: input, shape index: {}]   ;;  %s12855_s7 = inlined_call_operand.vmem [shape: f32[1,128], index: 7, kind: input, shape index: {}]   ;;  %s12856_s8 = inlined_call_operand.vmem [shape: bf16[3,384,128], index: 8, kind: input, shape index: {}]   ;;  %s12857_s9 = inlined_call_operand.vmem [shape: f32[1,128], index: 9, kind: input, shape index: {}]   ;;  %s12858_s10 = inlined_call_operand.vmem [shape: bf16[128,128], index: 10, kind: input, shape index: {}]   ;;  %s12859_s11 = inlined_call_operand.vmem [shape: f32[1,128], index: 11, kind: input, shape index: {}]   ;;  %s12860_s12 = inlined_call_operand.vmem [shape: bf16[2,448,128], index: 12, kind: output, shape index: {}]  }
   0x1   :  { %s9434_s23 = smov 0  }
   0x2 LB: > { %s34_s24 = sadd.s32 1, %s9358_s22  ;;  %p7885_p0 = scmp.ge.s32.totalorder %s9362_s23, 1  ;;  %s9362_s23 = sphi %s9434_s23, %s22_s23   ;;  %s9358_s22 = sphi %s9432_s22, %s13164_s22   ;;  %s9354_s21 = sphi %s9430_s21, %s13163_s21  }
   0x3   : > { %p36_p1 = scmp.ge.s32.totalorder %s34_s24, 2  ;;  %p514_p2 = scmp.lt.s32.totalorder %s9362_s23, 3 }
   0x5   : > { %s13166_s24 = smov (%p36_p1, %s34_s24), 0  ;;  %p515_p3 = pnand %p7885_p0, %p514_p2 }
   0x7   : > { %518 = sbr.rel (%p515_p3) target bundleno = 1452 (0x5ac), region = 68 }
   0xe   : > { %v712_v0 = vld [vmem:[%s12852_s4 + $0x10] sm:$0xff]  ;;  %v710_v1 = vld [vmem:[%s12852_s4] sm:$0xff]  ;;  %p614_p4 = scmp.lt.s32.totalorder %s9354_s21, 1  ;;  %v12861_v2 = vmov 0   ;;  %v713_v5 = vld [vmem:[%s12852_s4 + $0x18] sm:$0xff]  ;;  %vm878_vm0 = vcmask 1043456  }
   0xf   : > { %9198 = vset.pattern.permute.xlu1 %v12861_v2  ;;  %704 = vst [vmem:[#allocation2] sm:$0xf] %v12861_v2  ;;  %705 = vst [vmem:[#allocation2 + $0x100] sm:$0xf0] %v12861_v2  ;;  %9197 = vset.pattern.permute.xlu0 %v12861_v2  ;;  %v9199_v3 = vld [vmem:[%s12854_s6] sm:$0xff]   ;;  %v711_v6 = vld [vmem:[%s12852_s4 + $0x8] sm:$0xff] }
  0x10   : > { %862 = vperm.xlu1 %9198, %v712_v0   ;;  %852 = vperm.xlu0 %9197, %v710_v1   ;;  %v9200_v4 = vld [vmem:[%s12854_s6] sm:$0xff]   ;;  %s13168_s21 = smov (!%p614_p4, %s9354_s21), 1  ;;  %v9201_v7 = vld [vmem:[%s12854_s6 + $0x8] sm:$0xff]   ;;  %v9203_v11 = vld [vmem:[%s12854_s6 + $0x10] sm:$0xff]   ;;  %vm2271_vm1 = vsmask.f32 4352 }
  0x11   : > { %8753 = vmatprep.subr.bf16.mxu0 %v9199_v3  ;;  %8773 = vmatprep.subr.bf16.mxu1 %v9200_v4  ;;  %v9202_v8 = vld [vmem:[%s12854_s6 + $0x8] sm:$0xff]   ;;  %v944_v10 = vld [vmem:[%s12851_s3] sm:$0xff]  ;;  %v9204_v12 = vld [vmem:[%s12854_s6 + $0x10] sm:$0xff]   ;;  %s9515_s19 = smul.u32 224, %s13168_s21  ;;  %vm2860_vm2 = vsmask.f32 3328 }
  0x12   : > { %8754 = vmatpush3.bf16.msra.mxu0 %v9199_v3  ;;  %8774 = vmatpush3.bf16.msra.mxu1 %v9200_v4  ;;  %v945_v9 = vld [vmem:[%s12851_s3 + $0x8] sm:$0xff]  ;;  %v9205_v13 = vld [vmem:[%s12854_s6 + $0x18] sm:$0xff]   ;;  %v946_v15 = vld [vmem:[%s12851_s3 + $0x10] sm:$0xff] }
  0x13   : > { %8755 = vmatprep.subr.bf16.mxu0 %v9201_v7  ;;  %8775 = vmatprep.subr.bf16.mxu1 %v9202_v8  ;;  %v947_v14 = vld [vmem:[%s12851_s3 + $0x18] sm:$0xff]  ;;  %v949_v17 = vld [vmem:[%s12851_s3 + $0x28] sm:$0xff]  ;;  %v9207_v18 = vld [vmem:[%s12854_s6 + $0x20] sm:$0xff]   ;;  %s9533_s15 = scalar_lea.vmem %s12849_s1, %s9515_s19  ;;  %s9539_s18 = scalar_lea.vmem %s12848_s0, %s9515_s19 }
  0x14   : > { %867 = vperm.xlu1 %9198, %v713_v5   ;;  %857 = vperm.xlu0 %9197, %v711_v6   ;;  %v9206_v16 = vld [vmem:[%s12854_s6 + $0x18] sm:$0xff]   ;;  %v948_v19 = vld [vmem:[%s12851_s3 + $0x20] sm:$0xff]  ;;  %v9209_v21 = vld [vmem:[%s12854_s6 + $0x28] sm:$0xff]   ;;  %s8190_s17 = sadd.s32 208, %s9515_s19  ;;  %s12733_s21 = scalar_lea.vmem %s12860_s12, %s9515_s19 }
  0x15   : > { %v9208_v20 = vld [vmem:[%s12854_s6 + $0x20] sm:$0xff]   ;;  %v951_v22 = vld [vmem:[%s12851_s3 + $0x38] sm:$0xff]  ;;  %v950_v23 = vld [vmem:[%s12851_s3 + $0x30] sm:$0xff]  ;;  %s9612_s29 = scalar_lea.vmem %s12850_s2, %s8190_s17 }
  0x16   : > { %8756 = vmatpush3.bf16.msra.mxu0 %v9201_v7  ;;  %8776 = vmatpush3.bf16.msra.mxu1 %v9202_v8  ;;  %v9210_v24 = vld [vmem:[%s12854_s6 + $0x28] sm:$0xff]   ;;  %v952_v26 = vld [vmem:[%s12851_s3 + $0x40] sm:$0xff]  ;;  %v9211_v27 = vld [vmem:[%s12854_s6 + $0x30] sm:$0xff]  }
  0x17   : > { %8757 = vmatprep.subr.bf16.mxu0 %v9203_v11  ;;  %8777 = vmatprep.subr.bf16.mxu1 %v9204_v12  ;;  %v953_v25 = vld [vmem:[%s12851_s3 + $0x48] sm:$0xff]  ;;  %v9212_v28 = vld [vmem:[%s12854_s6 + $0x30] sm:$0xff]   ;;  %v9215_v29 = vld [vmem:[%s9533_s15] sm:$0xff]  }
  0x18   : > { %1559 = vperm.xlu1 %9198, %v945_v9   ;;  %1554 = vperm.xlu0 %9197, %v944_v10   ;;  %v9216_v30 = vld [vmem:[%s9539_s18] sm:$0xff]   ;;  %v9213_v31 = vld [vmem:[%s12854_s6 + $0x38] sm:$0xff]   ;;  %v954_v33 = vld [vmem:[%s12851_s3 + $0x50] sm:$0xff] }
  0x19   : > { %8769 = vmatprep.mubr.bf16.mxu0 %v9215_v29  ;;  %v955_v32 = vld [vmem:[%s12851_s3 + $0x58] sm:$0xff]  ;;  %8789 = vmatprep.mubr.bf16.mxu1 %v9216_v30  ;;  %v957_v35 = vld [vmem:[%s12851_s3 + $0x68] sm:$0xff]  ;;  %v9219_v36 = vld [vmem:[%s12854_s6] sm:$0xff]  }
  0x1a   : > { %8758 = vmatpush3.bf16.msra.mxu0 %v9203_v11  ;;  %8778 = vmatpush3.bf16.msra.mxu1 %v9204_v12  ;;  %v9214_v34 = vld [vmem:[%s12854_s6 + $0x38] sm:$0xff]   ;;  %v956_v37 = vld [vmem:[%s12851_s3 + $0x60] sm:$0xff]  ;;  %v9217_v38 = vld [vmem:[%s9533_s15 + $0x8] sm:$0xff]  }
  0x1b   : > { %8759 = vmatprep.subr.bf16.mxu0 %v9205_v13  ;;  %8779 = vmatprep.subr.bf16.mxu1 %v9206_v16  ;;  %v9218_v39 = vld [vmem:[%s9539_s18 + $0x8] sm:$0xff]   ;;  %v9221_v41 = vld [vmem:[%s9539_s18 + $0x10] sm:$0xff]   ;;  %v959_v42 = vld [vmem:[%s12851_s3 + $0x78] sm:$0xff] }
  0x1c   : > { %1569 = vperm.xlu1 %9198, %v947_v14   ;;  %1564 = vperm.xlu0 %9197, %v946_v15   ;;  %v9220_v40 = vld [vmem:[%s12854_s6 + $0x8] sm:$0xff]   ;;  %v958_v43 = vld [vmem:[%s12851_s3 + $0x70] sm:$0xff]  ;;  %v960_v46 = vld [vmem:[%s12851_s3 + $0x80] sm:$0xff] }
  0x1d   : > { %v9223_v44 = vld [vmem:[%s12854_s6 + $0x10] sm:$0xff]   ;;  %v961_v45 = vld [vmem:[%s12851_s3 + $0x88] sm:$0xff]  ;;  %v9222_v47 = vld [vmem:[%s9539_s18 + $0x18] sm:$0xff]  }
  0x1e   : > { %8760 = vmatpush3.bf16.msra.mxu0 %v9205_v13  ;;  %8780 = vmatpush3.bf16.msra.mxu1 %v9206_v16  ;;  %v9224_v48 = vld [vmem:[%s12854_s6 + $0x18] sm:$0xff]   ;;  %v9225_v49 = vld [vmem:[%s9539_s18 + $0x20] sm:$0xff]   ;;  %v962_v51 = vld [vmem:[%s12851_s3 + $0x90] sm:$0xff] }
  0x1f   : > { %8761 = vmatprep.subr.bf16.mxu0 %v9207_v18  ;;  %8781 = vmatprep.subr.bf16.mxu1 %v9208_v20  ;;  %v963_v50 = vld [vmem:[%s12851_s3 + $0x98] sm:$0xff]  ;;  %v965_v52 = vld [vmem:[%s12851_s3 + $0xa8] sm:$0xff]  ;;  %v9227_v53 = vld [vmem:[%s12854_s6 + $0x20] sm:$0xff]  }
  0x20   : > { %1579 = vperm.xlu1 %9198, %v949_v17   ;;  %1574 = vperm.xlu0 %9197, %v948_v19   ;;  %v964_v54 = vld [vmem:[%s12851_s3 + $0xa0] sm:$0xff]  ;;  %v9226_v56 = vld [vmem:[%s9539_s18 + $0x28] sm:$0xff]   ;;  %v9229_v58 = vld [vmem:[%s9539_s18 + $0x30] sm:$0xff]  }
  0x21   : > { %v9234_v55 = vld [vmem:[%s9612_s29] sm:$0xff]   ;;  %v9228_v57 = vld [vmem:[%s12854_s6 + $0x28] sm:$0xff]   ;;  %v967_v59 = vld [vmem:[%s12851_s3 + $0xb8] sm:$0xff] }
  0x22   : > { %8762 = vmatpush3.bf16.msra.mxu0 %v9207_v18  ;;  %8782 = vmatpush3.bf16.msra.mxu1 %v9208_v20  ;;  %v966_v60 = vld [vmem:[%s12851_s3 + $0xb0] sm:$0xff]  ;;  %v969_v62 = vld [vmem:[%s12851_s3 + $0xc8] sm:$0xff]  ;;  %v968_v63 = vld [vmem:[%s12851_s3 + $0xc0] sm:$0xff] }
  0x23   : > { %8763 = vmatprep.subr.bf16.mxu0 %v9209_v21  ;;  %8783 = vmatprep.subr.bf16.mxu1 %v9210_v24  ;;  %v9231_v61 = vld [vmem:[%s12854_s6 + $0x30] sm:$0xff]   ;;  %v9230_v0 = vld [vmem:[%s9539_s18 + $0x38] sm:$0xff]   ;;  %v9233_v3 = vld [vmem:[%s9539_s18 + $0x40] sm:$0xff]  }
  0x24   : > { %1589 = vperm.xlu1 %9198, %v951_v22   ;;  %1584 = vperm.xlu0 %9197, %v950_v23   ;;  %v9232_v1 = vld [vmem:[%s12854_s6 + $0x38] sm:$0xff]   ;;  %v970_v5 = vld [vmem:[%s12851_s3 + $0xd0] sm:$0xff]  ;;  %v973_v6 = vld [vmem:[%s12851_s3 + $0xe8] sm:$0xff] }
  0x25   : > { %v971_v4 = vld [vmem:[%s12851_s3 + $0xd8] sm:$0xff]  ;;  %v972_v7 = vld [vmem:[%s12851_s3 + $0xe0] sm:$0xff]  ;;  %v9236_v8 = vld [vmem:[%s9612_s29 + $0x8] sm:$0xff]  }
  0x26   : > { %8764 = vmatpush3.bf16.msra.mxu0 %v9209_v21  ;;  %8784 = vmatpush3.bf16.msra.mxu1 %v9210_v24  ;;  %v9235_v9 = vld [vmem:[%s9539_s18 + $0x48] sm:$0xff]   ;;  %v9237_v10 = vld [vmem:[%s9539_s18 + $0x50] sm:$0xff]   ;;  %v975_v11 = vld [vmem:[%s12851_s3 + $0xf8] sm:$0xff] }
  0x27   : > { %8765 = vmatprep.subr.bf16.mxu0 %v9211_v27  ;;  %8785 = vmatprep.subr.bf16.mxu1 %v9212_v28  ;;  %v974_v12 = vld [vmem:[%s12851_s3 + $0xf0] sm:$0xff]  ;;  %v977_v13 = vld [vmem:[%s12851_s3 + $0x108] sm:$0xff]  ;;  %v976_v14 = vld [vmem:[%s12851_s3 + $0x100] sm:$0xff] }
  0x28   : > { %1599 = vperm.xlu1 %9198, %v953_v25   ;;  %1594 = vperm.xlu0 %9197, %v952_v26   ;;  %v9238_v15 = vld [vmem:[%s9539_s18 + $0x58] sm:$0xff]   ;;  %v9239_v16 = vld [vmem:[%s9539_s18 + $0x60] sm:$0xff]   ;;  %v978_v18 = vld [vmem:[%s12851_s3 + $0x110] sm:$0xff] }
  0x29   : > { %v979_v17 = vld [vmem:[%s12851_s3 + $0x118] sm:$0xff]  ;;  %v981_v19 = vld [vmem:[%s12851_s3 + $0x128] sm:$0xff]  ;;  %v980_v20 = vld [vmem:[%s12851_s3 + $0x120] sm:$0xff] }
  0x2a   : > { %8766 = vmatpush3.bf16.msra.mxu0 %v9211_v27  ;;  %8786 = vmatpush3.bf16.msra.mxu1 %v9212_v28  ;;  %v9240_v21 = vld [vmem:[%s9539_s18 + $0x68] sm:$0xff]   ;;  %v9241_v22 = vld [vmem:[%s9539_s18 + $0x70] sm:$0xff]   ;;  %v983_v23 = vld [vmem:[%s12851_s3 + $0x138] sm:$0xff] }
  0x2b   : > { %8767 = vmatprep.subr.bf16.mxu0 %v9213_v31  ;;  %8787 = vmatprep.subr.bf16.mxu1 %v9214_v34  ;;  %v982_v24 = vld [vmem:[%s12851_s3 + $0x130] sm:$0xff]  ;;  %v985_v25 = vld [vmem:[%s12851_s3 + $0x148] sm:$0xff]  ;;  %v984_v26 = vld [vmem:[%s12851_s3 + $0x140] sm:$0xff] }
  0x2c   : > { %1609 = vperm.xlu1 %9198, %v955_v32   ;;  %1604 = vperm.xlu0 %9197, %v954_v33   ;;  %v9242_v27 = vld [vmem:[%s9539_s18 + $0x78] sm:$0xff]   ;;  %v9243_v28 = vld [vmem:[%s9539_s18 + $0x80] sm:$0xff]   ;;  %v986_v30 = vld [vmem:[%s12851_s3 + $0x150] sm:$0xff] }
  0x2d   : > { %v987_v29 = vld [vmem:[%s12851_s3 + $0x158] sm:$0xff]  ;;  %v988_v32 = vld [vmem:[%s12851_s3 + $0x160] sm:$0xff] }
  0x2e   : > { %8768 = vmatpush3.bf16.msra.mxu0 %v9213_v31  ;;  %8788 = vmatpush3.bf16.msra.mxu1 %v9214_v34  ;;  %v989_v31 = vld [vmem:[%s12851_s3 + $0x168] sm:$0xff]  ;;  %v9255_v33 = vld [vmem:[%s12856_s8] sm:$0xff]  }
  0x2f   : > { %8845 = vmatprep.subr.bf16.mxu0 %v9219_v36  ;;  %v9244_v34 = vld [vmem:[%s9539_s18 + $0x88] sm:$0xff]  }
  0x30   : > { %1619 = vperm.xlu1 %9198, %v957_v35   ;;  %1614 = vperm.xlu0 %9197, %v956_v37   ;;  %v9245_v35 = vld [vmem:[%s9539_s18 + $0x90] sm:$0xff]  }
  0x31   : > { %8770 = vmatmul.mubr.bf16.vlgmr.msra.gmra.mrb[0].mxu0 %v9217_v38  ;;  %8790 = vmatmul.mubr.bf16.vlgmr.msra.gmra.mrb[0].mxu1 %v9218_v39  ;;  %v990_v37 = vld [vmem:[%s12851_s3 + $0x170] sm:$0xff]  ;;  %v9256_v38 = vld [vmem:[%s12856_s8 + $0x8] sm:$0xff]  }
  0x32   : > { %8846 = vmatpush3.bf16.msra.mxu0 %v9219_v36  ;;  %8793 = vmatprep.mubr.bf16.mxu1 %v9221_v41  ;;  %v991_v36 = vld [vmem:[%s12851_s3 + $0x178] sm:$0xff]  ;;  %v993_v39 = vld [vmem:[%s12851_s3 + $0x188] sm:$0xff]  ;;  %v9257_v41 = vld [vmem:[%s12856_s8 + $0x10] sm:$0xff]  }
  0x33   : > { %8847 = vmatprep.subr.bf16.mxu0 %v9220_v40  ;;  %8861 = vmatprep.mubr.bf16.mxu0 %v9234_v55  ;;  %v7939_v55 = vld [vmem:[%s12853_s5 + $0x1a8] sm:$0xff] }
  0x34   : > { %1629 = vperm.xlu1 %9198, %v959_v42   ;;  %1624 = vperm.xlu0 %9197, %v958_v43   ;;  %v9246_v42 = vld [vmem:[%s9539_s18 + $0x98] sm:$0xff]   ;;  %v9247_v43 = vld [vmem:[%s9539_s18 + $0xa0] sm:$0xff]  }
  0x36   : > { %8848 = vmatpush3.bf16.msra.mxu0 %v9220_v40  ;;  %v992_v40 = vld [vmem:[%s12851_s3 + $0x180] sm:$0xff] }
  0x37   : > { %8849 = vmatprep.subr.bf16.mxu0 %v9223_v44 }
  0x38   : > { %1639 = vperm.xlu1 %9198, %v961_v45   ;;  %1634 = vperm.xlu0 %9197, %v960_v46   ;;  %v994_v45 = vld [vmem:[%s12851_s3 + $0x190] sm:$0xff]  ;;  %v9258_v46 = vld [vmem:[%s12856_s8 + $0x18] sm:$0xff]  }
  0x39   : > { %8794 = vmatmul.mubr.bf16.gmra.mrb[4].mxu1 %v9222_v47  ;;  %v997_v47 = vld [vmem:[%s12851_s3 + $0x1a8] sm:$0xff] }
  0x3a   : > { %8850 = vmatpush3.bf16.msra.mxu0 %v9223_v44  ;;  %8797 = vmatprep.mubr.bf16.mxu1 %v9225_v49  ;;  %v995_v44 = vld [vmem:[%s12851_s3 + $0x198] sm:$0xff]  ;;  %v9259_v49 = vld [vmem:[%s12856_s8 + $0x20] sm:$0xff]  }
  0x3b   : > { %8851 = vmatprep.subr.bf16.mxu0 %v9224_v48 }
  0x3c   : > { %1649 = vperm.xlu1 %9198, %v963_v50   ;;  %1644 = vperm.xlu0 %9197, %v962_v51   ;;  %v9248_v50 = vld [vmem:[%s9539_s18 + $0xa8] sm:$0xff]   ;;  %v9249_v51 = vld [vmem:[%s9539_s18 + $0xb0] sm:$0xff]  }
  0x3e   : > { %8852 = vmatpush3.bf16.msra.mxu0 %v9224_v48  ;;  %v996_v48 = vld [vmem:[%s12851_s3 + $0x1a0] sm:$0xff] }
  0x3f   : > { %8853 = vmatprep.subr.bf16.mxu0 %v9227_v53 }
  0x40   : > { %1659 = vperm.xlu1 %9198, %v965_v52   ;;  %1654 = vperm.xlu0 %9197, %v964_v54   ;;  %v999_v52 = vld [vmem:[%s12851_s3 + $0x1b8] sm:$0xff]  ;;  %v9260_v54 = vld [vmem:[%s12856_s8 + $0x28] sm:$0xff]  }
  0x41   : > { %8798 = vmatmul.mubr.bf16.gmra.mrb[8].mxu1 %v9226_v56  ;;  %v7938_v56 = vld [vmem:[%s12853_s5 + $0x1a0] sm:$0xff] }
  0x42   : > { %8854 = vmatpush3.bf16.msra.mxu0 %v9227_v53  ;;  %8801 = vmatprep.mubr.bf16.mxu1 %v9229_v58  ;;  %v998_v53 = vld [vmem:[%s12851_s3 + $0x1b0] sm:$0xff] }
  0x43   : > { %8855 = vmatprep.subr.bf16.mxu0 %v9228_v57  ;;  %v9261_v58 = vld [vmem:[%s12856_s8 + $0x30] sm:$0xff]  }
  0x44   : > { %1669 = vperm.xlu1 %9198, %v967_v59   ;;  %1664 = vperm.xlu0 %9197, %v966_v60   ;;  %v9251_v59 = vld [vmem:[%s9539_s18 + $0xc0] sm:$0xff]   ;;  %v7941_v60 = vld [vmem:[%s12853_s5 + $0x1b8] sm:$0xff] }
  0x46   : > { %8856 = vmatpush3.bf16.msra.mxu0 %v9228_v57  ;;  %v9250_v57 = vld [vmem:[%s9539_s18 + $0xb8] sm:$0xff]  }
  0x47   : > { %8857 = vmatprep.subr.bf16.mxu0 %v9231_v61 }
  0x48   : > { %1679 = vperm.xlu1 %9198, %v969_v62   ;;  %1674 = vperm.xlu0 %9197, %v968_v63   ;;  %v9262_v62 = vld [vmem:[%s12856_s8 + $0x38] sm:$0xff]   ;;  %v9252_v63 = vld [vmem:[%s9539_s18 + $0xc8] sm:$0xff]  }
  0x49   : > { %8802 = vmatmul.mubr.bf16.gmra.mrb[12].mxu1 %v9230_v0  ;;  %v9253_v0 = vld [vmem:[%s9539_s18 + $0xd0] sm:$0xff]  }
  0x4a   : > { %8858 = vmatpush3.bf16.msra.mxu0 %v9231_v61  ;;  %8805 = vmatprep.mubr.bf16.mxu1 %v9233_v3  ;;  %v7940_v61 = vld [vmem:[%s12853_s5 + $0x1b0] sm:$0xff]  ;;  %v9264_v3 = vld [vmem:[%s12856_s8 + $0x80] sm:$0xff]  }
  0x4b   : > { %8859 = vmatprep.subr.bf16.mxu0 %v9232_v1  ;;  %8865 = vmatprep.subr.bf16.mxu1 %v9264_v3 }
  0x4c   : > { %1689 = vperm.xlu1 %9198, %v971_v4   ;;  %1684 = vperm.xlu0 %9197, %v970_v5  }
  0x4d   : > { %8866 = vmatpush3.bf16.msra.mxu1 %v9264_v3 }
  0x4e   : > { %8860 = vmatpush3.bf16.msra.mxu0 %v9232_v1  ;;  %v9263_v1 = vld [vmem:[%s12856_s8 + $0x40] sm:$0xff]  }
  0x4f   : > { %3842 = vmatprep.subr.bf16.mxu0 %v12861_v2 }
  0x50   : > { %1699 = vperm.xlu1 %9198, %v973_v6   ;;  %1694 = vperm.xlu0 %9197, %v972_v7  }
  0x51   : > { %8862 = vmatmul.mubr.bf16.vlgmr.msra.gmra.mrb[4].mxu0 %v9236_v8  ;;  %8806 = vmatmul.mubr.bf16.gmra.mrb[16].mxu1 %v9235_v9  ;;  %v9265_v8 = vld [vmem:[%s12856_s8 + $0x48] sm:$0xff]  }
  0x52   : > { %8809 = vmatprep.mubr.bf16.mxu1 %v9237_v10  ;;  %3843 = vmatpush1.bf16.msra.mxu0 %v9255_v33  ;;  %v9266_v9 = vld [vmem:[%s12856_s8 + $0x88] sm:$0xff]   ;;  %v9254_v10 = vld [vmem:[%s9539_s18 + $0xd8] sm:$0xff]  }
  0x53   : > { %3844 = vmatprep.subr.bf16.mxu0 %v12861_v2  ;;  %8867 = vmatprep.subr.bf16.mxu1 %v9266_v9  ;;  %v9277_v33 = vld [vmem:[%s12856_s8 + $0x78] sm:$0xff]  }
  0x54   : > { %1709 = vperm.xlu1 %9198, %v975_v11   ;;  %1704 = vperm.xlu0 %9197, %v974_v12  }
  0x55   : > { %8868 = vmatpush3.bf16.msra.mxu1 %v9266_v9 }
  0x56   : > { %3845 = vmatpush1.bf16.msra.mxu0 %v9256_v38 }
  0x57   : > { %3846 = vmatprep.subr.bf16.mxu0 %v12861_v2 }
  0x58   : > { %1719 = vperm.xlu1 %9198, %v977_v13   ;;  %1714 = vperm.xlu0 %9197, %v976_v14   ;;  %v9267_v13 = vld [vmem:[%s12856_s8 + $0x50] sm:$0xff]  }
  0x59   : > { %8810 = vmatmul.mubr.bf16.gmra.mrb[20].mxu1 %v9238_v15  ;;  %v9268_v14 = vld [vmem:[%s12856_s8 + $0x90] sm:$0xff]  }
  0x5a   : > { %8813 = vmatprep.mubr.bf16.mxu1 %v9239_v16  ;;  %3847 = vmatpush1.bf16.msra.mxu0 %v9257_v41 }
  0x5b   : > { %3848 = vmatprep.subr.bf16.mxu0 %v12861_v2  ;;  %8869 = vmatprep.subr.bf16.mxu1 %v9268_v14 }
  0x5c   : > { %1729 = vperm.xlu1 %9198, %v979_v17   ;;  %1724 = vperm.xlu0 %9197, %v978_v18   ;;  %v9269_v17 = vld [vmem:[%s12856_s8 + $0x58] sm:$0xff]  }
  0x5d   : > { %8870 = vmatpush3.bf16.msra.mxu1 %v9268_v14  ;;  %v9270_v18 = vld [vmem:[%s12856_s8 + $0x98] sm:$0xff]  }
  0x5e   : > { %3849 = vmatpush1.bf16.msra.mxu0 %v9258_v46  ;;  %8871 = vmatprep.subr.bf16.mxu1 %v9270_v18 }
  0x5f   : > { %3850 = vmatprep.subr.bf16.mxu0 %v12861_v2 }
  0x60   : > { %1739 = vperm.xlu1 %9198, %v981_v19   ;;  %1734 = vperm.xlu0 %9197, %v980_v20  }
  0x61   : > { %8814 = vmatmul.mubr.bf16.gmra.mrb[24].mxu1 %v9240_v21  ;;  %v9271_v21 = vld [vmem:[%s12856_s8 + $0x60] sm:$0xff]  }
  0x62   : > { %8817 = vmatprep.mubr.bf16.mxu1 %v9241_v22  ;;  %3851 = vmatpush1.bf16.msra.mxu0 %v9259_v49  ;;  %v9272_v22 = vld [vmem:[%s12856_s8 + $0xa0] sm:$0xff]  }
  0x63   : > { %3852 = vmatprep.subr.bf16.mxu0 %v12861_v2  ;;  %8872 = vmatpush3.bf16.msra.mxu1 %v9270_v18 }
  0x64   : > { %1749 = vperm.xlu1 %9198, %v983_v23   ;;  %1744 = vperm.xlu0 %9197, %v982_v24  }
  0x65   : > { %8873 = vmatprep.subr.bf16.mxu1 %v9272_v22 }
  0x66   : > { %3853 = vmatpush1.bf16.msra.mxu0 %v9260_v54 }
  0x67   : > { %3854 = vmatprep.subr.bf16.mxu0 %v12861_v2  ;;  %8874 = vmatpush3.bf16.msra.mxu1 %v9272_v22 }
  0x68   : > { %1759 = vperm.xlu1 %9198, %v985_v25   ;;  %1754 = vperm.xlu0 %9197, %v984_v26   ;;  %v9273_v25 = vld [vmem:[%s12856_s8 + $0x68] sm:$0xff]  }
  0x69   : > { %8818 = vmatmul.mubr.bf16.gmra.mrb[28].mxu1 %v9242_v27  ;;  %v9274_v26 = vld [vmem:[%s12856_s8 + $0xa8] sm:$0xff]  }
  0x6a   : > { %8821 = vmatprep.mubr.bf16.mxu1 %v9243_v28  ;;  %3855 = vmatpush1.bf16.msra.mxu0 %v9261_v58 }
  0x6b   : > { %3856 = vmatprep.subr.bf16.mxu0 %v12861_v2  ;;  %8875 = vmatprep.subr.bf16.mxu1 %v9274_v26 }
  0x6c   : > { %1769 = vperm.xlu1 %9198, %v987_v29   ;;  %1764 = vperm.xlu0 %9197, %v986_v30   ;;  %v9275_v29 = vld [vmem:[%s12856_s8 + $0x70] sm:$0xff]  }
  0x6d   : > { %8876 = vmatpush3.bf16.msra.mxu1 %v9274_v26  ;;  %v9276_v30 = vld [vmem:[%s12856_s8 + $0xb0] sm:$0xff]  }
  0x6e   : > { %3857 = vmatpush1.bf16.msra.mxu0 %v9262_v62  ;;  %8877 = vmatprep.subr.bf16.mxu1 %v9276_v30 }
  0x6f   : > { %3858 = vmatprep.subr.bf16.mxu0 %v12861_v2 }
  0x70   : > { %1779 = vperm.xlu1 %9198, %v989_v31   ;;  %1774 = vperm.xlu0 %9197, %v988_v32  }
  0x71   : > { %8822 = vmatmul.mubr.bf16.gmra.mrb[32].mxu1 %v9244_v34 }
  0x72   : > { %8825 = vmatprep.mubr.bf16.mxu1 %v9245_v35  ;;  %3859 = vmatpush1.bf16.msra.mxu0 %v9263_v1 }
  0x73   : > { %3860 = vmatprep.subr.bf16.mxu0 %v12861_v2  ;;  %8878 = vmatpush3.bf16.msra.mxu1 %v9276_v30 }
  0x74   : > { %1789 = vperm.xlu1 %9198, %v991_v36   ;;  %1784 = vperm.xlu0 %9197, %v990_v37   ;;  %v9278_v36 = vld [vmem:[%s12856_s8 + $0xb8] sm:$0xff]  }
  0x75   : > { %8879 = vmatprep.subr.bf16.mxu1 %v9278_v36 }
  0x76   : > { %3861 = vmatpush1.bf16.msra.mxu0 %v9265_v8 }
  0x77   : > { %3862 = vmatprep.subr.bf16.mxu0 %v12861_v2  ;;  %8880 = vmatpush3.bf16.msra.mxu1 %v9278_v36 }
  0x78   : > { %1799 = vperm.xlu1 %9198, %v993_v39   ;;  %1794 = vperm.xlu0 %9197, %v992_v40  }
  0x79   : > { %8826 = vmatmul.mubr.bf16.gmra.mrb[36].mxu1 %v9246_v42  ;;  %4745 = vmatprep.subr.bf16.mxu1 %v12861_v2 }
  0x7a   : > { %8829 = vmatprep.mubr.bf16.mxu1 %v9247_v43  ;;  %3863 = vmatpush1.bf16.msra.mxu0 %v9267_v13  ;;  %v9969_v13 = vld [vmem:[%s12855_s7] ss:$0 sm:$0xff] }
  0x7b   : > { %3864 = vmatprep.subr.bf16.mxu0 %v12861_v2 }
  0x7c   : > { %1809 = vperm.xlu1 %9198, %v995_v44   ;;  %1804 = vperm.xlu0 %9197, %v994_v45   ;;  %v9915_v45 = vld [vmem:[%s12856_s8 + $0x140] sm:$0xff]  }
  0x7e   : > { %3865 = vmatpush1.bf16.msra.mxu0 %v9269_v17 }
  0x7f   : > { %3866 = vmatprep.subr.bf16.mxu0 %v12861_v2 }
  0x80   : > { %1819 = vperm.xlu1 %9198, %v997_v47   ;;  %1814 = vperm.xlu0 %9197, %v996_v48  }
  0x81   : > { %8830 = vmatmul.mubr.bf16.gmra.mrb[40].mxu1 %v9248_v50 }
  0x82   : > { %8833 = vmatprep.mubr.bf16.mxu1 %v9249_v51  ;;  %3867 = vmatpush1.bf16.msra.mxu0 %v9271_v21 }
  0x83   : > { %3868 = vmatprep.subr.bf16.mxu0 %v12861_v2 }
  0x84   : > { %1829 = vperm.xlu1 %9198, %v999_v52   ;;  %1824 = vperm.xlu0 %9197, %v998_v53  }
  0x86   : > { %3869 = vmatpush1.bf16.msra.mxu0 %v9273_v25 }
  0x87   : > { %3870 = vmatprep.subr.bf16.mxu0 %v12861_v2 }
  0x88   : > { %2208 = vperm.xlu1 %9198, %v7939_v55   ;;  %2203 = vperm.xlu0 %9197, %v7938_v56  }
  0x89   : > { %8834 = vmatmul.mubr.bf16.gmra.mrb[44].mxu1 %v9250_v57 }
  0x8a   : > { %8837 = vmatprep.mubr.bf16.mxu1 %v9251_v59  ;;  %3871 = vmatpush1.bf16.msra.mxu0 %v9275_v29 }
  0x8b   : > { %3872 = vmatprep.subr.bf16.mxu0 %v12861_v2 }
  0x8c   : > { %2218 = vperm.xlu1 %9198, %v7941_v60   ;;  %2213 = vperm.xlu0 %9197, %v7940_v61  }
  0x8e   : > { %3873 = vmatpush1.bf16.msra.mxu0 %v9277_v33 }
  0x8f   : > { %v9809_v4 = vpop.permute.xlu1 %862  ;;  %v9811_v5 = vpop.permute.xlu0 %852  ;;  %8937 = vmatprep.subr.bf16.mxu0 %v9915_v45 }
  0x91   : > { %8838 = vmatmul.mubr.bf16.gmra.mrb[48].mxu1 %v9252_v63 }
  0x92   : > { %8841 = vmatprep.mubr.bf16.mxu1 %v9253_v0 }
  0x93   : > { %v9814_v6 = vpop.permute.xlu1 %867  ;;  %v9816_v7 = vpop.permute.xlu0 %857 }
  0x97   : > { %v9825_v11 = vpop.permute.xlu1 %1559  ;;  %v9827_v12 = vpop.permute.xlu0 %1554 }
  0x99   : > { %8842 = vmatmul.mubr.bf16.gmra.mrb[52].mxu1 %v9254_v10 }
  0x9b   : > { %v9836_v15 = vpop.permute.xlu1 %1569  ;;  %v9838_v16 = vpop.permute.xlu0 %1564 }
  0x9f   : > { %v9847_v19 = vpop.permute.xlu1 %1579  ;;  %v9849_v20 = vpop.permute.xlu0 %1574 }
  0xa3   : > { %v9858_v23 = vpop.permute.xlu1 %1589  ;;  %v9860_v24 = vpop.permute.xlu0 %1584 }
  0xa7   : > { %v9869_v27 = vpop.permute.xlu1 %1599  ;;  %v9871_v28 = vpop.permute.xlu0 %1594 }
  0xab   : > { %v9880_v31 = vpop.permute.xlu1 %1609  ;;  %v9882_v32 = vpop.permute.xlu0 %1604 }
  0xaf   : > { %v9888_v34 = vpop.permute.xlu1 %1619  ;;  %v9890_v35 = vpop.permute.xlu0 %1614 }
  0xb3   : > { %v9895_v37 = vpop.permute.xlu1 %1629  ;;  %v9897_v38 = vpop.permute.xlu0 %1624 }
  0xb7   : > { %v9900_v39 = vpop.permute.xlu1 %1639  ;;  %v9902_v40 = vpop.permute.xlu0 %1634 }
  0xbb   : > { %v9904_v41 = vpop.permute.xlu1 %1649  ;;  %v9906_v42 = vpop.permute.xlu0 %1644 }
  0xbf   : > { %v9908_v43 = vpop.permute.xlu1 %1659  ;;  %v9910_v44 = vpop.permute.xlu0 %1654 }
  0xc3   : > { %v9918_v46 = vpop.permute.xlu1 %1669  ;;  %v9920_v47 = vpop.permute.xlu0 %1664 }
  0xc7   : > { %v9922_v48 = vpop.permute.xlu1 %1679  ;;  %v9924_v49 = vpop.permute.xlu0 %1674 }
  0xcb   : > { %v9926_v50 = vpop.permute.xlu1 %1689  ;;  %v9928_v51 = vpop.permute.xlu0 %1684 }
  0xcf   : > { %v9930_v52 = vpop.permute.xlu1 %1699  ;;  %v9932_v53 = vpop.permute.xlu0 %1694 }
  0xd0   : > { %12896 = vst [vmem:[#allocation5_spill] sm:$0xff] %v9930_v52 }
  0xd3   : > { %v9934_v54 = vpop.permute.xlu1 %1709  ;;  %v9936_v55 = vpop.permute.xlu0 %1704 }
  0xd7   : > { %v9938_v56 = vpop.permute.xlu1 %1719  ;;  %v9940_v57 = vpop.permute.xlu0 %1714 }
  0xd8   : > { %12897 = vst [vmem:[#allocation6_spill] sm:$0xff] %v9938_v56  ;;  %12898 = vst [vmem:[#allocation7_spill] sm:$0xff] %v9940_v57 }
  0xdb   : > { %v9942_v58 = vpop.permute.xlu1 %1729  ;;  %v9944_v59 = vpop.permute.xlu0 %1724 }
  0xdc   : > { %12899 = vst [vmem:[#allocation8_spill] sm:$0xff] %v9942_v58  ;;  %12900 = vst [vmem:[#allocation9_spill] sm:$0xff] %v9944_v59 }
  0xdf   : > { %v9946_v60 = vpop.permute.xlu1 %1739  ;;  %v9948_v61 = vpop.permute.xlu0 %1734 }
  0xe0   : > { %12901 = vst [vmem:[#allocation10_spill] sm:$0xff] %v9946_v60  ;;  %12902 = vst [vmem:[#allocation11_spill] sm:$0xff] %v9948_v61 }
  0xe3   : > { %v9950_v62 = vpop.permute.xlu1 %1749  ;;  %v9952_v63 = vpop.permute.xlu0 %1744 }
  0xe4   : > { %12903 = vst [vmem:[#allocation12_spill] sm:$0xff] %v9950_v62  ;;  %12904 = vst [vmem:[#allocation13_spill] sm:$0xff] %v9952_v63 }
  0xe7   : > { %v9954_v0 = vpop.permute.xlu1 %1759  ;;  %v9956_v1 = vpop.permute.xlu0 %1754 }
  0xe8   : > { %12905 = vst [vmem:[#allocation14_spill] sm:$0xff] %v9954_v0  ;;  %12906 = vst [vmem:[#allocation15_spill] sm:$0xff] %v9956_v1 }
  0xeb   : > { %v9958_v3 = vpop.permute.xlu1 %1769  ;;  %v9960_v8 = vpop.permute.xlu0 %1764 }
  0xec   : > { %12907 = vst [vmem:[#allocation16_spill] sm:$0xff] %v9958_v3  ;;  %12908 = vst [vmem:[#allocation17_spill] sm:$0xff] %v9960_v8 }
  0xef   : > { %v9962_v9 = vpop.permute.xlu1 %1779  ;;  %v9964_v10 = vpop.permute.xlu0 %1774 }
  0xf0   : > { %12909 = vst [vmem:[#allocation18_spill] sm:$0xff] %v9962_v9  ;;  %12910 = vst [vmem:[#allocation19_spill] sm:$0xff] %v9964_v10 }
  0xf3   : > { %v9971_v14 = vpop.permute.xlu1 %1789  ;;  %v9973_v17 = vpop.permute.xlu0 %1784 }
  0xf4   : > { %12911 = vst [vmem:[#allocation20_spill] sm:$0xff] %v9971_v14  ;;  %12912 = vst [vmem:[#allocation21_spill] sm:$0xff] %v9973_v17 }
  0xf7   : > { %v9983_v62 = vpop.permute.xlu0 %1794 }
  0xf8   : > { %12913 = vst [vmem:[#allocation22_spill] sm:$0xff] %v9983_v62 }
 0x104   : > { %v8771_v18 = vpop.f32.mrb[0].mxu0  ;;  %v8791_v22 = vpop.f32.mrb[0].mxu1 }
 0x105   : > { %v840_v21 = vadd.f32 %v8771_v18, %v9969_v13  ;;  %v831_v25 = vpop.f32.mrb[1].mxu0  ;;  %v1282_v26 = vadd.f32 %v8791_v22, %v9969_v13  ;;  %v1273_v30 = vpop.f32.mrb[1].mxu1 }
 0x106   : > { %v832_v29 = vadd.f32 %v9969_v13, %v831_v25  ;;  %v8772_v33 = vpop.f32.mrb[2].mxu0  ;;  %v1274_v2 = vadd.f32 %v9969_v13, %v1273_v30  ;;  %v8792_v10 = vpop.f32.mrb[2].mxu1 }
 0x107   : > { %v848_v36 = vmax.f32 %v840_v21, 0.0  ;;  %v843_v9 = vadd.f32 %v8772_v33, %v9969_v13  ;;  %v1498_v14 = vmax.f32 %v1282_v26, 0.0  ;;  %v1285_v17 = vadd.f32 %v8792_v10, %v9969_v13  ;;  %v834_v0 = vpop.f32.mrb[3].mxu0  ;;  %v1276_v8 = vpop.f32.mrb[3].mxu1 }
 0x108   : > { %v846_v3 = vmax.f32 %v832_v29, 0.0  ;;  %v835_v1 = vadd.f32 %v9969_v13, %v834_v0  ;;  %v1496_v22 = vmax.f32 %v1274_v2, 0.0  ;;  %v1277_v25 = vadd.f32 %v9969_v13, %v1276_v8  ;;  %v9987_v26 = vpop.permute.xlu1 %1799 }
 0x109   : > { %v849_v18 = vmax.f32 %v843_v9, 0.0  ;;  %v1499_v60 = vmax.f32 %v1285_v17, 0.0  ;;  %v872_v21 = vmul.f32 %v9809_v4, %v848_v36  ;;  %12914 = vst [vmem:[#allocation23_spill] sm:$0xff] %v9987_v26  ;;  %v1834_v10 = vmul.f32 %v9838_v16, %v1498_v14 }
 0x10a   : > { %v847_v33 = vmax.f32 %v835_v1, 0.0  ;;  %v1497_v29 = vmax.f32 %v1277_v25, 0.0  ;;  %v870_v0 = vmul.f32 %v9811_v5, %v846_v3  ;;  %v1832_v62 = vmul.f32 %v9827_v12, %v1496_v22  ;;  %v10000_v12 = vpop.permute.xlu0 %1804 }
 0x10b   : > { %v873_v30 = vmul.f32 %v9814_v6, %v849_v18  ;;  %v1835_v9 = vmul.f32 %v9836_v15, %v1499_v60  ;;  %12915 = vst [vmem:[#allocation24_spill] sm:$0xff] %v10000_v12 }
 0x10c   : > { %v871_v17 = vmul.f32 %v9816_v7, %v847_v33  ;;  %v8795_v8 = vpop.f32.mrb[4].mxu1  ;;  %v1833_v4 = vmul.f32 %v9825_v11, %v1497_v29 }
 0x10d   : > { %v875_v2 = vpack.c.bf16 %v873_v30, %v872_v21  ;;  %v1889_v61 = vpack.c.bf16 %v1835_v9, %v1834_v10  ;;  %v1298_v6 = vadd.f32 %v8795_v8, %v9969_v13  ;;  %v1289_v1 = vpop.f32.mrb[5].mxu1  ;;  %v10003_v21 = vpop.permute.xlu1 %1809 }
 0x10e   : > { %v874_v18 = vpack.c.bf16 %v871_v17, %v870_v0  ;;  %v1290_v15 = vadd.f32 %v9969_v13, %v1289_v1  ;;  %v8796_v16 = vpop.f32.mrb[6].mxu1  ;;  %v1888_v5 = vpack.c.bf16 %v1833_v4, %v1832_v62  ;;  %12916 = vst [vmem:[#allocation25_spill] sm:$0xff] %v10003_v21 }
 0x10f   : > { %v880_v36 = vrot.slane %v875_v2, 4  ;;  %v9997_v60 = vrot.slane %v1889_v61, 4  ;;  %v1502_v3 = vmax.f32 %v1298_v6, 0.0  ;;  %v1301_v7 = vadd.f32 %v8796_v16, %v9969_v13  ;;  %v1292_v14 = vpop.f32.mrb[7].mxu1 }
 0x110   : > { %v879_v11 = vrot.slane %v874_v18, 4  ;;  %v1500_v22 = vmax.f32 %v1290_v15, 0.0  ;;  %v1293_v25 = vadd.f32 %v9969_v13, %v1292_v14  ;;  %v1944_v30 = vrot.slane %v1888_v5, 4  ;;  %v10023_v5 = vpop.permute.xlu0 %1814 }
 0x111   : > { %887 = vst [vmem:[#allocation2 + $0x10] sm:$0xf] %v880_v36  ;;  %v1503_v33 = vmax.f32 %v1301_v7, 0.0  ;;  %v1838_v61 = vmul.f32 %v9860_v24, %v1502_v3  ;;  %12917 = vst [vmem:[#allocation26_spill] sm:$0xff] %v10023_v5  ;;  %v10026_v14 = vpop.permute.xlu1 %1819 }
 0x112   : > { %v10006_v10 = vsel %vm878_vm0, %v879_v11, %v880_v36  ;;  %885 = vst [vmem:[#allocation2] sm:$0xf0] %v879_v11  ;;  %v1501_v62 = vmax.f32 %v1293_v25, 0.0  ;;  %v10013_v0 = vsel %vm878_vm0, %v1944_v30, %v9997_v60  ;;  %2028 = vst [vmem:[#allocation2 + $0x10] sm:$0xf0] %v1944_v30  ;;  %v1836_v4 = vmul.f32 %v9849_v20, %v1500_v22 }
 0x113   : > { %v2281_v9 = vshrl.u32 %v10006_v10, 16  ;;  %v12865_v29 = vshll.u32 %v10006_v10, 16  ;;  %v1839_v2 = vmul.f32 %v9858_v23, %v1503_v33  ;;  %v12864_v17 = vshrl.u32 %v10013_v0, 16  ;;  %12918 = vst [vmem:[#allocation27_spill] sm:$0xff] %v10026_v14 }
 0x114   : > { %v12863_v8 = vshll.u32 %v10013_v0, 16  ;;  %v1837_v24 = vmul.f32 %v9847_v19, %v1501_v62  ;;  %v8799_v6 = vpop.f32.mrb[8].mxu1  ;;  %v2699_v25 = vrot.slane %v10006_v10, 4  ;;  %v10050_v26 = vpop.permute.xlu0 %1824 }
 0x115   : > { %v2283_v1 = vrot.slane %v2281_v9, 3  ;;  %v2286_v36 = vrot.slane %v12865_v29, 4  ;;  %v1891_v18 = vpack.c.bf16 %v1839_v2, %v1838_v61  ;;  %v1314_v15 = vadd.f32 %v8799_v6, %v9969_v13  ;;  %v1305_v16 = vpop.f32.mrb[9].mxu1  ;;  %12919 = vst [vmem:[#allocation28_spill] sm:$0xff] %v10050_v26  ;;  %v10057_v21 = vpop.permute.xlu1 %1829 }
 0x116   : > { %v1890_v23 = vpack.c.bf16 %v1837_v24, %v1836_v4  ;;  %v1306_v3 = vadd.f32 %v9969_v13, %v1305_v16  ;;  %v8800_v7 = vpop.f32.mrb[10].mxu1  ;;  %v10030_v19 = vrot.slane %v12864_v17, 4  ;;  %v10034_v20 = vrot.slane %v12863_v8, 5  ;;  %12920 = vst [vmem:[#allocation29_spill] sm:$0xff] %v10057_v21 }
 0x117   : > { %v1506_v11 = vmax.f32 %v1314_v15, 0.0  ;;  %v1308_v22 = vpop.f32.mrb[11].mxu1  ;;  %v10037_v30 = vrot.slane %v1891_v18, 4  ;;  %v10039_v62 = vrot.slane %v2281_v9, 4  ;;  %v1317_v6 = vadd.f32 %v8800_v7, %v9969_v13 }
 0x118   : > { %v1947_v33 = vrot.slane %v1890_v23, 4  ;;  %v1504_v61 = vmax.f32 %v1306_v3, 0.0  ;;  %v1309_v16 = vadd.f32 %v9969_v13, %v1308_v22  ;;  %v10043_v8 = vor.u32 %v2286_v36, %v2283_v1 }
 0x119   : > { %v2238_v2 = vld [vmem:[#allocation2] sm:$0xf8]  ;;  %v10045_v14 = vld [vmem:[#allocation2 + $0x10] sm:$0xff]  ;;  %v1842_v18 = vmul.f32 %v9882_v32, %v1506_v11  ;;  %v1507_v1 = vmax.f32 %v1317_v6, 0.0 }
 0x11a   : > { %v2632_v4 = vld [vmem:[#allocation2] sm:$0xf0]  ;;  %v2273_v15 = vshrl.u32 %v2238_v2, 16  ;;  %v2276_v17 = vshll.u32 %v2238_v2, 16  ;;  %v2290_v3 = vshrl.u32 %v10045_v14, 16  ;;  %v2293_v5 = vshll.u32 %v10045_v14, 16 }
 0x11b   : > { %v2827_v24 = vld [vmem:[#allocation2] sm:$0xf0]  ;;  %v2698_v23 = vrot.slane %v2632_v4, 4  ;;  %v10055_v36 = vsel %vm878_vm0, %v9997_v60, %v1947_v33  ;;  %v1840_v60 = vmul.f32 %v9871_v28, %v1504_v61  ;;  %v1505_v21 = vmax.f32 %v1309_v16, 0.0 }
 0x11c   : > { %v2862_v29 = vshrl.u32 %v2827_v24, 16  ;;  %v2865_v9 = vshll.u32 %v2827_v24, 16  ;;  %v2275_v7 = vrot.slane %v2273_v15, 3  ;;  %v2278_v22 = vrot.slane %v2276_v17, 4  ;;  %v8803_v2 = vpop.f32.mrb[12].mxu1 }
 0x11d   : > { %v10063_v4 = vrot.slane %v2290_v3, 3  ;;  %v10065_v24 = vrot.slane %v2293_v5, 4  ;;  %v1321_v26 = vpop.f32.mrb[13].mxu1  ;;  %v10067_v15 = vrot.slane %v2290_v3, 4  ;;  %v10071_v17 = vsel %vm878_vm0, %v1947_v33, %v10037_v30 }
 0x11e   : > { %v10059_v32 = vrot.slane %v2862_v29, 4  ;;  %v10061_v11 = vrot.slane %v2865_v9, 5  ;;  %v8804_v12 = vpop.f32.mrb[14].mxu1  ;;  %v1330_v29 = vadd.f32 %v8803_v2, %v9969_v13  ;;  %v1322_v9 = vadd.f32 %v9969_v13, %v1321_v26  ;;  %v2204_v26 = vpop.permute.xlu0 %2203 }
 0x11f   : > { %v1333_v63 = vadd.f32 %v8804_v12, %v9969_v13  ;;  %v1324_v56 = vpop.f32.mrb[15].mxu1  ;;  %v1843_v58 = vmul.f32 %v9880_v31, %v1507_v1  ;;  %v2700_v57 = vsel %vm878_vm0, %v2698_v23, %v2699_v25  ;;  %v12921_v33 = vrot.slane %v10045_v14, 4 }
 0x120   : > { %v1325_v3 = vadd.f32 %v9969_v13, %v1324_v56  ;;  %v1841_v61 = vmul.f32 %v9869_v27, %v1505_v21  ;;  %v1510_v6 = vmax.f32 %v1330_v29, 0.0  ;;  %v1508_v16 = vmax.f32 %v1322_v9, 0.0  ;;  %2795 = vst [vmem:[#allocation3 + $0x8] sm:$0xff] %v2700_v57  ;;  %v10088_v56 = vpop.permute.xlu1 %2208 }
 0x121   : > { %v10083_v28 = vsel %vm878_vm0, %v2699_v25, %v12921_v33  ;;  %v1511_v2 = vmax.f32 %v1333_v63, 0.0  ;;  %v10086_v12 = vrot.slane %v2293_v5, 5  ;;  %v1893_v59 = vpack.c.bf16 %v1843_v58, %v1842_v18 }
 0x122   : > { %v1509_v31 = vmax.f32 %v1325_v3, 0.0  ;;  %v2279_v1 = vor.u32 %v2278_v22, %v2275_v7  ;;  %v1892_v23 = vpack.c.bf16 %v1841_v61, %v1840_v60  ;;  %v1846_v52 = vmul.f32 %v9897_v38, %v1510_v6 }
 0x123   : > { %v1844_v25 = vmul.f32 %v9890_v35, %v1508_v16  ;;  %v1847_v33 = vmul.f32 %v9895_v37, %v1511_v2  ;;  %v1953_v21 = vrot.slane %v1893_v59, 4 }
 0x124   : > { %v8863_v27 = vpop.f32.mrb[4].mxu0  ;;  %v1845_v63 = vmul.f32 %v9888_v34, %v1509_v31  ;;  %v8807_v57 = vpop.f32.mrb[16].mxu1  ;;  %v2288_v58 = vsel %vm2271_vm1, %v2279_v1, %v10043_v8  ;;  %v1951_v18 = vrot.slane %v1892_v23, 4 }
 0x125   : > { %v2191_v5 = vadd.f32 %v8863_v27, %v9969_v13  ;;  %v2182_v29 = vpop.f32.mrb[5].mxu0  ;;  %v1895_v7 = vpack.c.bf16 %v1847_v33, %v1846_v52  ;;  %v1346_v22 = vadd.f32 %v8807_v57, %v9969_v13  ;;  %v1337_v38 = vpop.f32.mrb[17].mxu1  ;;  %2600 = vst [vmem:[#allocation3] sm:$0xff] %v2288_v58  ;;  %v3447_v27 = vrot.slane %v10083_v28, 4 }
 0x126   : > { %v2183_v35 = vadd.f32 %v9969_v13, %v2182_v29  ;;  %v8864_v60 = vpop.f32.mrb[6].mxu0  ;;  %v1894_v37 = vpack.c.bf16 %v1845_v63, %v1844_v25  ;;  %v1338_v34 = vadd.f32 %v9969_v13, %v1337_v38  ;;  %v8808_v9 = vpop.f32.mrb[18].mxu1  ;;  %v10103_v6 = vsel %vm878_vm0, %v10037_v30, %v1951_v18 }
 0x127   : > { %v2199_v59 = vmax.f32 %v2191_v5, 0.0  ;;  %v2194_v3 = vadd.f32 %v8864_v60, %v9969_v13  ;;  %v2185_v61 = vpop.f32.mrb[7].mxu0  ;;  %v10106_v52 = vsel %vm878_vm0, %v1951_v18, %v1953_v21  ;;  %v1957_v16 = vrot.slane %v1895_v7, 4  ;;  %v1340_v31 = vpop.f32.mrb[19].mxu1  ;;  %v3222_v30 = vld [vmem:[#allocation3 + $0x8] sm:$0xf0] }
 0x128   : > { %v1514_v2 = vmax.f32 %v1346_v22, 0.0  ;;  %v2214_v1 = vpop.permute.xlu0 %2213  ;;  %v1955_v23 = vrot.slane %v1894_v37, 4  ;;  %v1512_v25 = vmax.f32 %v1338_v34, 0.0  ;;  %v2197_v33 = vmax.f32 %v2183_v35, 0.0  ;;  %v2219_v58 = vpop.permute.xlu1 %2218 }
 0x129   : > { %v2223_v63 = vmul.f32 %v2214_v1, %v2199_v59  ;;  %v1349_v57 = vadd.f32 %v8808_v9, %v9969_v13  ;;  %v2200_v5 = vmax.f32 %v2194_v3, 0.0  ;;  %v1341_v29 = vadd.f32 %v9969_v13, %v1340_v31 }
 0x12a   : > { %v10112_v18 = vsel %vm878_vm0, %v1953_v21, %v1955_v23  ;;  %v10115_v7 = vsel %vm878_vm0, %v1955_v23, %v1957_v16  ;;  %v1850_v22 = vmul.f32 %v9906_v42, %v1514_v2  ;;  %v1848_v38 = vmul.f32 %v9902_v40, %v1512_v25 }
 0x12b   : > { %2034 = vst [vmem:[#allocation2 + $0x40] sm:$0xff] %v10112_v18  ;;  %2035 = vst [vmem:[#allocation2 + $0x48] sm:$0xff] %v10115_v7  ;;  %v1515_v35 = vmax.f32 %v1349_v57, 0.0  ;;  %v2224_v60 = vmul.f32 %v2219_v58, %v2200_v5  ;;  %v1513_v37 = vmax.f32 %v1341_v29, 0.0  ;;  %v2186_v59 = vadd.f32 %v9969_v13, %v2185_v61 }
 0x12c   : > { %v2221_v34 = vmul.f32 %v2204_v26, %v2197_v33  ;;  %v3446_v9 = vrot.slane %v3222_v30, 4  ;;  %v8811_v21 = vpop.f32.mrb[20].mxu1  ;;  %v10124_v3 = vor.u32 %v10065_v24, %v10063_v4  ;;  %v12922_v42 = vshll.u32 %v10006_v10, 16  ;;  %v3221_v57 = vld [vmem:[#allocation3] sm:$0xf0] }
 0x12d   : > { %v1851_v40 = vmul.f32 %v9904_v41, %v1515_v35  ;;  %v2226_v31 = vpack.c.bf16 %v2224_v60, %v2223_v63  ;;  %v1849_v1 = vmul.f32 %v9900_v39, %v1513_v37  ;;  %v2198_v23 = vmax.f32 %v2186_v59, 0.0  ;;  %v1353_v25 = vpop.f32.mrb[21].mxu1 }
 0x12e   : > { %v2875_v2 = vrot.slane %v12922_v42, 5  ;;  %v3448_v26 = vsel %vm878_vm0, %v3446_v9, %v3447_v27  ;;  %v1362_v61 = vadd.f32 %v8811_v21, %v9969_v13  ;;  %v10137_v4 = vsel %vm2271_vm1, %v10043_v8, %v10124_v3  ;;  %v8812_v10 = vpop.f32.mrb[22].mxu1 }
 0x12f   : > { %v2868_v41 = vor.u32 %v10061_v11, %v10059_v32  ;;  %v1897_v24 = vpack.c.bf16 %v1851_v40, %v1850_v22  ;;  %v2230_v39 = vrot.slane %v2226_v31, 4  ;;  %v1896_v33 = vpack.c.bf16 %v1849_v1, %v1848_v38  ;;  %3874 = vmatprep.mubr.bf16.mxu0 %v3448_v26  ;;  %v1356_v5 = vpop.f32.mrb[23].mxu1  ;;  %v9283_v31 = vld [vmem:[%s12856_s8 + $0x150] sm:$0xff]  }
 0x130   : > { %v2222_v63 = vmul.f32 %v10088_v56, %v2198_v23  ;;  %v3443_v29 = vrot.slane %v3221_v57, 4  ;;  %v3444_v30 = vrot.slane %v10137_v4, 4  ;;  %v10145_v58 = vor.u32 %v10034_v20, %v10030_v19  ;;  %v9280_v56 = vld [vmem:[%s12856_s8 + $0x148] sm:$0xff]  }
 0x131   : > { %v10147_v8 = vrot.slane %v1897_v24, 4  ;;  %2237 = vst [vmem:[#allocation2 + $0x100] sm:$0xf] %v2230_v39  ;;  %v1959_v32 = vrot.slane %v1896_v33, 4  ;;  %v2876_v22 = vor.u32 %v2875_v2, %v10039_v62  ;;  %v1518_v38 = vmax.f32 %v1362_v61, 0.0 }
 0x132   : > { %v2225_v11 = vpack.c.bf16 %v2222_v63, %v2221_v34  ;;  %v1354_v35 = vadd.f32 %v9969_v13, %v1353_v25  ;;  %v3445_v60 = vsel %vm878_vm0, %v3443_v29, %v3444_v30  ;;  %v2885_v19 = vor.u32 %v10086_v12, %v10067_v15 }
 0x133   : > { %v10160_v20 = vsel %vm878_vm0, %v1957_v16, %v1959_v32  ;;  %v10164_v62 = vsel %vm878_vm0, %v1959_v32, %v10147_v8  ;;  %3875 = vmatmul.mubr.bf16.vlgmr.msra.gmra.mrb[8].mxu0 %v3445_v60  ;;  %v2877_v59 = vsel %vm2860_vm2, %v2868_v41, %v2876_v22  ;;  %v1365_v15 = vadd.f32 %v8812_v10, %v9969_v13 }
 0x134   : > { %v2229_v37 = vrot.slane %v2225_v11, 4  ;;  %2036 = vst [vmem:[#allocation2 + $0x50] sm:$0xff] %v10160_v20  ;;  %2037 = vst [vmem:[#allocation2 + $0x58] sm:$0xff] %v10164_v62  ;;  %v2886_v34 = vsel %vm2860_vm2, %v2876_v22, %v2885_v19  ;;  %8938 = vmatpush3.bf16.msra.mxu0 %v9915_v45  ;;  %v2703_v12 = vrot.slane %v10013_v0, 4  ;;  %v10175_v16 = vsel %vm2860_vm2, %v2885_v19, %v10145_v58  ;;  %v8815_v9 = vpop.f32.mrb[24].mxu1 }
 0x135   : > { %3189 = vst [vmem:[#allocation3 + $0x10] sm:$0xff] %v2877_v59  ;;  %v3450_v42 = vrot.slane %v2886_v34, 4  ;;  %3191 = vst [vmem:[#allocation3 + $0x40] sm:$0xff] %v10175_v16  ;;  %v3456_v2 = vrot.slane %v10175_v16, 4  ;;  %v1357_v40 = vadd.f32 %v9969_v13, %v1356_v5  ;;  %v1369_v45 = vpop.f32.mrb[25].mxu1  ;;  %8939 = vmatprep.subr.bf16.mxu0 %v9280_v56  ;;  %v1519_v1 = vmax.f32 %v1365_v15, 0.0 }
 0x136   : > { %v2231_v21 = vsel %vm878_vm0, %v2229_v37, %v2230_v39  ;;  %2235 = vst [vmem:[#allocation2 + $0xf0] sm:$0xf0] %v2229_v37  ;;  %v12923_v23 = vrot.slane %v10045_v14, 4  ;;  %v8816_v57 = vpop.f32.mrb[26].mxu1  ;;  %v1854_v10 = vmul.f32 %v9920_v47, %v1518_v38  ;;  %v1516_v24 = vmax.f32 %v1354_v35, 0.0  ;;  %v9291_v5 = vld [vmem:[%s12856_s8 + $0x158] sm:$0xff]  }
 0x137   : > { %2236 = vst [vmem:[#allocation2 + $0xf8] sm:$0xff] %v2231_v21  ;;  %v3457_v61 = vsel %vm878_vm0, %v3450_v42, %v3456_v2  ;;  %v1372_v41 = vpop.f32.mrb[27].mxu1  ;;  %v1855_v39 = vmul.f32 %v9918_v46, %v1519_v1  ;;  %v1517_v33 = vmax.f32 %v1357_v40, 0.0  ;;  %v1378_v14 = vadd.f32 %v8815_v9, %v9969_v13 }
 0x138   : > { %v10189_v25 = vsel %vm878_vm0, %v12923_v23, %v2703_v12  ;;  %8940 = vmatpush3.bf16.msra.mxu0 %v9280_v56  ;;  %v1370_v63 = vadd.f32 %v9969_v13, %v1369_v45  ;;  %v1852_v46 = vmul.f32 %v9910_v44, %v1516_v24  ;;  %v1381_v56 = vadd.f32 %v8816_v57, %v9969_v13  ;;  %v9281_v44 = vld [vmem:[%s12856_s8 + $0xc0] sm:$0xff]  }
 0x139   : > { %2797 = vst [vmem:[#allocation3 + $0x38] sm:$0xff] %v10189_v25  ;;  %v3454_v26 = vrot.slane %v10189_v25, 4  ;;  %8941 = vmatprep.subr.bf16.mxu0 %v9283_v31  ;;  %v1899_v29 = vpack.c.bf16 %v1855_v39, %v1854_v10  ;;  %v1853_v22 = vmul.f32 %v9908_v43, %v1517_v33  ;;  %v1522_v35 = vmax.f32 %v1378_v14, 0.0  ;;  %v9282_v33 = vld [vmem:[%s12856_s8 + $0xc8] sm:$0xff]  }
 0x13a   : > { %v1520_v60 = vmax.f32 %v1370_v63, 0.0  ;;  %v12924_v19 = vshrl.u32 %v10013_v0, 16  ;;  %v10214_v59 = vadd.f32 %v9969_v13, %v1372_v41  ;;  %v12925_v15 = vshll.u32 %v10013_v0, 16  ;;  %v9299_v0 = vld [vmem:[%s12856_s8 + $0x160] sm:$0xff]  }
 0x13b   : > { %v3455_v47 = vsel %vm878_vm0, %v3447_v27, %v3454_v26  ;;  %v10220_v27 = vrot.slane %v1899_v29, 4  ;;  %v1898_v34 = vpack.c.bf16 %v1853_v22, %v1852_v46  ;;  %v1858_v40 = vmul.f32 %v9928_v51, %v1522_v35 }
 0x13c   : > { %v3223_v32 = vld [vmem:[#allocation3 + $0x10] sm:$0xf0]  ;;  %3882 = vmatprep.mubr.bf16.mxu0 %v3455_v47  ;;  %v8819_v38 = vpop.f32.mrb[28].mxu1  ;;  %8942 = vmatpush3.bf16.msra.mxu0 %v9283_v31  ;;  %v2301_v37 = vrot.slane %v12924_v19, 3  ;;  %v2304_v9 = vrot.slane %v12925_v15, 4  ;;  %v10228_v45 = vmul.f32 %v9924_v49, %v1520_v60  ;;  %v2897_v31 = vshrl.u32 %v10055_v36, 16 }
 0x13d   : > { %v3449_v11 = vrot.slane %v3223_v32, 4  ;;  %v1385_v28 = vpop.f32.mrb[29].mxu1  ;;  %8943 = vmatprep.subr.bf16.mxu0 %v9291_v5  ;;  %v2900_v1 = vshll.u32 %v10055_v36, 16  ;;  %v1523_v41 = vmax.f32 %v1381_v56, 0.0  ;;  %v2705_v10 = vrot.slane %v10055_v36, 4 }
 0x13e   : > { %v10224_v21 = vpop.f32.mrb[30].mxu1  ;;  %v10234_v57 = vor.u32 %v2304_v9, %v2301_v37  ;;  %v2899_v24 = vrot.slane %v2897_v31, 4  ;;  %v2906_v51 = vshrl.u32 %v10071_v17, 16  ;;  %v2909_v49 = vshll.u32 %v10071_v17, 16 }
 0x13f   : > { %v3451_v43 = vsel %vm878_vm0, %v3449_v11, %v3450_v42  ;;  %v10232_v23 = vpop.f32.mrb[31].mxu1  ;;  %v1963_v42 = vrot.slane %v1898_v34, 4  ;;  %v2902_v39 = vrot.slane %v2900_v1, 5  ;;  %v12926_v29 = vmov 0  }
 0x140   : > { %8881 = vmatprep.mubr.bf16.mxu1 %v3451_v43  ;;  %8944 = vmatpush3.bf16.msra.mxu0 %v9291_v5  ;;  %v10253_v63 = vsel %vm2271_vm1, %v10124_v3, %v10234_v57  ;;  %v1859_v5 = vmul.f32 %v9926_v50, %v1523_v41  ;;  %v10266_v3 = vsel %vm878_vm0, %v2703_v12, %v2705_v10  ;;  %v2908_v50 = vrot.slane %v2906_v51, 4 }
 0x141   : > { %8882 = vmatmul.mubr.bf16.vlgmr.msra.gmra.mrb[56].mxu1 %v3457_v61  ;;  %v10244_v61 = vsel %vm878_vm0, %v10147_v8, %v1963_v42  ;;  %v10248_v14 = vsel %vm878_vm0, %v1963_v42, %v10220_v27  ;;  %2602 = vst [vmem:[#allocation3 + $0x30] sm:$0xff] %v10253_v63  ;;  %v3452_v8 = vrot.slane %v10253_v63, 4  ;;  %v2903_v32 = vor.u32 %v2902_v39, %v2899_v24 }
 0x142   : > { %4746 = vmatpush1.bf16.msra.mxu1 %v9281_v44  ;;  %2038 = vst [vmem:[#allocation2 + $0x60] sm:$0xff] %v10244_v61  ;;  %2039 = vst [vmem:[#allocation2 + $0x68] sm:$0xff] %v10248_v14  ;;  %v1901_v47 = vpack.c.bf16 %v1859_v5, %v1858_v40  ;;  %v3460_v46 = vrot.slane %v10266_v3, 4  ;;  %v2911_v11 = vrot.slane %v2909_v49, 5  ;;  %v1521_v22 = vmax.f32 %v10214_v59, 0.0  ;;  %v9284_v59 = vld [vmem:[%s12856_s8 + $0xd0] sm:$0xff]   ;;  %8945 = vmatprep.subr.bf16.mxu0 %v9299_v0 }
 0x143   : > { %4747 = vmatprep.subr.bf16.mxu1 %v12926_v29  ;;  %2798 = vst [vmem:[#allocation3 + $0x50] sm:$0xff] %v10266_v3  ;;  %v3453_v12 = vsel %vm878_vm0, %v3444_v30, %v3452_v8  ;;  %v2904_v35 = vsel %vm2860_vm2, %v10145_v58, %v2903_v32  ;;  %v1394_v60 = vadd.f32 %v8819_v38, %v9969_v13  ;;  %v2310_v15 = vrot.slane %v2897_v31, 3 }
 0x144   : > { %v10275_v56 = vpop.f32.mrb[32].mxu1  ;;  %v1386_v19 = vadd.f32 %v9969_v13, %v1385_v28  ;;  %3883 = vmatmul.mubr.bf16.gmra.mrb[12].mxu0 %v3453_v12  ;;  %3192 = vst [vmem:[#allocation3 + $0x58] sm:$0xff] %v2904_v35  ;;  %v3462_v44 = vrot.slane %v2904_v35, 4  ;;  %v10294_v4 = vrot.slane %v1901_v47, 4  ;;  %v3461_v30 = vsel %vm878_vm0, %v3454_v26, %v3460_v46 }
 0x145   : > { %v10289_v37 = vpop.f32.mrb[33].mxu1  ;;  %v2912_v58 = vor.u32 %v2911_v11, %v2908_v50  ;;  %3890 = vmatprep.mubr.bf16.mxu0 %v3461_v30  ;;  %v1857_v28 = vmul.f32 %v9922_v48, %v1521_v22  ;;  %v1526_v43 = vmax.f32 %v1394_v60, 0.0  ;;  %v2313_v40 = vrot.slane %v2900_v1, 4  ;;  %8946 = vmatpush3.bf16.msra.mxu0 %v9299_v0 }
 0x146   : > { %4748 = vmatpush1.bf16.msra.mxu1 %v9282_v33  ;;  %v10301_v38 = vpop.f32.mrb[34].mxu1  ;;  %v1524_v34 = vmax.f32 %v1386_v19, 0.0  ;;  %v3463_v25 = vsel %vm878_vm0, %v3456_v2, %v3462_v44  ;;  %v2915_v42 = vshrl.u32 %v10103_v6, 16  ;;  %v9285_v2 = vld [vmem:[%s12856_s8 + $0xd8] sm:$0xff]   ;;  %v2918_v39 = vshll.u32 %v10103_v6, 16 }
 0x147   : > { %4749 = vmatprep.subr.bf16.mxu1 %v12926_v29  ;;  %v10305_v9 = vpop.f32.mrb[35].mxu1  ;;  %v10311_v26 = vsel %vm2860_vm2, %v2903_v32, %v2912_v58  ;;  %8885 = vmatprep.mubr.bf16.mxu1 %v3463_v25  ;;  %v1900_v31 = vpack.c.bf16 %v1857_v28, %v10228_v45  ;;  %v1862_v41 = vmul.f32 %v9936_v55, %v1526_v43  ;;  %v2707_v33 = vrot.slane %v10071_v17, 4 }
 0x148   : > { %3193 = vst [vmem:[#allocation3 + $0x70] sm:$0xff] %v10311_v26  ;;  %v3468_v48 = vrot.slane %v10311_v26, 4  ;;  %v10319_v16 = vmul.f32 %v9932_v53, %v1524_v34  ;;  %v10324_v1 = vor.u32 %v2313_v40, %v2310_v15  ;;  %v2917_v24 = vrot.slane %v2915_v42, 4 }
 0x149   : > { %v1397_v45 = vadd.f32 %v10224_v21, %v9969_v13  ;;  %v1967_v55 = vrot.slane %v1900_v31, 4  ;;  %v2924_v5 = vshrl.u32 %v10106_v52, 16  ;;  %v2920_v50 = vrot.slane %v2918_v39, 5 }
 0x14a   : > { %4750 = vmatpush1.bf16.msra.mxu1 %v9284_v59  ;;  %v3469_v53 = vsel %vm878_vm0, %v3462_v44, %v3468_v48  ;;  %v10338_v32 = vsel %vm2271_vm1, %v10234_v57, %v10324_v1  ;;  %v2927_v21 = vshll.u32 %v10106_v52, 16  ;;  %v10360_v12 = vsel %vm878_vm0, %v2705_v10, %v2707_v33 }
 0x14b   : > { %4751 = vmatprep.subr.bf16.mxu1 %v12926_v29  ;;  %8886 = vmatmul.mubr.bf16.gmra.mrb[60].mxu1 %v3469_v53  ;;  %v1527_v47 = vmax.f32 %v1397_v45, 0.0  ;;  %v10347_v22 = vsel %vm878_vm0, %v10220_v27, %v1967_v55  ;;  %v10351_v0 = vsel %vm878_vm0, %v1967_v55, %v10294_v4  ;;  %2603 = vst [vmem:[#allocation3 + $0x48] sm:$0xff] %v10338_v32  ;;  %v3458_v57 = vrot.slane %v10338_v32, 4  ;;  %v9286_v27 = vld [vmem:[%s12856_s8 + $0xe0] sm:$0xff]   ;;  %v12928_v45 = vld [vmem:[#allocation9_spill] sm:$0xff]  ;;  %v12929_v55 = vld [vmem:[#allocation7_spill] sm:$0xff] }
 0x14c   : > { %v10343_v11 = vpop.f32.mrb[36].mxu1  ;;  %2040 = vst [vmem:[#allocation2 + $0x70] sm:$0xff] %v10347_v22  ;;  %2041 = vst [vmem:[#allocation2 + $0x78] sm:$0xff] %v10351_v0  ;;  %v2921_v60 = vor.u32 %v2920_v50, %v2917_v24  ;;  %v3466_v36 = vrot.slane %v10360_v12, 4  ;;  %v2926_v10 = vrot.slane %v2924_v5, 4  ;;  %v1389_v30 = vadd.f32 %v9969_v13, %v10232_v23 }
 0x14d   : > { %v10362_v35 = vpop.f32.mrb[37].mxu1  ;;  %v1863_v19 = vmul.f32 %v9934_v54, %v1527_v47  ;;  %2799 = vst [vmem:[#allocation3 + $0x68] sm:$0xff] %v10360_v12  ;;  %v3459_v44 = vsel %vm878_vm0, %v3452_v8, %v3458_v57  ;;  %v2929_v54 = vrot.slane %v2927_v21, 5  ;;  %v1410_v28 = vadd.f32 %v10275_v56, %v9969_v13  ;;  %v9290_v12 = vld [vmem:[%s12856_s8 + $0x100] sm:$0xff]  }
 0x14e   : > { %4752 = vmatpush1.bf16.msra.mxu1 %v9285_v2  ;;  %v10374_v59 = vpop.f32.mrb[38].mxu1  ;;  %3891 = vmatmul.mubr.bf16.gmra.mrb[16].mxu0 %v3459_v44  ;;  %v2922_v34 = vsel %vm2860_vm2, %v2912_v58, %v2921_v60  ;;  %v3467_v63 = vsel %vm878_vm0, %v3460_v46, %v3466_v36  ;;  %v1402_v8 = vadd.f32 %v9969_v13, %v10289_v37  ;;  %v1525_v56 = vmax.f32 %v1389_v30, 0.0  ;;  %v9287_v58 = vld [vmem:[%s12856_s8 + $0xe8] sm:$0xff]  }
 0x14f   : > { %4753 = vmatprep.subr.bf16.mxu1 %v12926_v29  ;;  %v10388_v43 = vpop.f32.mrb[39].mxu1  ;;  %v1903_v15 = vpack.c.bf16 %v1863_v19, %v1862_v41  ;;  %3194 = vst [vmem:[#allocation3 + $0x88] sm:$0xff] %v2922_v34  ;;  %v3474_v23 = vrot.slane %v2922_v34, 4  ;;  %3898 = vmatprep.mubr.bf16.mxu0 %v3467_v63  ;;  %v2930_v25 = vor.u32 %v2929_v54, %v2926_v10  ;;  %v1530_v26 = vmax.f32 %v1410_v28, 0.0  ;;  %v12927_v2 = vld [vmem:[#allocation5_spill] sm:$0xff]  ;;  %v9288_v54 = vld [vmem:[%s12856_s8 + $0xf0] sm:$0xff]  }
 0x150   : > { %v1528_v31 = vmax.f32 %v1402_v8, 0.0  ;;  %v2319_v3 = vrot.slane %v2906_v51, 3  ;;  %v2322_v46 = vrot.slane %v2909_v49, 4  ;;  %v1861_v24 = vmul.f32 %v12927_v2, %v1525_v56 }
 0x151   : > { %v10401_v40 = vrot.slane %v1903_v15, 4  ;;  %v3475_v37 = vsel %vm878_vm0, %v3468_v48, %v3474_v23  ;;  %v10410_v41 = vsel %vm2860_vm2, %v2921_v60, %v2930_v25  ;;  %v10414_v53 = vmul.f32 %v12928_v45, %v1530_v26 }
 0x152   : > { %4754 = vmatpush1.bf16.msra.mxu1 %v9286_v27  ;;  %8889 = vmatprep.mubr.bf16.mxu1 %v3475_v37  ;;  %3195 = vst [vmem:[#allocation3 + $0xa0] sm:$0xff] %v10410_v41  ;;  %v3480_v51 = vrot.slane %v10410_v41, 4  ;;  %v10419_v50 = vmul.f32 %v12929_v55, %v1528_v31  ;;  %v10421_v49 = vor.u32 %v2322_v46, %v2319_v3  ;;  %v2933_v48 = vshrl.u32 %v10112_v18, 16 }
 0x153   : > { %4755 = vmatprep.subr.bf16.mxu1 %v12926_v29  ;;  %v1902_v27 = vpack.c.bf16 %v1861_v24, %v10319_v16  ;;  %v2936_v60 = vshll.u32 %v10112_v18, 16  ;;  %v1413_v19 = vadd.f32 %v10301_v38, %v9969_v13  ;;  %v2709_v10 = vrot.slane %v10103_v6, 4  ;;  %v9300_v6 = vld [vmem:[%s12856_s8 + $0x168] sm:$0xff]  }
 0x154   : > { %v10424_v47 = vpop.f32.mrb[40].mxu1  ;;  %v3481_v30 = vsel %vm878_vm0, %v3474_v23, %v3480_v51  ;;  %v10442_v16 = vsel %vm2271_vm1, %v10324_v1, %v10421_v49  ;;  %v2935_v38 = vrot.slane %v2933_v48, 4  ;;  %v2942_v28 = vshrl.u32 %v10115_v7, 16  ;;  %8947 = vmatprep.subr.bf16.mxu0 %v9300_v6 }
 0x155   : > { %v10431_v44 = vpop.f32.mrb[41].mxu1  ;;  %8890 = vmatmul.mubr.bf16.gmra.mrb[64].mxu1 %v3481_v30  ;;  %v1971_v15 = vrot.slane %v1902_v27, 4  ;;  %2604 = vst [vmem:[#allocation3 + $0x60] sm:$0xff] %v10442_v16  ;;  %v3464_v63 = vrot.slane %v10442_v16, 4  ;;  %v2938_v8 = vrot.slane %v2936_v60, 5  ;;  %v1531_v1 = vmax.f32 %v1413_v19, 0.0  ;;  %8948 = vmatpush3.bf16.msra.mxu0 %v9300_v6 }
 0x156   : > { %4756 = vmatpush1.bf16.msra.mxu1 %v9287_v58  ;;  %v10447_v34 = vpop.f32.mrb[42].mxu1  ;;  %v10461_v56 = vsel %vm878_vm0, %v2707_v33, %v2709_v10  ;;  %v2944_v26 = vrot.slane %v2942_v28, 4  ;;  %v2945_v58 = vshll.u32 %v10115_v7, 16  ;;  %v1405_v31 = vadd.f32 %v9969_v13, %v10305_v9  ;;  %v9289_v9 = vld [vmem:[%s12856_s8 + $0xf8] sm:$0xff]  }
 0x157   : > { %4757 = vmatprep.subr.bf16.mxu1 %v12926_v29  ;;  %v10454_v23 = vpop.f32.mrb[43].mxu1  ;;  %v10470_v3 = vsel %vm878_vm0, %v10294_v4, %v1971_v15  ;;  %v10474_v46 = vsel %vm878_vm0, %v1971_v15, %v10401_v40  ;;  %v3465_v17 = vsel %vm878_vm0, %v3458_v57, %v3464_v63  ;;  %v2939_v33 = vor.u32 %v2938_v8, %v2935_v38  ;;  %v12930_v4 = vld [vmem:[#allocation8_spill] sm:$0xff] }
 0x158   : > { %2800 = vst [vmem:[#allocation3 + $0x80] sm:$0xff] %v10461_v56  ;;  %2042 = vst [vmem:[#allocation2 + $0x80] sm:$0xff] %v10470_v3  ;;  %3899 = vmatmul.mubr.bf16.gmra.mrb[20].mxu0 %v3465_v17  ;;  %v1867_v37 = vmul.f32 %v12930_v4, %v1531_v1  ;;  %v3472_v2 = vrot.slane %v10461_v56, 4  ;;  %v2947_v32 = vrot.slane %v2945_v58, 5  ;;  %v1529_v57 = vmax.f32 %v1405_v31, 0.0 }
 0x159   : > { %2043 = vst [vmem:[#allocation2 + $0x88] sm:$0xff] %v10474_v46  ;;  %v2940_v24 = vsel %vm2860_vm2, %v2930_v25, %v2939_v33  ;;  %v1426_v45 = vadd.f32 %v10343_v11, %v9969_v13  ;;  %v1418_v55 = vadd.f32 %v9969_v13, %v10362_v35  ;;  %v2328_v27 = vrot.slane %v2915_v42, 3  ;;  %v12931_v11 = vld [vmem:[#allocation6_spill] sm:$0xff] }
 0x15a   : > { %4758 = vmatpush1.bf16.msra.mxu1 %v9288_v54  ;;  %3196 = vst [vmem:[#allocation3 + $0xb8] sm:$0xff] %v2940_v24  ;;  %v3486_v19 = vrot.slane %v2940_v24, 4  ;;  %v1905_v54 = vpack.c.bf16 %v1867_v37, %v10414_v53  ;;  %v3473_v30 = vsel %vm878_vm0, %v3466_v36, %v3472_v2  ;;  %v10505_v25 = vor.u32 %v2947_v32, %v2944_v26  ;;  %v10547_v24 = vld [vmem:[%s12855_s7] ss:$0 sm:$0xff] }
 0x15b   : > { %4759 = vmatprep.subr.bf16.mxu1 %v12926_v29  ;;  %3906 = vmatprep.mubr.bf16.mxu0 %v3473_v30  ;;  %v1865_v13 = vmul.f32 %v12931_v11, %v1529_v57  ;;  %v1534_v35 = vmax.f32 %v1426_v45, 0.0  ;;  %v1532_v15 = vmax.f32 %v1418_v55, 0.0  ;;  %v2331_v42 = vrot.slane %v2918_v39, 4  ;;  %v9292_v30 = vld [vmem:[%s12856_s8 + $0x108] sm:$0xff]  }
 0x15c   : > { %v10507_v38 = vpop.f32.mrb[44].mxu1  ;;  %v3487_v36 = vsel %vm878_vm0, %v3480_v51, %v3486_v19  ;;  %v10520_v53 = vrot.slane %v1905_v54, 4  ;;  %v10524_v1 = vsel %vm2860_vm2, %v2939_v33, %v10505_v25  ;;  %v2951_v26 = vshrl.u32 %v10160_v20, 16  ;;  %v12932_v51 = vld [vmem:[#allocation13_spill] sm:$0xff] }
 0x15d   : > { %v10512_v8 = vpop.f32.mrb[45].mxu1  ;;  %8893 = vmatprep.mubr.bf16.mxu1 %v3487_v36  ;;  %3197 = vst [vmem:[#allocation3 + $0xd0] sm:$0xff] %v10524_v1  ;;  %v3492_v31 = vrot.slane %v10524_v1, 4  ;;  %v1904_v41 = vpack.c.bf16 %v1865_v13, %v10419_v50  ;;  %v1870_v17 = vmul.f32 %v12932_v51, %v1534_v35  ;;  %v10539_v37 = vor.u32 %v2331_v42, %v2328_v27 }
 0x15e   : > { %4760 = vmatpush1.bf16.msra.mxu1 %v9289_v9  ;;  %v10527_v39 = vpop.f32.mrb[46].mxu1  ;;  %v12933_v9 = vld [vmem:[#allocation11_spill] sm:$0xff]  ;;  %v2953_v32 = vrot.slane %v2951_v26, 4  ;;  %v2954_v57 = vshll.u32 %v10160_v20, 16  ;;  %v1429_v50 = vadd.f32 %v10547_v24, %v10374_v59  ;;  %v2711_v27 = vrot.slane %v10106_v52, 4 }
 0x15f   : > { %4761 = vmatprep.subr.bf16.mxu1 %v12926_v29  ;;  %v10535_v4 = vmul.f32 %v12933_v9, %v1532_v15  ;;  %v10537_v33 = vpop.f32.mrb[47].mxu1  ;;  %v3493_v45 = vsel %vm878_vm0, %v3486_v19, %v3492_v31  ;;  %v1975_v55 = vrot.slane %v1904_v41, 4  ;;  %v2960_v54 = vshrl.u32 %v10164_v62, 16 }
 0x160   : > { %8894 = vmatmul.mubr.bf16.gmra.mrb[68].mxu1 %v3493_v45  ;;  %v10562_v11 = vsel %vm2271_vm1, %v10421_v49, %v10539_v37  ;;  %v2956_v59 = vrot.slane %v2954_v57, 5  ;;  %v1535_v19 = vmax.f32 %v1429_v50, 0.0  ;;  %v12866_v13 = vshll.u32 %v10164_v62, 16 }
 0x161   : > { %v10570_v35 = vsel %vm878_vm0, %v10401_v40, %v1975_v55  ;;  %v10574_v15 = vsel %vm878_vm0, %v1975_v55, %v10520_v53  ;;  %2605 = vst [vmem:[#allocation3 + $0x78] sm:$0xff] %v10562_v11  ;;  %v3470_v49 = vrot.slane %v10562_v11, 4  ;;  %v10583_v42 = vsel %vm878_vm0, %v2709_v10, %v2711_v27 }
 0x162   : > { %4762 = vmatpush1.bf16.msra.mxu1 %v9290_v12  ;;  %2044 = vst [vmem:[#allocation2 + $0x90] sm:$0xff] %v10570_v35  ;;  %2045 = vst [vmem:[#allocation2 + $0x98] sm:$0xff] %v10574_v15  ;;  %v2957_v40 = vor.u32 %v2956_v59, %v2953_v32  ;;  %v12934_v12 = vld [vmem:[#allocation12_spill] sm:$0xff]  ;;  %v3478_v41 = vrot.slane %v10583_v42, 4  ;;  %v2962_v51 = vrot.slane %v2960_v54, 4  ;;  %v2965_v32 = vrot.slane %v12866_v13, 5 }
 0x163   : > { %4763 = vmatprep.subr.bf16.mxu1 %v12926_v29  ;;  %v1871_v36 = vmul.f32 %v12934_v12, %v1535_v19  ;;  %2801 = vst [vmem:[#allocation3 + $0x98] sm:$0xff] %v10583_v42  ;;  %v3471_v10 = vsel %vm878_vm0, %v3464_v63, %v3470_v49  ;;  %v1421_v50 = vadd.f32 %v10547_v24, %v10388_v43  ;;  %v9293_v59 = vld [vmem:[%s12856_s8 + $0x110] sm:$0xff]  }
 0x164   : > { %v10592_v9 = vpop.f32.mrb[48].mxu1  ;;  %v1442_v45 = vadd.f32 %v10547_v24, %v10424_v47  ;;  %3907 = vmatmul.mubr.bf16.gmra.mrb[24].mxu0 %v3471_v10  ;;  %v2958_v16 = vsel %vm2860_vm2, %v10505_v25, %v2957_v40  ;;  %v3479_v43 = vsel %vm878_vm0, %v3472_v2, %v3478_v41  ;;  %v1434_v47 = vadd.f32 %v10547_v24, %v10431_v44 }
 0x165   : > { %v10608_v55 = vpop.f32.mrb[49].mxu1  ;;  %v1907_v63 = vpack.c.bf16 %v1871_v36, %v1870_v17  ;;  %3198 = vst [vmem:[#allocation3 + $0xe8] sm:$0xff] %v2958_v16  ;;  %3914 = vmatprep.mubr.bf16.mxu0 %v3479_v43  ;;  %v10624_v12 = vor.u32 %v2965_v32, %v2962_v51  ;;  %v1533_v10 = vmax.f32 %v1421_v50, 0.0  ;;  %v2337_v2 = vrot.slane %v2924_v5, 3  ;;  %v10635_v36 = vld [vmem:[#allocation2 + $0x40] sm:$0xff]  ;;  %v12935_v50 = vld [vmem:[#allocation10_spill] sm:$0xff] }
 0x166   : > { %4764 = vmatpush1.bf16.msra.mxu1 %v9292_v30  ;;  %v10622_v19 = vpop.f32.mrb[50].mxu1  ;;  %v3498_v30 = vrot.slane %v2958_v16, 4  ;;  %v1538_v13 = vmax.f32 %v1442_v45, 0.0  ;;  %v1536_v56 = vmax.f32 %v1434_v47, 0.0  ;;  %v2340_v44 = vrot.slane %v2927_v21, 4  ;;  %v12936_v16 = vld [vmem:[#allocation17_spill] sm:$0xff] }
 0x167   : > { %v10626_v25 = vpop.f32.mrb[51].mxu1  ;;  %4765 = vmatprep.subr.bf16.mxu1 %v12926_v29  ;;  %v10629_v17 = vrot.slane %v1907_v63, 4  ;;  %v10642_v32 = vsel %vm2860_vm2, %v2957_v40, %v10624_v12  ;;  %v1869_v45 = vmul.f32 %v12935_v50, %v1533_v10  ;;  %v12937_v21 = vld [vmem:[#allocation15_spill] sm:$0xff]  ;;  %v1445_v47 = vadd.f32 %v10547_v24, %v10447_v34 }
 0x168   : > { %v3499_v51 = vsel %vm878_vm0, %v3492_v31, %v3498_v30  ;;  %v10646_v63 = vmul.f32 %v12936_v16, %v1538_v13  ;;  %3199 = vst [vmem:[#allocation3 + $0x100] sm:$0xff] %v10642_v32  ;;  %v3504_v5 = vrot.slane %v10642_v32, 4  ;;  %v10651_v43 = vmul.f32 %v12937_v21, %v1536_v56  ;;  %v9294_v13 = vld [vmem:[%s12856_s8 + $0x118] sm:$0xff]  }
 0x169   : > { %8897 = vmatprep.mubr.bf16.mxu1 %v3499_v51  ;;  %v10653_v1 = vor.u32 %v2340_v44, %v2337_v2  ;;  %v12870_v31 = vshrl.u32 %v10244_v61, 16  ;;  %v1906_v40 = vpack.c.bf16 %v1869_v45, %v10535_v4  ;;  %v2713_v10 = vrot.slane %v10635_v36, 4  ;;  %v9298_v36 = vld [vmem:[%s12856_s8 + $0x138] sm:$0xff]  }
 0x16a   : > { %4766 = vmatpush1.bf16.msra.mxu1 %v9293_v59  ;;  %v12868_v59 = vshll.u32 %v10244_v61, 16  ;;  %v3505_v56 = vsel %vm878_vm0, %v3498_v30, %v3504_v5  ;;  %v12867_v4 = vshrl.u32 %v10248_v14, 16  ;;  %v1539_v30 = vmax.f32 %v1445_v47, 0.0  ;;  %v9295_v47 = vld [vmem:[%s12856_s8 + $0x120] sm:$0xff]  }
 0x16b   : > { %4767 = vmatprep.subr.bf16.mxu1 %v12926_v29  ;;  %v10669_v2 = vsel %vm2271_vm1, %v10539_v37, %v10653_v1  ;;  %v2971_v44 = vrot.slane %v12870_v31, 4  ;;  %8898 = vmatmul.mubr.bf16.gmra.mrb[72].mxu1 %v3505_v56  ;;  %v1979_v32 = vrot.slane %v1906_v40, 4  ;;  %v10687_v37 = vsel %vm878_vm0, %v2711_v27, %v2713_v10 }
 0x16c   : > { %v10674_v51 = vpop.f32.mrb[52].mxu1  ;;  %2606 = vst [vmem:[#allocation3 + $0x90] sm:$0xff] %v10669_v2  ;;  %v3476_v34 = vrot.slane %v10669_v2, 4  ;;  %v2974_v6 = vrot.slane %v12868_v59, 5  ;;  %v2980_v45 = vrot.slane %v12867_v4, 4  ;;  %v12869_v16 = vshll.u32 %v10248_v14, 16 }
 0x16d   : > { %v10680_v50 = vpop.f32.mrb[53].mxu1  ;;  %v1437_v21 = vadd.f32 %v10547_v24, %v10454_v23  ;;  %v10701_v52 = vsel %vm878_vm0, %v10520_v53, %v1979_v32  ;;  %v10705_v27 = vsel %vm878_vm0, %v1979_v32, %v10629_v17  ;;  %2802 = vst [vmem:[#allocation3 + $0xb0] sm:$0xff] %v10687_v37  ;;  %v12938_v53 = vld [vmem:[#allocation16_spill] sm:$0xff]  ;;  %v3484_v4 = vrot.slane %v10687_v37, 4 }
 0x16e   : > { %v10694_v40 = vpop.f32.mrb[54].mxu1  ;;  %4768 = vmatpush1.bf16.msra.mxu1 %v9294_v13  ;;  %v3477_v23 = vsel %vm878_vm0, %v3470_v49, %v3476_v34  ;;  %v2975_v56 = vor.u32 %v2974_v6, %v2971_v44  ;;  %2046 = vst [vmem:[#allocation2 + $0xa0] sm:$0xff] %v10701_v52  ;;  %2047 = vst [vmem:[#allocation2 + $0xa8] sm:$0xff] %v10705_v27  ;;  %v1875_v32 = vmul.f32 %v12938_v53, %v1539_v30 }
 0x16f   : > { %v10713_v13 = vpop.f32.mrb[55].mxu1  ;;  %4769 = vmatprep.subr.bf16.mxu1 %v12926_v29  ;;  %3915 = vmatmul.mubr.bf16.gmra.mrb[28].mxu0 %v3477_v23  ;;  %v2983_v11 = vrot.slane %v12869_v16, 5  ;;  %v1537_v49 = vmax.f32 %v1437_v21, 0.0  ;;  %v1458_v6 = vadd.f32 %v10547_v24, %v10507_v38  ;;  %v1450_v59 = vadd.f32 %v10547_v24, %v10512_v8  ;;  %v9296_v38 = vld [vmem:[%s12856_s8 + $0x128] sm:$0xff]   ;;  %v12939_v8 = vld [vmem:[#allocation14_spill] sm:$0xff] }
 0x170   : > { %v2976_v44 = vsel %vm2860_vm2, %v10624_v12, %v2975_v56  ;;  %v2346_v23 = vrot.slane %v2933_v48, 3  ;;  %v1909_v53 = vpack.c.bf16 %v1875_v32, %v10646_v63  ;;  %v3485_v21 = vsel %vm878_vm0, %v3478_v41, %v3484_v4 }
 0x171   : > { %3200 = vst [vmem:[#allocation3 + $0x118] sm:$0xff] %v2976_v44  ;;  %v3510_v30 = vrot.slane %v2976_v44, 4  ;;  %v2984_v12 = vor.u32 %v2983_v11, %v2980_v45  ;;  %3922 = vmatprep.mubr.bf16.mxu0 %v3485_v21  ;;  %v1873_v16 = vmul.f32 %v12939_v8, %v1537_v49  ;;  %v1542_v48 = vmax.f32 %v1458_v6, 0.0  ;;  %v12941_v49 = vld [vmem:[#allocation19_spill] sm:$0xff] }
 0x172   : > { %4770 = vmatpush1.bf16.msra.mxu1 %v9295_v47  ;;  %v1540_v31 = vmax.f32 %v1450_v59, 0.0  ;;  %v2349_v63 = vrot.slane %v2936_v60, 4  ;;  %v10744_v32 = vrot.slane %v1909_v53, 4  ;;  %v2987_v45 = vshrl.u32 %v10347_v22, 16  ;;  %v10750_v47 = vld [vmem:[#allocation2 + $0x48] sm:$0xff] }
 0x173   : > { %4771 = vmatprep.subr.bf16.mxu1 %v12926_v29  ;;  %v3511_v42 = vsel %vm878_vm0, %v3504_v5, %v3510_v30  ;;  %v10747_v41 = vsel %vm2860_vm2, %v2975_v56, %v2984_v12  ;;  %v1908_v18 = vpack.c.bf16 %v1873_v16, %v10651_v43  ;;  %v12940_v60 = vld [vmem:[#allocation21_spill] sm:$0xff]  ;;  %v2990_v6 = vshll.u32 %v10347_v22, 16  ;;  %v9297_v43 = vld [vmem:[%s12856_s8 + $0x130] sm:$0xff]  }
 0x174   : > { %8901 = vmatprep.mubr.bf16.mxu1 %v3511_v42  ;;  %3201 = vst [vmem:[#allocation3 + $0x130] sm:$0xff] %v10747_v41  ;;  %v3516_v59 = vrot.slane %v10747_v41, 4  ;;  %v1878_v11 = vmul.f32 %v12940_v60, %v1542_v48  ;;  %v10757_v5 = vmul.f32 %v12941_v49, %v1540_v31  ;;  %v10759_v44 = vor.u32 %v2349_v63, %v2346_v23  ;;  %v12942_v41 = vld [vmem:[#allocation20_spill] sm:$0xff] }
 0x175   : > { %v2989_v56 = vrot.slane %v2987_v45, 4  ;;  %v1461_v53 = vadd.f32 %v10547_v24, %v10527_v39  ;;  %v1983_v21 = vrot.slane %v1908_v18, 4  ;;  %v2715_v31 = vrot.slane %v10750_v47, 4 }
 0x176   : > { %4772 = vmatpush1.bf16.msra.mxu1 %v9296_v38  ;;  %v3517_v16 = vsel %vm878_vm0, %v3510_v30, %v3516_v59  ;;  %v2996_v23 = vshrl.u32 %v10351_v0, 16  ;;  %v10776_v8 = vsel %vm2271_vm1, %v10653_v1, %v10759_v44  ;;  %v2992_v39 = vrot.slane %v2990_v6, 5 }
 0x177   : > { %4773 = vmatprep.subr.bf16.mxu1 %v12926_v29  ;;  %8902 = vmatmul.mubr.bf16.gmra.mrb[76].mxu1 %v3517_v16  ;;  %v1543_v38 = vmax.f32 %v1461_v53, 0.0  ;;  %v2999_v48 = vshll.u32 %v10351_v0, 16  ;;  %v10783_v30 = vsel %vm878_vm0, %v10629_v17, %v1983_v21  ;;  %v10787_v63 = vsel %vm878_vm0, %v1983_v21, %v10744_v32  ;;  %2607 = vst [vmem:[#allocation3 + $0xa8] sm:$0xff] %v10776_v8 }
 0x178   : > { %v3482_v42 = vrot.slane %v10776_v8, 4  ;;  %v10796_v1 = vsel %vm878_vm0, %v2713_v10, %v2715_v31  ;;  %2048 = vst [vmem:[#allocation2 + $0xb0] sm:$0xff] %v10783_v30  ;;  %2049 = vst [vmem:[#allocation2 + $0xb8] sm:$0xff] %v10787_v63  ;;  %v2993_v17 = vor.u32 %v2992_v39, %v2989_v56  ;;  %v2998_v49 = vrot.slane %v2996_v23, 4 }
 0x179   : > { %v1879_v18 = vmul.f32 %v12942_v41, %v1543_v38  ;;  %2803 = vst [vmem:[#allocation3 + $0xc8] sm:$0xff] %v10796_v1  ;;  %v3490_v60 = vrot.slane %v10796_v1, 4  ;;  %v3001_v56 = vrot.slane %v2999_v48, 5  ;;  %v1453_v53 = vadd.f32 %v10547_v24, %v10537_v33  ;;  %v9301_v33 = vld [vmem:[%s12856_s8 + $0x170] sm:$0xff]   ;;  %v10917_v1 = vld [vmem:[#allocation2 + $0x58] sm:$0xff] }
 0x17a   : > { %4774 = vmatpush1.bf16.msra.mxu1 %v9297_v43  ;;  %v3483_v10 = vsel %vm878_vm0, %v3476_v34, %v3482_v42  ;;  %v1474_v16 = vadd.f32 %v10547_v24, %v10592_v9  ;;  %v2994_v43 = vsel %vm2860_vm2, %v2984_v12, %v2993_v17  ;;  %v1466_v34 = vadd.f32 %v10547_v24, %v10608_v55  ;;  %v10837_v55 = vld [vmem:[#allocation2 + $0x50] sm:$0xff] }
 0x17b   : > { %4775 = vmatprep.subr.bf16.mxu1 %v12926_v29  ;;  %3923 = vmatmul.mubr.bf16.gmra.mrb[32].mxu0 %v3483_v10  ;;  %v1911_v21 = vpack.c.bf16 %v1879_v18, %v1878_v11  ;;  %v3491_v2 = vsel %vm878_vm0, %v3484_v4, %v3490_v60  ;;  %3202 = vst [vmem:[#allocation3 + $0x148] sm:$0xff] %v2994_v43  ;;  %v3522_v9 = vrot.slane %v2994_v43, 4  ;;  %v1541_v38 = vmax.f32 %v1453_v53, 0.0  ;;  %v12944_v53 = vld [vmem:[#allocation24_spill] sm:$0xff] }
 0x17c   : > { %3930 = vmatprep.mubr.bf16.mxu0 %v3491_v2  ;;  %v3002_v39 = vor.u32 %v3001_v56, %v2998_v49  ;;  %v1546_v12 = vmax.f32 %v1474_v16, 0.0  ;;  %v1544_v41 = vmax.f32 %v1466_v34, 0.0  ;;  %v2355_v37 = vrot.slane %v2942_v28, 3  ;;  %8949 = vmatprep.subr.bf16.mxu0 %v9301_v33  ;;  %v12943_v49 = vld [vmem:[#allocation18_spill] sm:$0xff] }
 0x17d   : > { %v10831_v11 = vrot.slane %v1911_v21, 4  ;;  %v2358_v4 = vrot.slane %v2945_v58, 4  ;;  %v3523_v18 = vsel %vm878_vm0, %v3516_v59, %v3522_v9  ;;  %v1877_v56 = vmul.f32 %v12943_v49, %v1541_v38  ;;  %8950 = vmatpush3.bf16.msra.mxu0 %v9301_v33  ;;  %v12945_v28 = vld [vmem:[#allocation22_spill] sm:$0xff] }
 0x17e   : > { %4776 = vmatpush1.bf16.msra.mxu1 %v9298_v36  ;;  %v3003_v10 = vsel %vm2860_vm2, %v2993_v17, %v3002_v39  ;;  %v1882_v16 = vmul.f32 %v12944_v53, %v1546_v12  ;;  %8905 = vmatprep.mubr.bf16.mxu1 %v3523_v18  ;;  %v10844_v21 = vmul.f32 %v12945_v28, %v1544_v41  ;;  %v3005_v58 = vshrl.u32 %v10470_v3, 16 }
 0x17f   : > { %3203 = vst [vmem:[#allocation3 + $0x160] sm:$0xff] %v3003_v10  ;;  %v3528_v43 = vrot.slane %v3003_v10, 4  ;;  %v10846_v7 = vor.u32 %v2358_v4, %v2355_v37  ;;  %v1910_v36 = vpack.c.bf16 %v1877_v56, %v10757_v5  ;;  %v3008_v59 = vshll.u32 %v10470_v3, 16 }
 0x180   : > { %v1477_v17 = vadd.f32 %v10547_v24, %v10622_v19  ;;  %v2717_v2 = vrot.slane %v10837_v55, 4  ;;  %v3007_v38 = vrot.slane %v3005_v58, 4  ;;  %v3014_v12 = vshrl.u32 %v10474_v46, 16 }
 0x181   : > { %v3529_v34 = vsel %vm878_vm0, %v3522_v9, %v3528_v43  ;;  %v10858_v33 = vsel %vm2271_vm1, %v10759_v44, %v10846_v7  ;;  %v1987_v5 = vrot.slane %v1910_v36, 4  ;;  %v3010_v41 = vrot.slane %v3008_v59, 5 }
 0x182   : > { %8906 = vmatmul.mubr.bf16.gmra.mrb[80].mxu1 %v3529_v34  ;;  %2608 = vst [vmem:[#allocation3 + $0xc0] sm:$0xff] %v10858_v33  ;;  %v3488_v19 = vrot.slane %v10858_v33, 4  ;;  %v1547_v9 = vmax.f32 %v1477_v17, 0.0  ;;  %v10872_v44 = vsel %vm878_vm0, %v2715_v31, %v2717_v2  ;;  %v3016_v37 = vrot.slane %v3014_v12, 4 }
 0x183   : > { %v3017_v4 = vshll.u32 %v10474_v46, 16  ;;  %v1469_v18 = vadd.f32 %v10547_v24, %v10626_v25  ;;  %v10881_v10 = vsel %vm878_vm0, %v10744_v32, %v1987_v5  ;;  %v10885_v49 = vsel %vm878_vm0, %v1987_v5, %v10831_v11  ;;  %2804 = vst [vmem:[#allocation3 + $0xe0] sm:$0xff] %v10872_v44  ;;  %v12946_v25 = vld [vmem:[#allocation25_spill] sm:$0xff] }
 0x184   : > { %v3489_v47 = vsel %vm878_vm0, %v3482_v42, %v3488_v19  ;;  %v3011_v31 = vor.u32 %v3010_v41, %v3007_v38  ;;  %2050 = vst [vmem:[#allocation2 + $0xc0] sm:$0xff] %v10881_v10  ;;  %2051 = vst [vmem:[#allocation2 + $0xc8] sm:$0xff] %v10885_v49  ;;  %v1883_v32 = vmul.f32 %v12946_v25, %v1547_v9  ;;  %v3496_v56 = vrot.slane %v10872_v44, 4  ;;  %v12947_v9 = vld [vmem:[#allocation23_spill] sm:$0xff]  ;;  %v12948_v25 = vld [vmem:[#allocation28_spill] sm:$0xff] }
 0x185   : > { %3931 = vmatmul.mubr.bf16.gmra.mrb[36].mxu0 %v3489_v47  ;;  %v3019_v53 = vrot.slane %v3017_v4, 5  ;;  %v1545_v28 = vmax.f32 %v1469_v18, 0.0  ;;  %v1490_v42 = vadd.f32 %v10547_v24, %v10674_v51  ;;  %v1482_v36 = vadd.f32 %v10547_v24, %v10680_v50 }
 0x186   : > { %v3012_v8 = vsel %vm2860_vm2, %v3002_v39, %v3011_v31  ;;  %v2364_v17 = vrot.slane %v2951_v26, 3  ;;  %v1913_v38 = vpack.c.bf16 %v1883_v32, %v1882_v16  ;;  %v3497_v5 = vsel %vm878_vm0, %v3490_v60, %v3496_v56 }
 0x187   : > { %3204 = vst [vmem:[#allocation3 + $0x178] sm:$0xff] %v3012_v8  ;;  %v3534_v34 = vrot.slane %v3012_v8, 4  ;;  %v3020_v41 = vor.u32 %v3019_v53, %v3016_v37  ;;  %3938 = vmatprep.mubr.bf16.mxu0 %v3497_v5  ;;  %v1881_v39 = vmul.f32 %v12947_v9, %v1545_v28  ;;  %v1550_v44 = vmax.f32 %v1490_v42, 0.0  ;;  %v12949_v53 = vld [vmem:[#allocation26_spill] sm:$0xff] }
 0x188   : > { %v1548_v18 = vmax.f32 %v1482_v36, 0.0  ;;  %v2367_v51 = vrot.slane %v2954_v57, 4  ;;  %v10913_v47 = vrot.slane %v1913_v38, 4  ;;  %v3023_v16 = vshrl.u32 %v10570_v35, 16 }
 0x189   : > { %v3535_v50 = vsel %vm878_vm0, %v3528_v43, %v3534_v34  ;;  %v3021_v26 = vsel %vm2860_vm2, %v3011_v31, %v3020_v41  ;;  %v1912_v37 = vpack.c.bf16 %v1881_v39, %v10844_v21  ;;  %v1886_v32 = vmul.f32 %v12948_v25, %v1550_v44 }
 0x18a   : > { %8909 = vmatprep.mubr.bf16.mxu1 %v3535_v50  ;;  %3205 = vst [vmem:[#allocation3 + $0x190] sm:$0xff] %v3021_v26  ;;  %v3540_v60 = vrot.slane %v3021_v26, 4  ;;  %v10922_v20 = vmul.f32 %v12949_v53, %v1548_v18  ;;  %v2368_v57 = vor.u32 %v2367_v51, %v2364_v17  ;;  %v3025_v43 = vrot.slane %v3023_v16, 4  ;;  %v12950_v18 = vld [vmem:[#allocation29_spill] sm:$0xff] }
 0x18b   : > { %v3026_v31 = vshll.u32 %v10570_v35, 16  ;;  %v1493_v28 = vadd.f32 %v10547_v24, %v10694_v40  ;;  %v1991_v42 = vrot.slane %v1912_v37, 4  ;;  %v2719_v36 = vrot.slane %v10917_v1, 4  ;;  %v10966_v37 = vld [vmem:[#allocation2 + $0x60] sm:$0xff] }
 0x18c   : > { %v3541_v8 = vsel %vm878_vm0, %v3534_v34, %v3540_v60  ;;  %v3032_v21 = vshrl.u32 %v10574_v15, 16  ;;  %v2369_v38 = vsel %vm2271_vm1, %v10846_v7, %v2368_v57  ;;  %v3035_v9 = vshll.u32 %v10574_v15, 16 }
 0x18d   : > { %8910 = vmatmul.mubr.bf16.gmra.mrb[84].mxu1 %v3541_v8  ;;  %v3028_v17 = vrot.slane %v3026_v31, 5  ;;  %v1551_v5 = vmax.f32 %v1493_v28, 0.0  ;;  %v10939_v40 = vsel %vm878_vm0, %v10831_v11, %v1991_v42  ;;  %v10943_v34 = vsel %vm878_vm0, %v1991_v42, %v10913_v47  ;;  %2609 = vst [vmem:[#allocation3 + $0xd8] sm:$0xff] %v2369_v38 }
 0x18e   : > { %v3494_v39 = vrot.slane %v2369_v38, 4  ;;  %v10948_v7 = vsel %vm878_vm0, %v2717_v2, %v2719_v36  ;;  %2052 = vst [vmem:[#allocation2 + $0xd0] sm:$0xff] %v10939_v40  ;;  %2053 = vst [vmem:[#allocation2 + $0xd8] sm:$0xff] %v10943_v34  ;;  %v3034_v50 = vrot.slane %v3032_v21, 4  ;;  %v3037_v2 = vrot.slane %v3035_v9, 5 }
 0x18f   : > { %v3029_v44 = vor.u32 %v3028_v17, %v3025_v43  ;;  %v1887_v51 = vmul.f32 %v12950_v18, %v1551_v5  ;;  %2805 = vst [vmem:[#allocation3 + $0xf8] sm:$0xff] %v10948_v7  ;;  %v3502_v11 = vrot.slane %v10948_v7, 4  ;;  %v1485_v26 = vadd.f32 %v10547_v24, %v10713_v13 }
 0x190   : > { %v3495_v55 = vsel %vm878_vm0, %v3488_v19, %v3494_v39  ;;  %v2373_v1 = vrot.slane %v2960_v54, 3  ;;  %v12951_v33 = vshll.u32 %v10164_v62, 16  ;;  %v3038_v8 = vor.u32 %v3037_v2, %v3034_v50 }
 0x191   : > { %3939 = vmatmul.mubr.bf16.gmra.mrb[40].mxu0 %v3495_v55  ;;  %v3030_v25 = vsel %vm2860_vm2, %v3020_v41, %v3029_v44  ;;  %v1915_v53 = vpack.c.bf16 %v1887_v51, %v1886_v32  ;;  %v3503_v43 = vsel %vm878_vm0, %v3496_v56, %v3502_v11  ;;  %v1549_v42 = vmax.f32 %v1485_v26, 0.0  ;;  %v12952_v32 = vld [vmem:[#allocation27_spill] sm:$0xff] }
 0x192   : > { %v2376_v19 = vrot.slane %v12951_v33, 4  ;;  %3206 = vst [vmem:[#allocation3 + $0x1a8] sm:$0xff] %v3030_v25  ;;  %v3546_v28 = vrot.slane %v3030_v25, 4  ;;  %3946 = vmatprep.mubr.bf16.mxu0 %v3503_v43  ;;  %v3041_v24 = vshrl.u32 %v10701_v52, 16  ;;  %v3044_v38 = vshll.u32 %v10701_v52, 16 }
 0x193   : > { %v1997_v13 = vrot.slane %v1915_v53, 4  ;;  %v2721_v17 = vrot.slane %v10966_v37, 4  ;;  %v3039_v56 = vsel %vm2860_vm2, %v3029_v44, %v3038_v8  ;;  %v1885_v62 = vmul.f32 %v12952_v32, %v1549_v42 }
 0x194   : > { %v2377_v54 = vor.u32 %v2376_v19, %v2373_v1  ;;  %v3547_v41 = vsel %vm878_vm0, %v3540_v60, %v3546_v28  ;;  %v3043_v5 = vrot.slane %v3041_v24, 4  ;;  %3207 = vst [vmem:[#allocation3 + $0x1c0] sm:$0xff] %v3039_v56  ;;  %v3552_v18 = vrot.slane %v3039_v56, 4  ;;  %v11002_v19 = vld [vmem:[#allocation2 + $0x68] sm:$0xff] }
 0x195   : > { %8913 = vmatprep.mubr.bf16.mxu1 %v3547_v41  ;;  %2056 = vst [vmem:[#allocation2 + $0xf0] sm:$0xf] %v1997_v13  ;;  %v3046_v50 = vrot.slane %v3044_v38, 5  ;;  %v10986_v55 = vsel %vm878_vm0, %v2719_v36, %v2721_v17  ;;  %v1914_v60 = vpack.c.bf16 %v1885_v62, %v10922_v20  ;;  %v3050_v26 = vshrl.u32 %v10705_v27, 16 }
 0x196   : > { %v10981_v51 = vsel %vm2271_vm1, %v2368_v57, %v2377_v54  ;;  %2806 = vst [vmem:[#allocation3 + $0x110] sm:$0xff] %v10986_v55  ;;  %v3508_v2 = vrot.slane %v10986_v55, 4  ;;  %v3553_v57 = vsel %vm878_vm0, %v3546_v28, %v3552_v18  ;;  %v12878_v37 = vshll.u32 %v10705_v27, 16 }
 0x197   : > { %2610 = vst [vmem:[#allocation3 + $0xf0] sm:$0xff] %v10981_v51  ;;  %v3500_v44 = vrot.slane %v10981_v51, 4  ;;  %v3047_v1 = vor.u32 %v3046_v50, %v3043_v5  ;;  %v12953_v36 = vshrl.u32 %v10244_v61, 16  ;;  %8914 = vmatmul.mubr.bf16.gmra.mrb[88].mxu1 %v3553_v57  ;;  %v1995_v20 = vrot.slane %v1914_v60, 4 }
 0x198   : > { %v3509_v43 = vsel %vm878_vm0, %v3502_v11, %v3508_v2  ;;  %v3052_v33 = vrot.slane %v3050_v26, 4  ;;  %v3055_v42 = vrot.slane %v12878_v37, 5  ;;  %v12954_v41 = vshll.u32 %v10244_v61, 16 }
 0x199   : > { %v2382_v25 = vrot.slane %v12953_v36, 3  ;;  %v3501_v53 = vsel %vm878_vm0, %v3494_v39, %v3500_v44  ;;  %v3048_v28 = vsel %vm2860_vm2, %v3038_v8, %v3047_v1  ;;  %v12874_v32 = vshrl.u32 %v10783_v30, 16 }
 0x19a   : > { %3947 = vmatmul.mubr.bf16.gmra.mrb[44].mxu0 %v3501_v53  ;;  %v2385_v56 = vrot.slane %v12954_v41, 4  ;;  %v11012_v39 = vsel %vm878_vm0, %v10913_v47, %v1995_v20  ;;  %v11015_v11 = vsel %vm878_vm0, %v1995_v20, %v1997_v13  ;;  %3208 = vst [vmem:[#allocation3 + $0x1d8] sm:$0xff] %v3048_v28  ;;  %v3558_v62 = vrot.slane %v3048_v28, 4  ;;  %v9302_v13 = vld [vmem:[%s12856_s8 + $0x178] sm:$0xff]  }
 0x19b   : > { %3954 = vmatprep.mubr.bf16.mxu0 %v3509_v43  ;;  %v12873_v8 = vshll.u32 %v10783_v30, 16  ;;  %2054 = vst [vmem:[#allocation2 + $0xe0] sm:$0xff] %v11012_v39  ;;  %2055 = vst [vmem:[#allocation2 + $0xe8] sm:$0xff] %v11015_v11  ;;  %v3056_v61 = vor.u32 %v3055_v42, %v3052_v33  ;;  %v3061_v50 = vrot.slane %v12874_v32, 4  ;;  %v2723_v47 = vrot.slane %v11002_v19, 4  ;;  %8951 = vmatprep.subr.bf16.mxu0 %v9302_v13 }
 0x19c   : > { %v2386_v5 = vor.u32 %v2385_v56, %v2382_v25  ;;  %v3559_v60 = vsel %vm878_vm0, %v3552_v18, %v3558_v62  ;;  %v12872_v36 = vshrl.u32 %v10787_v63, 16  ;;  %v12871_v20 = vshll.u32 %v10787_v63, 16  ;;  %8952 = vmatpush3.bf16.msra.mxu0 %v9302_v13 }
 0x19d   : > { %v3064_v57 = vrot.slane %v12873_v8, 5  ;;  %8917 = vmatprep.mubr.bf16.mxu1 %v3559_v60  ;;  %v3057_v25 = vsel %vm2860_vm2, %v3047_v1, %v3056_v61  ;;  %v11036_v43 = vsel %vm878_vm0, %v2721_v17, %v2723_v47  ;;  %v12955_v33 = vshrl.u32 %v10248_v14, 16  ;;  %6049 = vmatprep.subr.bf16.mxu0 %v12926_v29 }
 0x19e   : > { %v11033_v53 = vsel %vm2271_vm1, %v2377_v54, %v2386_v5  ;;  %3209 = vst [vmem:[#allocation3 + $0x1f0] sm:$0xff] %v3057_v25  ;;  %v3564_v18 = vrot.slane %v3057_v25, 4  ;;  %2807 = vst [vmem:[#allocation3 + $0x128] sm:$0xff] %v11036_v43  ;;  %v3514_v1 = vrot.slane %v11036_v43, 4  ;;  %v3070_v54 = vrot.slane %v12872_v36, 4  ;;  %v2646_v25 = vld [vmem:[#allocation2 + $0x70] sm:$0xff] }
 0x19f   : > { %v2391_v19 = vrot.slane %v12955_v33, 3  ;;  %2611 = vst [vmem:[#allocation3 + $0x108] sm:$0xff] %v11033_v53  ;;  %v3506_v28 = vrot.slane %v11033_v53, 4  ;;  %v3065_v42 = vor.u32 %v3064_v57, %v3061_v50  ;;  %v3073_v17 = vrot.slane %v12871_v20, 5 }
 0x1a0   : > { %v12956_v41 = vshll.u32 %v10248_v14, 16  ;;  %v12876_v60 = vshrl.u32 %v10881_v10, 16  ;;  %v3565_v50 = vsel %vm878_vm0, %v3558_v62, %v3564_v18  ;;  %v3515_v33 = vsel %vm878_vm0, %v3508_v2, %v3514_v1 }
 0x1a1   : > { %v3507_v57 = vsel %vm878_vm0, %v3500_v44, %v3506_v28  ;;  %v3066_v13 = vsel %vm2860_vm2, %v3056_v61, %v3065_v42  ;;  %8918 = vmatmul.mubr.bf16.gmra.mrb[92].mxu1 %v3565_v50  ;;  %v3074_v36 = vor.u32 %v3073_v17, %v3070_v54  ;;  %v12875_v8 = vshll.u32 %v10881_v10, 16 }
 0x1a2   : > { %v2394_v56 = vrot.slane %v12956_v41, 4  ;;  %3955 = vmatmul.mubr.bf16.gmra.mrb[48].mxu0 %v3507_v57  ;;  %3210 = vst [vmem:[#allocation3 + $0x208] sm:$0xff] %v3066_v13  ;;  %v3570_v20 = vrot.slane %v3066_v13, 4  ;;  %v3079_v41 = vrot.slane %v12876_v60, 4  ;;  %v2725_v32 = vrot.slane %v2646_v25, 4  ;;  %v2647_v57 = vld [vmem:[#allocation2 + $0x78] sm:$0xff] }
 0x1a3   : > { %3962 = vmatprep.mubr.bf16.mxu0 %v3515_v33  ;;  %v12877_v62 = vshrl.u32 %v10885_v49, 16  ;;  %v12879_v44 = vshll.u32 %v10885_v49, 16  ;;  %v3075_v2 = vsel %vm2860_vm2, %v3065_v42, %v3074_v36  ;;  %v2403_v25 = vrot.slane %v2990_v6, 4 }
 0x1a4   : > { %v2395_v14 = vor.u32 %v2394_v56, %v2391_v19  ;;  %v3571_v61 = vsel %vm878_vm0, %v3564_v18, %v3570_v20  ;;  %v2400_v19 = vrot.slane %v2987_v45, 3  ;;  %3211 = vst [vmem:[#allocation3 + $0x220] sm:$0xff] %v3075_v2  ;;  %v3576_v54 = vrot.slane %v3075_v2, 4 }
 0x1a5   : > { %8921 = vmatprep.mubr.bf16.mxu1 %v3571_v61  ;;  %v3082_v56 = vrot.slane %v12875_v8, 5  ;;  %v11073_v18 = vsel %vm878_vm0, %v2723_v47, %v2725_v32  ;;  %v3088_v45 = vrot.slane %v12877_v62, 4  ;;  %v3091_v42 = vrot.slane %v12879_v44, 5 }
 0x1a6   : > { %v11064_v50 = vsel %vm2271_vm1, %v2386_v5, %v2395_v14  ;;  %2808 = vst [vmem:[#allocation3 + $0x140] sm:$0xff] %v11073_v18  ;;  %v3520_v5 = vrot.slane %v11073_v18, 4  ;;  %v3577_v13 = vsel %vm878_vm0, %v3570_v20, %v3576_v54  ;;  %v3095_v61 = vshrl.u32 %v10939_v40, 16 }
 0x1a7   : > { %2612 = vst [vmem:[#allocation3 + $0x120] sm:$0xff] %v11064_v50  ;;  %v3512_v17 = vrot.slane %v11064_v50, 4  ;;  %v3083_v47 = vor.u32 %v3082_v56, %v3079_v41  ;;  %v3092_v8 = vor.u32 %v3091_v42, %v3088_v45  ;;  %v2404_v60 = vor.u32 %v2403_v25, %v2400_v19  ;;  %v2648_v25 = vld [vmem:[#allocation2 + $0x80] sm:$0xff] }
 0x1a8   : > { %v3521_v2 = vsel %vm878_vm0, %v3514_v1, %v3520_v5  ;;  %v3098_v62 = vshll.u32 %v10939_v40, 16  ;;  %v3097_v22 = vrot.slane %v3095_v61, 4  ;;  %v2727_v6 = vrot.slane %v2647_v57, 4 }
 0x1a9   : > { %v3513_v33 = vsel %vm878_vm0, %v3506_v28, %v3512_v17  ;;  %v3084_v37 = vsel %vm2860_vm2, %v3074_v36, %v3083_v47  ;;  %v3104_v44 = vshrl.u32 %v10943_v34, 16  ;;  %8922 = vmatmul.mubr.bf16.gmra.mrb[96].mxu1 %v3577_v13  ;;  %v3093_v28 = vsel %vm2860_vm2, %v3083_v47, %v3092_v8 }
 0x1aa   : > { %3963 = vmatmul.mubr.bf16.gmra.mrb[52].mxu0 %v3513_v33  ;;  %3212 = vst [vmem:[#allocation3 + $0x238] sm:$0xff] %v3084_v37  ;;  %v3582_v20 = vrot.slane %v3084_v37, 4  ;;  %v11094_v1 = vsel %vm2271_vm1, %v2395_v14, %v2404_v60  ;;  %v3100_v41 = vrot.slane %v3098_v62, 5  ;;  %3213 = vst [vmem:[#allocation3 + $0x250] sm:$0xff] %v3093_v28  ;;  %v3588_v36 = vrot.slane %v3093_v28, 4 }
 0x1ab   : > { %3970 = vmatprep.mubr.bf16.mxu0 %v3521_v2  ;;  %2613 = vst [vmem:[#allocation3 + $0x138] sm:$0xff] %v11094_v1  ;;  %v3518_v19 = vrot.slane %v11094_v1, 4  ;;  %v11101_v56 = vsel %vm878_vm0, %v2725_v32, %v2727_v6  ;;  %v3106_v14 = vrot.slane %v3104_v44, 4  ;;  %v12880_v42 = vshll.u32 %v10943_v34, 16 }
 0x1ac   : > { %v3583_v37 = vsel %vm878_vm0, %v3576_v54, %v3582_v20  ;;  %v3101_v45 = vor.u32 %v3100_v41, %v3097_v22  ;;  %2809 = vst [vmem:[#allocation3 + $0x158] sm:$0xff] %v11101_v56  ;;  %v3589_v57 = vsel %vm878_vm0, %v3582_v20, %v3588_v36  ;;  %v3526_v13 = vrot.slane %v11101_v56, 4 }
 0x1ad   : > { %8925 = vmatprep.mubr.bf16.mxu1 %v3583_v37  ;;  %v2409_v32 = vrot.slane %v2996_v23, 3  ;;  %v2412_v54 = vrot.slane %v2999_v48, 4  ;;  %v3519_v33 = vsel %vm878_vm0, %v3512_v17, %v3518_v19  ;;  %v3109_v2 = vrot.slane %v12880_v42, 5 }
 0x1ae   : > { %v3102_v47 = vsel %vm2860_vm2, %v3092_v8, %v3101_v45  ;;  %v3113_v22 = vshrl.u32 %v11012_v39, 16  ;;  %v12881_v41 = vshll.u32 %v11012_v39, 16  ;;  %v2729_v23 = vrot.slane %v2648_v25, 4  ;;  %v2649_v25 = vld [vmem:[#allocation2 + $0x88] sm:$0xff] }
 0x1af   : > { %3214 = vst [vmem:[#allocation3 + $0x268] sm:$0xff] %v3102_v47  ;;  %v3594_v20 = vrot.slane %v3102_v47, 4  ;;  %v2413_v28 = vor.u32 %v2412_v54, %v2409_v32  ;;  %v3110_v37 = vor.u32 %v3109_v2, %v3106_v14  ;;  %v12882_v48 = vshrl.u32 %v11015_v11, 16 }
 0x1b0   : > { %v3115_v0 = vrot.slane %v3113_v22, 4  ;;  %v3125_v17 = vshll.u32 %v11015_v11, 16  ;;  %v3118_v47 = vrot.slane %v12881_v41, 5  ;;  %v11133_v32 = vsel %vm878_vm0, %v2727_v6, %v2729_v23 }
 0x1b1   : > { %v3595_v8 = vsel %vm878_vm0, %v3588_v36, %v3594_v20  ;;  %v11128_v42 = vsel %vm2271_vm1, %v2404_v60, %v2413_v28  ;;  %8926 = vmatmul.mubr.bf16.gmra.mrb[100].mxu1 %v3589_v57  ;;  %v3527_v14 = vsel %vm878_vm0, %v3520_v5, %v3526_v13  ;;  %v3111_v54 = vsel %vm2860_vm2, %v3101_v45, %v3110_v37 }
 0x1b2   : > { %3971 = vmatmul.mubr.bf16.gmra.mrb[56].mxu0 %v3519_v33  ;;  %2614 = vst [vmem:[#allocation3 + $0x150] sm:$0xff] %v11128_v42  ;;  %2810 = vst [vmem:[#allocation3 + $0x170] sm:$0xff] %v11133_v32  ;;  %v3124_v60 = vrot.slane %v12882_v48, 4  ;;  %8929 = vmatprep.mubr.bf16.mxu1 %v3595_v8  ;;  %v3600_v6 = vrot.slane %v3111_v54, 4  ;;  %v3119_v36 = vor.u32 %v3118_v47, %v3115_v0  ;;  %v3127_v57 = vrot.slane %v3125_v17, 5  ;;  %v2650_v48 = vld [vmem:[#allocation2 + $0x90] sm:$0xff] }
 0x1b3   : > { %3978 = vmatprep.mubr.bf16.mxu0 %v3527_v14  ;;  %3215 = vst [vmem:[#allocation3 + $0x280] sm:$0xff] %v3111_v54  ;;  %v2418_v5 = vrot.slane %v3005_v58, 3  ;;  %v3524_v45 = vrot.slane %v11128_v42, 4  ;;  %v3532_v33 = vrot.slane %v11133_v32, 4  ;;  %v2421_v2 = vrot.slane %v3008_v59, 4 }
 0x1b4   : > { %v2731_v41 = vrot.slane %v2649_v25, 4  ;;  %v3601_v8 = vsel %vm878_vm0, %v3594_v20, %v3600_v6  ;;  %v11153_v14 = vsel %vm2860_vm2, %v3110_v37, %v3119_v36  ;;  %v11155_v0 = vor.u32 %v3127_v57, %v3124_v60  ;;  %v2651_v20 = vld [vmem:[#allocation2 + $0x98] sm:$0xff] }
 0x1b5   : > { %v2427_v47 = vrot.slane %v3014_v12, 3  ;;  %3216 = vst [vmem:[#allocation3 + $0x298] sm:$0xff] %v11153_v14  ;;  %v3606_v58 = vrot.slane %v11153_v14, 4  ;;  %v2422_v54 = vor.u32 %v2421_v2, %v2418_v5  ;;  %v2430_v59 = vrot.slane %v3017_v4, 4 }
 0x1b6   : > { %v11162_v3 = vsel %vm878_vm0, %v2729_v23, %v2731_v41  ;;  %v3129_v37 = vsel %vm2860_vm2, %v3119_v36, %v11155_v0  ;;  %v2733_v25 = vrot.slane %v2650_v48, 4  ;;  %v2436_v12 = vrot.slane %v3023_v16, 3 }
 0x1b7   : > { %2811 = vst [vmem:[#allocation3 + $0x188] sm:$0xff] %v11162_v3  ;;  %v3607_v60 = vsel %vm878_vm0, %v3600_v6, %v3606_v58  ;;  %3217 = vst [vmem:[#allocation3 + $0x2b0] sm:$0xff] %v3129_v37  ;;  %v11173_v57 = vsel %vm2271_vm1, %v2413_v28, %v2422_v54  ;;  %v2431_v23 = vor.u32 %v2430_v59, %v2427_v47  ;;  %v2439_v46 = vrot.slane %v3026_v31, 4  ;;  %v2652_v6 = vld [vmem:[#allocation2 + $0xa0] sm:$0xff]  ;;  %v2654_v59 = vld [vmem:[#allocation2 + $0xb0] sm:$0xff] }
 0x1b8   : > { %v3525_v4 = vsel %vm878_vm0, %v3518_v19, %v3524_v45  ;;  %2615 = vst [vmem:[#allocation3 + $0x168] sm:$0xff] %v11173_v57  ;;  %v11184_v16 = vsel %vm878_vm0, %v2731_v41, %v2733_v25  ;;  %v2735_v48 = vrot.slane %v2651_v20, 4  ;;  %v3533_v35 = vsel %vm878_vm0, %v3526_v13, %v3532_v33  ;;  %v2653_v13 = vld [vmem:[#allocation2 + $0xa8] sm:$0xff] }
 0x1b9   : > { %8930 = vmatmul.mubr.bf16.gmra.mrb[104].mxu1 %v3601_v8  ;;  %v11192_v31 = vsel %vm2271_vm1, %v2422_v54, %v2431_v23  ;;  %2812 = vst [vmem:[#allocation3 + $0x1a0] sm:$0xff] %v11184_v16  ;;  %v2440_v19 = vor.u32 %v2439_v46, %v2436_v12  ;;  %v2445_v28 = vrot.slane %v3032_v21, 3  ;;  %v2448_v36 = vrot.slane %v3035_v9, 4 }
 0x1ba   : > { %3979 = vmatmul.mubr.bf16.gmra.mrb[60].mxu0 %v3525_v4  ;;  %8933 = vmatprep.mubr.bf16.mxu1 %v3607_v60  ;;  %2616 = vst [vmem:[#allocation3 + $0x180] sm:$0xff] %v11192_v31  ;;  %v11199_v41 = vsel %vm878_vm0, %v2733_v25, %v2735_v48  ;;  %v2737_v2 = vrot.slane %v2652_v6, 4  ;;  %v3530_v8 = vrot.slane %v11173_v57, 4  ;;  %v2454_v14 = vrot.slane %v3041_v24, 3  ;;  %v2655_v4 = vld [vmem:[#allocation2 + $0xb8] sm:$0xff] }
 0x1bb   : > { %3986 = vmatprep.mubr.bf16.mxu0 %v3533_v35  ;;  %v11204_v5 = vsel %vm2271_vm1, %v2431_v23, %v2440_v19  ;;  %2813 = vst [vmem:[#allocation3 + $0x1b8] sm:$0xff] %v11199_v41  ;;  %v2449_v21 = vor.u32 %v2448_v36, %v2445_v28  ;;  %v3538_v47 = vrot.slane %v11162_v3, 4  ;;  %v2457_v9 = vrot.slane %v3044_v38, 4  ;;  %v4469_v28 = vld [vmem:[#allocation3 + $0x38] sm:$0xff] }
 0x1bc   : > { %2617 = vst [vmem:[#allocation3 + $0x198] sm:$0xff] %v11204_v5  ;;  %v11213_v15 = vsel %vm878_vm0, %v2735_v48, %v2737_v2  ;;  %v2739_v54 = vrot.slane %v2653_v13, 4  ;;  %v2463_v25 = vrot.slane %v3050_v26, 3  ;;  %v3531_v52 = vsel %vm878_vm0, %v3524_v45, %v3530_v8 }
 0x1bd   : > { %v11218_v37 = vsel %vm2271_vm1, %v2440_v19, %v2449_v21  ;;  %2814 = vst [vmem:[#allocation3 + $0x1d0] sm:$0xff] %v11213_v15  ;;  %v2458_v12 = vor.u32 %v2457_v9, %v2454_v14  ;;  %v12957_v38 = vshll.u32 %v10705_v27, 16  ;;  %v2741_v46 = vrot.slane %v2654_v59, 4  ;;  %v2656_v19 = vld [vmem:[#allocation2 + $0xc0] sm:$0xff] }
 0x1be   : > { %v3307_v20 = vld [vmem:[#allocation3 + $0x2b0] sm:$0xf]  ;;  %2618 = vst [vmem:[#allocation3 + $0x1b0] sm:$0xff] %v11218_v37  ;;  %v11225_v60 = vsel %vm878_vm0, %v2737_v2, %v2739_v54  ;;  %v3539_v48 = vsel %vm878_vm0, %v3532_v33, %v3538_v47  ;;  %v12958_v35 = vshrl.u32 %v10783_v30, 16  ;;  %v12959_v33 = vshll.u32 %v10783_v30, 16 }
 0x1bf   : > { %v3612_v24 = vrot.slane %v3307_v20, 4  ;;  %2815 = vst [vmem:[#allocation3 + $0x1e8] sm:$0xff] %v11225_v60  ;;  %v2466_v23 = vrot.slane %v12957_v38, 4  ;;  %v11238_v6 = vsel %vm2271_vm1, %v2449_v21, %v2458_v12  ;;  %v2743_v13 = vrot.slane %v2655_v4, 4 }
 0x1c0   : > { %v2472_v45 = vrot.slane %v12958_v35, 3  ;;  %2619 = vst [vmem:[#allocation3 + $0x1c8] sm:$0xff] %v11238_v6  ;;  %v2475_v36 = vrot.slane %v12959_v33, 4  ;;  %v12960_v2 = vshrl.u32 %v10787_v63, 16  ;;  %v3536_v14 = vrot.slane %v11192_v31, 4 }
 0x1c1   : > { %v3613_v26 = vsel %vm878_vm0, %v3606_v58, %v3612_v24  ;;  %v2467_v27 = vor.u32 %v2466_v23, %v2463_v25  ;;  %v11244_v58 = vsel %vm878_vm0, %v2739_v54, %v2741_v46  ;;  %v12961_v59 = vshll.u32 %v10787_v63, 16 }
 0x1c2   : > { %3987 = vmatmul.mubr.bf16.gmra.mrb[64].mxu0 %v3531_v52  ;;  %8934 = vmatmul.mubr.bf16.gmra.mrb[108].mxu1 %v3613_v26  ;;  %2816 = vst [vmem:[#allocation3 + $0x200] sm:$0xff] %v11244_v58  ;;  %v2481_v21 = vrot.slane %v12960_v2, 3  ;;  %v2745_v54 = vrot.slane %v2656_v19, 4  ;;  %v3544_v25 = vrot.slane %v11184_v16, 4  ;;  %v2476_v24 = vor.u32 %v2475_v36, %v2472_v45  ;;  %v2657_v52 = vld [vmem:[#allocation2 + $0xc8] sm:$0xff] }
 0x1c3   : > { %3994 = vmatprep.mubr.bf16.mxu0 %v3539_v48  ;;  %4777 = vmatprep.mubr.bf16.mxu1 %v4469_v28  ;;  %v11253_v9 = vsel %vm2271_vm1, %v2458_v12, %v2467_v27  ;;  %v2484_v20 = vrot.slane %v12961_v59, 4  ;;  %v11260_v30 = vsel %vm878_vm0, %v2741_v46, %v2743_v13  ;;  %v12962_v12 = vshrl.u32 %v10881_v10, 16  ;;  %v2658_v46 = vld [vmem:[#allocation2 + $0xd0] sm:$0xff]  ;;  %v4468_v28 = vld [vmem:[#allocation3 + $0x30] sm:$0xff] }
 0x1c4   : > { %2620 = vst [vmem:[#allocation3 + $0x1e0] sm:$0xff] %v11253_v9  ;;  %2817 = vst [vmem:[#allocation3 + $0x218] sm:$0xff] %v11260_v30  ;;  %v11264_v23 = vsel %vm878_vm0, %v2743_v13, %v2745_v54  ;;  %v11269_v4 = vsel %vm2271_vm1, %v2467_v27, %v2476_v24  ;;  %v12963_v26 = vshll.u32 %v10881_v10, 16  ;;  %v3537_v35 = vsel %vm878_vm0, %v3530_v8, %v3536_v14  ;;  %v4472_v13 = vld [vmem:[#allocation3 + $0x50] sm:$0xff] }
 0x1c5   : > { %v2485_v38 = vor.u32 %v2484_v20, %v2481_v21  ;;  %v2490_v63 = vrot.slane %v12962_v12, 3  ;;  %2818 = vst [vmem:[#allocation3 + $0x230] sm:$0xff] %v11264_v23  ;;  %2621 = vst [vmem:[#allocation3 + $0x1f8] sm:$0xff] %v11269_v4  ;;  %v2747_v19 = vrot.slane %v2657_v52, 4  ;;  %v3545_v33 = vsel %vm878_vm0, %v3538_v47, %v3544_v25  ;;  %v2659_v20 = vld [vmem:[#allocation2 + $0xd8] sm:$0xff] }
 0x1c6   : > { %v2493_v48 = vrot.slane %v12963_v26, 4  ;;  %v12964_v36 = vshrl.u32 %v10885_v49, 16  ;;  %v12965_v2 = vshll.u32 %v10885_v49, 16  ;;  %v2749_v59 = vrot.slane %v2658_v46, 4 }
 0x1c7   : > { %v11277_v45 = vsel %vm2271_vm1, %v2476_v24, %v2485_v38  ;;  %v11284_v8 = vsel %vm878_vm0, %v2745_v54, %v2747_v19  ;;  %v2508_v24 = vrot.slane %v3095_v61, 3  ;;  %v3542_v52 = vrot.slane %v11204_v5, 4 }
 0x1c8   : > { %2622 = vst [vmem:[#allocation3 + $0x210] sm:$0xff] %v11277_v45  ;;  %v2494_v27 = vor.u32 %v2493_v48, %v2490_v63  ;;  %v2499_v10 = vrot.slane %v12964_v36, 3  ;;  %v2502_v21 = vrot.slane %v12965_v2, 4  ;;  %2819 = vst [vmem:[#allocation3 + $0x248] sm:$0xff] %v11284_v8  ;;  %v11297_v12 = vsel %vm878_vm0, %v2747_v19, %v2749_v59  ;;  %v2660_v63 = vld [vmem:[#allocation2 + $0xe0] sm:$0xff]  ;;  %v4471_v2 = vld [vmem:[#allocation3 + $0x48] sm:$0xff] }
 0x1c9   : > { %v2511_v49 = vrot.slane %v3098_v62, 4  ;;  %2820 = vst [vmem:[#allocation3 + $0x260] sm:$0xff] %v11297_v12  ;;  %v2751_v26 = vrot.slane %v2659_v20, 4  ;;  %v2517_v61 = vrot.slane %v3104_v44, 3  ;;  %v2753_v36 = vrot.slane %v2660_v63, 4  ;;  %v2661_v44 = vld [vmem:[#allocation2 + $0xe8] sm:$0xff] }
 0x1ca   : > { %3995 = vmatmul.mubr.bf16.gmra.mrb[68].mxu0 %v3537_v35  ;;  %4778 = vmatmul.mubr.bf16.vlgmr.msra.gmra.mrb[112].mxu1 %v4468_v28  ;;  %v11289_v47 = vsel %vm2271_vm1, %v2485_v38, %v2494_v27  ;;  %v2503_v54 = vor.u32 %v2502_v21, %v2499_v10  ;;  %v3550_v38 = vrot.slane %v11199_v41, 4  ;;  %v12966_v35 = vshll.u32 %v10943_v34, 16  ;;  %v11310_v28 = vld [vmem:[#allocation2 + $0xf8] sm:$0xff] }
 0x1cb   : > { %4002 = vmatprep.mubr.bf16.mxu0 %v3545_v33  ;;  %4785 = vmatprep.mubr.bf16.mxu1 %v4472_v13  ;;  %2623 = vst [vmem:[#allocation3 + $0x228] sm:$0xff] %v11289_v47  ;;  %v2512_v46 = vor.u32 %v2511_v49, %v2508_v24  ;;  %v12885_v40 = vshrl.u32 %v11310_v28, 16  ;;  %v12883_v62 = vshll.u32 %v11310_v28, 16  ;;  %v11316_v33 = vsel %vm878_vm0, %v2749_v59, %v2751_v26  ;;  %v11332_v24 = vld [vmem:[#allocation2 + $0xf0] sm:$0xff] }
 0x1cc   : > { %v11306_v48 = vsel %vm2271_vm1, %v2494_v27, %v2503_v54  ;;  %v2520_v19 = vrot.slane %v12966_v35, 4  ;;  %v3543_v27 = vsel %vm878_vm0, %v3536_v14, %v3542_v52  ;;  %2821 = vst [vmem:[#allocation3 + $0x278] sm:$0xff] %v11316_v33  ;;  %v2526_v13 = vrot.slane %v3113_v22, 3 }
 0x1cd   : > { %2624 = vst [vmem:[#allocation3 + $0x240] sm:$0xff] %v11306_v48  ;;  %v11320_v10 = vsel %vm2271_vm1, %v2503_v54, %v2512_v46  ;;  %v3551_v21 = vsel %vm878_vm0, %v3544_v25, %v3550_v38  ;;  %v11328_v59 = vsel %vm878_vm0, %v2751_v26, %v2753_v36  ;;  %v12967_v14 = vshll.u32 %v11012_v39, 16  ;;  %v4475_v54 = vld [vmem:[#allocation3 + $0x68] sm:$0xff] }
 0x1ce   : > { %v2521_v34 = vor.u32 %v2520_v19, %v2517_v61  ;;  %2625 = vst [vmem:[#allocation3 + $0x258] sm:$0xff] %v11320_v10  ;;  %2822 = vst [vmem:[#allocation3 + $0x290] sm:$0xff] %v11328_v59  ;;  %v2755_v22 = vrot.slane %v2661_v44, 4  ;;  %v2553_v25 = vrot.slane %v12885_v40, 3  ;;  %v2556_v63 = vrot.slane %v12883_v62, 4  ;;  %v4474_v62 = vld [vmem:[#allocation3 + $0x60] sm:$0xff] }
 0x1cf   : > { %v2529_v20 = vrot.slane %v12967_v14, 4  ;;  %v12968_v26 = vshrl.u32 %v11015_v11, 16  ;;  %v3548_v35 = vrot.slane %v11218_v37, 4  ;;  %v2538_v19 = vrot.slane %v3125_v17, 4  ;;  %v4478_v40 = vld [vmem:[#allocation3 + $0x80] sm:$0xff] }
 0x1d0   : > { %v11335_v49 = vsel %vm2271_vm1, %v2512_v46, %v2521_v34  ;;  %v11347_v46 = vsel %vm878_vm0, %v2753_v36, %v2755_v22  ;;  %v12884_v44 = vrot.slane %v11332_v24, 4 }
 0x1d1   : > { %2626 = vst [vmem:[#allocation3 + $0x270] sm:$0xff] %v11335_v49  ;;  %v2530_v39 = vor.u32 %v2529_v20, %v2526_v13  ;;  %v2535_v61 = vrot.slane %v12968_v26, 3  ;;  %2823 = vst [vmem:[#allocation3 + $0x2a8] sm:$0xff] %v11347_v46  ;;  %v3131_v13 = vshrl.u32 %v11332_v24, 16 }
 0x1d2   : > { %4003 = vmatmul.mubr.bf16.gmra.mrb[72].mxu0 %v3543_v27  ;;  %4786 = vmatmul.mubr.bf16.gmra.mrb[116].mxu1 %v4471_v2  ;;  %v3556_v27 = vrot.slane %v11213_v15, 4  ;;  %v11363_v11 = vsel %vm878_vm0, %v2755_v22, %v12884_v44  ;;  %v11374_v44 = vor.u32 %v2556_v63, %v2553_v25  ;;  %v4477_v25 = vld [vmem:[#allocation3 + $0x78] sm:$0xff] }
 0x1d3   : > { %4010 = vmatprep.mubr.bf16.mxu0 %v3551_v21  ;;  %4793 = vmatprep.mubr.bf16.mxu1 %v4475_v54  ;;  %v11354_v2 = vsel %vm2271_vm1, %v2521_v34, %v2530_v39  ;;  %v3134_v21 = vshll.u32 %v11332_v24, 16  ;;  %v2539_v36 = vor.u32 %v2538_v19, %v2535_v61  ;;  %2824 = vst [vmem:[#allocation3 + $0x2c0] sm:$0xff] %v11363_v11  ;;  %v3133_v17 = vrot.slane %v3131_v13, 4  ;;  %v4481_v63 = vld [vmem:[#allocation3 + $0x98] sm:$0xff] }
 0x1d4   : > { %2627 = vst [vmem:[#allocation3 + $0x288] sm:$0xff] %v11354_v2  ;;  %v2544_v34 = vrot.slane %v3131_v13, 3  ;;  %v3549_v54 = vsel %vm878_vm0, %v3542_v52, %v3548_v35  ;;  %v3557_v61 = vsel %vm878_vm0, %v3550_v38, %v3556_v27  ;;  %v3554_v13 = vrot.slane %v11238_v6, 4 }
 0x1d5   : > { %v3136_v14 = vrot.slane %v3134_v21, 5  ;;  %v2547_v20 = vrot.slane %v3134_v21, 4  ;;  %v11368_v26 = vsel %vm2271_vm1, %v2530_v39, %v2539_v36  ;;  %v3560_v21 = vrot.slane %v11253_v9, 4 }
 0x1d6   : > { %2628 = vst [vmem:[#allocation3 + $0x2a0] sm:$0xff] %v11368_v26 }
 0x1d7   : > { %v11372_v19 = vor.u32 %v3136_v14, %v3133_v17  ;;  %v2548_v22 = vor.u32 %v2547_v20, %v2544_v34  ;;  %v3561_v17 = vsel %vm878_vm0, %v3554_v13, %v3560_v21  ;;  %v4480_v14 = vld [vmem:[#allocation3 + $0x90] sm:$0xff]  ;;  %v2859_v20 = vld [vmem:[#allocation2 + $0x100] sm:$0x1f] }
 0x1d9   : > { %v11379_v52 = vsel %vm2860_vm2, %v11155_v0, %v11372_v19  ;;  %v11382_v39 = vsel %vm2271_vm1, %v2539_v36, %v2548_v22  ;;  %v2558_v38 = vsel %vm2271_vm1, %v2548_v22, %v11374_v44  ;;  %v3568_v36 = vrot.slane %v11244_v58, 4 }
 0x1da   : > { %4011 = vmatmul.mubr.bf16.gmra.mrb[76].mxu0 %v3549_v54  ;;  %4794 = vmatmul.mubr.bf16.gmra.mrb[120].mxu1 %v4474_v62  ;;  %12969 = vst [vmem:[#allocation5_spill] sm:$0xff] %v11382_v39  ;;  %3218 = vst [vmem:[#allocation3 + $0x2c8] sm:$0xff] %v11379_v52  ;;  %v3555_v62 = vsel %vm878_vm0, %v3548_v35, %v3554_v13  ;;  %v4484_v35 = vld [vmem:[#allocation3 + $0xb0] sm:$0xff]  ;;  %v3574_v54 = vrot.slane %v11260_v30, 4  ;;  %v3152_v22 = vshll.u32 %v2859_v20, 16 }
 0x1db   : > { %4018 = vmatprep.mubr.bf16.mxu0 %v3557_v61  ;;  %4801 = vmatprep.mubr.bf16.mxu1 %v4478_v40  ;;  %2629 = vst [vmem:[#allocation3 + $0x2b8] sm:$0xff] %v11382_v39  ;;  %2630 = vst [vmem:[#allocation3 + $0x2d0] sm:$0xff] %v2558_v38  ;;  %v3562_v40 = vrot.slane %v11225_v60, 4  ;;  %v3149_v61 = vshrl.u32 %v2859_v20, 16  ;;  %v4486_v39 = vld [vmem:[#allocation3 + $0xc0] sm:$0xff] }
 0x1dc   : > { %v3575_v13 = vsel %vm878_vm0, %v3568_v36, %v3574_v54 }
 0x1dd   : > { %v3563_v0 = vsel %vm878_vm0, %v3556_v27, %v3562_v40  ;;  %v3569_v34 = vsel %vm878_vm0, %v3562_v40, %v3568_v36  ;;  %v3566_v27 = vrot.slane %v11269_v4, 4  ;;  %v4487_v40 = vld [vmem:[#allocation3 + $0xc8] sm:$0xff] }
 0x1df   : > { %v3567_v38 = vsel %vm878_vm0, %v3560_v21, %v3566_v27  ;;  %v12971_v21 = vshll.u32 %v11310_v28, 16 }
 0x1e2   : > { %4019 = vmatmul.mubr.bf16.gmra.mrb[80].mxu0 %v3555_v62  ;;  %4802 = vmatmul.mubr.bf16.gmra.mrb[124].mxu1 %v4477_v25  ;;  %v4483_v62 = vld [vmem:[#allocation3 + $0xa8] sm:$0xff]  ;;  %v3151_v25 = vrot.slane %v3149_v61, 4 }
 0x1e3   : > { %4026 = vmatprep.mubr.bf16.mxu0 %v3563_v0  ;;  %4809 = vmatprep.mubr.bf16.mxu1 %v4481_v63  ;;  %v3154_v0 = vrot.slane %v3152_v22, 5  ;;  %v3572_v63 = vrot.slane %v11277_v45, 4 }
 0x1e5   : > { %v3155_v20 = vor.u32 %v3154_v0, %v3151_v25  ;;  %v3573_v36 = vsel %vm878_vm0, %v3566_v27, %v3572_v63 }
 0x1ea   : > { %4027 = vmatmul.mubr.bf16.gmra.mrb[84].mxu0 %v3561_v17  ;;  %4810 = vmatmul.mubr.bf16.gmra.mrb[128].mxu1 %v4480_v14  ;;  %v12970_v17 = vshrl.u32 %v11310_v28, 16  ;;  %v3578_v28 = vrot.slane %v11289_v47, 4 }
 0x1eb   : > { %4034 = vmatprep.mubr.bf16.mxu0 %v3569_v34  ;;  %4817 = vmatprep.mubr.bf16.mxu1 %v4484_v35  ;;  %v3580_v34 = vrot.slane %v11264_v23, 4  ;;  %v2270_v35 = vld [vmem:[#allocation2 + $0x100] sm:$0xf] }
 0x1ec   : > { %v3142_v14 = vrot.slane %v12970_v17, 4  ;;  %v2560_v22 = vshrl.u32 %v2270_v35, 16 }
 0x1ee   : > { %v2562_v27 = vrot.slane %v2560_v22, 3  ;;  %v12972_v22 = vrot.slane %v11332_v24, 4 }
 0x1f2   : > { %4035 = vmatmul.mubr.bf16.gmra.mrb[88].mxu0 %v3567_v38  ;;  %4818 = vmatmul.mubr.bf16.gmra.mrb[132].mxu1 %v4483_v62  ;;  %v3145_v38 = vrot.slane %v12971_v21, 5  ;;  %v2563_v62 = vshll.u32 %v2270_v35, 16  ;;  %v2664_v35 = vld [vmem:[#allocation2 + $0x100] sm:$0xf]  ;;  %v2663_v21 = vld [vmem:[#allocation2 + $0xf8] sm:$0xff] }
 0x1f3   : > { %4042 = vmatprep.mubr.bf16.mxu0 %v3575_v13  ;;  %4825 = vmatprep.mubr.bf16.mxu1 %v4487_v40  ;;  %v3581_v13 = vsel %vm878_vm0, %v3574_v54, %v3580_v34  ;;  %v4490_v40 = vld [vmem:[#allocation3 + $0xe0] sm:$0xff] }
 0x1f4   : > { %v3146_v61 = vor.u32 %v3145_v38, %v3142_v14  ;;  %v2565_v0 = vrot.slane %v2563_v62, 4  ;;  %v3586_v14 = vrot.slane %v11284_v8, 4  ;;  %v4489_v38 = vld [vmem:[#allocation3 + $0xd8] sm:$0xff] }
 0x1f6   : > { %v3147_v17 = vsel %vm2860_vm2, %v11372_v19, %v3146_v61  ;;  %v3156_v25 = vsel %vm2860_vm2, %v3146_v61, %v3155_v20  ;;  %v2566_v54 = vor.u32 %v2565_v0, %v2562_v27  ;;  %v3587_v19 = vsel %vm878_vm0, %v3580_v34, %v3586_v14  ;;  %v11430_v0 = vld [vmem:[%s12856_s8 + $0x200] sm:$0xff]  }
 0x1f7   : > { %3219 = vst [vmem:[#allocation3 + $0x2e0] sm:$0xff] %v3147_v17  ;;  %3220 = vst [vmem:[#allocation3 + $0x2f8] sm:$0xff] %v3156_v25  ;;  %v2759_v20 = vrot.slane %v2663_v21, 4  ;;  %v3584_v61 = vrot.slane %v11306_v48, 4  ;;  %9153 = vmatprep.subr.bf16.mxu1 %v11430_v0  ;;  %v11450_v21 = vld [vmem:[%s12856_s8 + $0x210] sm:$0xff]  }
 0x1f8   : > { %v2567_v34 = vsel %vm2271_vm1, %v11374_v44, %v2566_v54  ;;  %v3590_v44 = vrot.slane %v11320_v10, 4  ;;  %9161 = vmatpush3.bf16.msra.mxu1 %v11430_v0  ;;  %v3596_v54 = vrot.slane %v11335_v49, 4 }
 0x1f9   : > { %v2760_v62 = vsel %vm878_vm0, %v12972_v22, %v2759_v20  ;;  %2631 = vst [vmem:[#allocation3 + $0x2e8] sm:$0xff] %v2567_v34 }
 0x1fa   : > { %4043 = vmatmul.mubr.bf16.gmra.mrb[92].mxu0 %v3573_v36  ;;  %4826 = vmatmul.mubr.bf16.gmra.mrb[136].mxu1 %v4486_v39  ;;  %v3579_v39 = vsel %vm878_vm0, %v3572_v63, %v3578_v28  ;;  %v2761_v36 = vrot.slane %v2664_v35, 4  ;;  %v3592_v63 = vrot.slane %v11297_v12, 4  ;;  %2825 = vst [vmem:[#allocation3 + $0x2d8] sm:$0xff] %v2760_v62 }
 0x1fb   : > { %4050 = vmatprep.mubr.bf16.mxu0 %v3581_v13  ;;  %4833 = vmatprep.mubr.bf16.mxu1 %v4490_v40 }
 0x1fc   : > { %v2762_v13 = vsel %vm878_vm0, %v2759_v20, %v2761_v36  ;;  %v3593_v24 = vsel %vm878_vm0, %v3586_v14, %v3592_v63  ;;  %v3591_v14 = vsel %vm878_vm0, %v3584_v61, %v3590_v44  ;;  %v3604_v36 = vrot.slane %v11328_v59, 4 }
 0x1fd   : > { %2826 = vst [vmem:[#allocation3 + $0x2f0] sm:$0xff] %v2762_v13 }
 0x202   : > { %4051 = vmatmul.mubr.bf16.gmra.mrb[96].mxu0 %v3579_v39  ;;  %4834 = vmatmul.mubr.bf16.gmra.mrb[140].mxu1 %v4489_v38 }
 0x203   : > { %4058 = vmatprep.mubr.bf16.mxu0 %v3587_v19  ;;  %4841 = vmatprep.mubr.bf16.mxu1 %v10948_v7  ;;  %v3585_v7 = vsel %vm878_vm0, %v3578_v28, %v3584_v61  ;;  %v3598_v28 = vrot.slane %v11316_v33, 4  ;;  %v11464_v61 = vld [vmem:[%s12856_s8 + $0x218] sm:$0xff]  }
 0x205   : > { %v3605_v62 = vsel %vm878_vm0, %v3598_v28, %v3604_v36 }
 0x206   : > { %v3876_v40 = vpop.f32.mrb[8].mxu0 }
 0x207   : > { %v3878_v17 = vpop.f32.mrb[9].mxu0 }
 0x208   : > { %v3879_v25 = vpop.f32.mrb[10].mxu0  ;;  %v11476_v17 = vld [vmem:[%s12856_s8 + $0x220] sm:$0xff]  }
 0x209   : > { %v3881_v27 = vpop.f32.mrb[11].mxu0 }
 0x20a   : > { %4059 = vmatmul.mubr.bf16.gmra.mrb[100].mxu0 %v3585_v7  ;;  %4842 = vmatmul.mubr.bf16.gmra.mrb[144].mxu1 %v10981_v51  ;;  %v11440_v51 = vld [vmem:[%s12856_s8 + $0x208] sm:$0xff]   ;;  %v3602_v27 = vrot.slane %v11354_v2, 4 }
 0x20b   : > { %4066 = vmatprep.mubr.bf16.mxu0 %v3593_v24  ;;  %4849 = vmatprep.mubr.bf16.mxu1 %v10986_v55  ;;  %v3599_v55 = vsel %vm878_vm0, %v3592_v63, %v3598_v28 }
 0x20c   : > { %9154 = vmatprep.subr.bf16.mxu1 %v11440_v51 }
 0x20d   : > { %9162 = vmatpush3.bf16.msra.mxu1 %v11440_v51 }
 0x20e   : > { %9155 = vmatprep.subr.bf16.mxu1 %v11450_v21 }
 0x211   : > { %9163 = vmatpush3.bf16.msra.mxu1 %v11450_v21 }
 0x212   : > { %4067 = vmatmul.mubr.bf16.gmra.mrb[104].mxu0 %v3591_v14  ;;  %4850 = vmatmul.mubr.bf16.gmra.mrb[148].mxu1 %v11033_v53  ;;  %v3603_v14 = vsel %vm878_vm0, %v3596_v54, %v3602_v27 }
 0x213   : > { %4074 = vmatprep.mubr.bf16.mxu0 %v3599_v55  ;;  %4857 = vmatprep.mubr.bf16.mxu1 %v11036_v43  ;;  %v3597_v43 = vsel %vm878_vm0, %v3590_v44, %v3596_v54  ;;  %v11487_v44 = vld [vmem:[%s12856_s8 + $0x228] sm:$0xff]  }
 0x214   : > { %v8883_v35 = vpop.f32.mrb[56].mxu1  ;;  %9156 = vmatprep.subr.bf16.mxu1 %v11464_v61 }
 0x215   : > { %v4133_v39 = vpop.f32.mrb[57].mxu1  ;;  %9164 = vmatpush3.bf16.msra.mxu1 %v11464_v61 }
 0x216   : > { %v11454_v38 = vadd.f32 %v4133_v39, %v3876_v40  ;;  %v8884_v19 = vpop.f32.mrb[58].mxu1  ;;  %v3306_v40 = vld [vmem:[#allocation3 + $0x2a8] sm:$0xf]  ;;  %9157 = vmatprep.subr.bf16.mxu1 %v11476_v17 }
 0x217   : > { %v4136_v53 = vpop.f32.mrb[59].mxu1  ;;  %v3884_v22 = vpop.f32.mrb[12].mxu0  ;;  %v3610_v24 = vrot.slane %v3306_v40, 4 }
 0x218   : > { %12973 = vst [vmem:[#allocation9_spill] sm:$0xff] %v11454_v38  ;;  %v11459_v20 = vadd.f32 %v4136_v53, %v3879_v25  ;;  %v11469_v13 = vadd.f32 %v8883_v35, %v3884_v22  ;;  %v3886_v63 = vpop.f32.mrb[13].mxu0  ;;  %v3305_v35 = vld [vmem:[#allocation3 + $0x2a0] sm:$0xf]  ;;  %v11497_v53 = vld [vmem:[%s12856_s8 + $0x230] sm:$0xff]  }
 0x219   : > { %v3887_v34 = vpop.f32.mrb[14].mxu0  ;;  %9165 = vmatpush3.bf16.msra.mxu1 %v11476_v17  ;;  %v3611_v55 = vsel %vm878_vm0, %v3604_v36, %v3610_v24  ;;  %v3608_v22 = vrot.slane %v3305_v35, 4  ;;  %v11741_v38 = vld [vmem:[#allocation3 + $0x208] sm:$0xff] }
 0x21a   : > { %12974 = vst [vmem:[#allocation7_spill] sm:$0xff] %v11459_v20  ;;  %4075 = vmatmul.mubr.bf16.gmra.mrb[108].mxu0 %v3597_v43  ;;  %12975 = vst [vmem:[#allocation8_spill] sm:$0xff] %v11469_v13  ;;  %4858 = vmatmul.mubr.bf16.gmra.mrb[152].mxu1 %v11064_v50  ;;  %v11479_v25 = vadd.f32 %v8884_v19, %v3887_v34  ;;  %v3889_v7 = vpop.f32.mrb[15].mxu0 }
 0x21b   : > { %4082 = vmatprep.mubr.bf16.mxu0 %v3605_v62  ;;  %4865 = vmatprep.mubr.bf16.mxu1 %v11073_v18  ;;  %v3609_v40 = vsel %vm878_vm0, %v3602_v27, %v3608_v22  ;;  %v9303_v27 = vld [vmem:[%s12856_s8 + $0x180] sm:$0xff]  }
 0x21c   : > { %12976 = vst [vmem:[#allocation6_spill] sm:$0xff] %v11479_v25  ;;  %9158 = vmatprep.subr.bf16.mxu1 %v11487_v44  ;;  %v4473_v22 = vld [vmem:[#allocation3 + $0x58] sm:$0xff]  ;;  %v11695_v25 = vld [vmem:[#allocation3 + $0x1c0] sm:$0xff] }
 0x21d   : > { %9166 = vmatpush3.bf16.msra.mxu1 %v11487_v44 }
 0x21e   : > { %v8887_v50 = vpop.f32.mrb[60].mxu1  ;;  %9159 = vmatprep.subr.bf16.mxu1 %v11497_v53 }
 0x21f   : > { %v4149_v28 = vpop.f32.mrb[61].mxu1 }
 0x220   : > { %v8888_v18 = vpop.f32.mrb[62].mxu1 }
 0x221   : > { %v4152_v39 = vpop.f32.mrb[63].mxu1  ;;  %v3892_v19 = vpop.f32.mrb[16].mxu0  ;;  %9167 = vmatpush3.bf16.msra.mxu1 %v11497_v53 }
 0x222   : > { %4083 = vmatmul.mubr.bf16.gmra.mrb[112].mxu0 %v3603_v14  ;;  %4866 = vmatmul.mubr.bf16.gmra.mrb[156].mxu1 %v11094_v1  ;;  %v11500_v54 = vadd.f32 %v4149_v28, %v3892_v19  ;;  %v3894_v43 = vpop.f32.mrb[17].mxu0  ;;  %v11509_v1 = vld [vmem:[%s12856_s8 + $0x238] sm:$0xff]  }
 0x223   : > { %4090 = vmatprep.mubr.bf16.mxu0 %v3611_v55  ;;  %4873 = vmatprep.mubr.bf16.mxu1 %v11101_v56  ;;  %v3895_v36 = vpop.f32.mrb[18].mxu0  ;;  %v4470_v56 = vld [vmem:[#allocation3 + $0x40] sm:$0xff] }
 0x224   : > { %12977 = vst [vmem:[#allocation13_spill] sm:$0xff] %v11500_v54  ;;  %v11503_v62 = vadd.f32 %v4152_v39, %v3895_v36  ;;  %v3897_v63 = vpop.f32.mrb[19].mxu0  ;;  %9160 = vmatprep.subr.bf16.mxu1 %v11509_v1 }
 0x225   : > { %9168 = vmatpush3.bf16.msra.mxu1 %v11509_v1 }
 0x226   : > { %12978 = vst [vmem:[#allocation11_spill] sm:$0xff] %v11503_v62 }
 0x228   : > { %v8891_v34 = vpop.f32.mrb[64].mxu1 }
 0x229   : > { %v4165_v7 = vpop.f32.mrb[65].mxu1 }
 0x22a   : > { %4091 = vmatmul.mubr.bf16.gmra.mrb[116].mxu0 %v3609_v40  ;;  %4874 = vmatmul.mubr.bf16.gmra.mrb[160].mxu1 %v11128_v42  ;;  %v8892_v24 = vpop.f32.mrb[66].mxu1  ;;  %v4476_v42 = vld [vmem:[#allocation3 + $0x70] sm:$0xff]  ;;  %v11539_v40 = vld [vmem:[#allocation3 + $0x88] sm:$0xff] }
 0x22b   : > { %8953 = vmatprep.mubr.bf16.mxu0 %v4470_v56  ;;  %4881 = vmatprep.mubr.bf16.mxu1 %v11133_v32  ;;  %v4168_v28 = vpop.f32.mrb[67].mxu1  ;;  %v3900_v14 = vpop.f32.mrb[20].mxu0  ;;  %v9304_v32 = vld [vmem:[%s12856_s8 + $0x188] sm:$0xff]   ;;  %12981 = vst [vmem:[#allocation17_spill] sm:$0xff] %v11539_v40 }
 0x22c   : > { %v11516_v55 = vadd.f32 %v8887_v50, %v3900_v14  ;;  %v3902_v35 = vpop.f32.mrb[21].mxu0  ;;  %v11542_v56 = vld [vmem:[#allocation3 + $0xa0] sm:$0xff] }
 0x22d   : > { %v3903_v39 = vpop.f32.mrb[22].mxu0 }
 0x22e   : > { %12979 = vst [vmem:[#allocation12_spill] sm:$0xff] %v11516_v55  ;;  %v11521_v19 = vadd.f32 %v8888_v18, %v3903_v39  ;;  %v3905_v43 = vpop.f32.mrb[23].mxu0  ;;  %v9314_v55 = vld [vmem:[%s12856_s8 + $0x1d8] sm:$0xff]  }
 0x22f   : > { %v9306_v43 = vld [vmem:[%s12856_s8 + $0x198] sm:$0xff]  }
 0x230   : > { %12980 = vst [vmem:[#allocation10_spill] sm:$0xff] %v11521_v19 }
 0x232   : > { %8954 = vmatmul.mubr.bf16.vlgmr.msra.gmra.mrb[120].mxu0 %v4473_v22  ;;  %4882 = vmatmul.mubr.bf16.gmra.mrb[164].mxu1 %v11173_v57  ;;  %v9305_v57 = vld [vmem:[%s12856_s8 + $0x190] sm:$0xff]  }
 0x233   : > { %6050 = vmatpush1.bf16.msra.mxu0 %v9303_v27  ;;  %4889 = vmatprep.mubr.bf16.mxu1 %v11162_v3  ;;  %v11529_v50 = vpop.f32.mrb[68].mxu1 }
 0x234   : > { %8957 = vmatprep.mubr.bf16.mxu0 %v4476_v42  ;;  %6051 = vmatprep.subr.bf16.mxu0 %v12926_v29  ;;  %v4181_v18 = vpop.f32.mrb[69].mxu1  ;;  %v11560_v42 = vld [vmem:[#allocation3 + $0xb8] sm:$0xff] }
 0x235   : > { %v11531_v36 = vpop.f32.mrb[70].mxu1 }
 0x236   : > { %v11537_v63 = vpop.f32.mrb[71].mxu1 }
 0x237   : > { %6052 = vmatpush1.bf16.msra.mxu0 %v9304_v32  ;;  %v3908_v3 = vpop.f32.mrb[24].mxu0 }
 0x238   : > { %6053 = vmatprep.subr.bf16.mxu0 %v12926_v29  ;;  %v11544_v14 = vadd.f32 %v4165_v7, %v3908_v3  ;;  %v3910_v35 = vpop.f32.mrb[25].mxu0 }
 0x239   : > { %v3911_v27 = vpop.f32.mrb[26].mxu0 }
 0x23a   : > { %8958 = vmatmul.mubr.bf16.gmra.mrb[124].mxu0 %v11539_v40  ;;  %12982 = vst [vmem:[#allocation15_spill] sm:$0xff] %v11544_v14  ;;  %4890 = vmatmul.mubr.bf16.gmra.mrb[168].mxu1 %v11192_v31  ;;  %v11549_v39 = vadd.f32 %v4168_v28, %v3911_v27  ;;  %v3913_v22 = vpop.f32.mrb[27].mxu0  ;;  %v9307_v31 = vld [vmem:[%s12856_s8 + $0x1a0] sm:$0xff]   ;;  %v11566_v28 = vld [vmem:[#allocation3 + $0xd0] sm:$0xff]  ;;  %v9309_v14 = vld [vmem:[%s12856_s8 + $0x1b0] sm:$0xff]  }
 0x23b   : > { %8961 = vmatprep.mubr.bf16.mxu0 %v11542_v56  ;;  %4897 = vmatprep.mubr.bf16.mxu1 %v11184_v16 }
 0x23c   : > { %6054 = vmatpush1.bf16.msra.mxu0 %v9305_v57  ;;  %12983 = vst [vmem:[#allocation16_spill] sm:$0xff] %v11549_v39 }
 0x23d   : > { %6055 = vmatprep.subr.bf16.mxu0 %v12926_v29 }
 0x23e   : > { %v11555_v7 = vpop.f32.mrb[72].mxu1 }
 0x23f   : > { %v11562_v16 = vpop.f32.mrb[73].mxu1 }
 0x240   : > { %6056 = vmatpush1.bf16.msra.mxu0 %v9306_v43  ;;  %v11568_v32 = vpop.f32.mrb[74].mxu1  ;;  %v9308_v43 = vld [vmem:[%s12856_s8 + $0x1a8] sm:$0xff]  }
 0x241   : > { %6057 = vmatprep.subr.bf16.mxu0 %v12926_v29  ;;  %v11572_v57 = vpop.f32.mrb[75].mxu1 }
 0x242   : > { %8962 = vmatmul.mubr.bf16.gmra.mrb[128].mxu0 %v11560_v42  ;;  %4898 = vmatmul.mubr.bf16.gmra.mrb[172].mxu1 %v11204_v5  ;;  %v3916_v3 = vpop.f32.mrb[28].mxu0 }
 0x243   : > { %8965 = vmatprep.mubr.bf16.mxu0 %v11566_v28  ;;  %4905 = vmatprep.mubr.bf16.mxu1 %v11199_v41  ;;  %v11575_v35 = vadd.f32 %v8891_v34, %v3916_v3  ;;  %v3918_v27 = vpop.f32.mrb[29].mxu0  ;;  %v11586_v41 = vld [vmem:[#allocation3 + $0xe8] sm:$0xff]  ;;  %v11590_v34 = vld [vmem:[#allocation3 + $0x100] sm:$0xff]  ;;  %v9310_v3 = vld [vmem:[%s12856_s8 + $0x1b8] sm:$0xff]  }
 0x244   : > { %6058 = vmatpush1.bf16.msra.mxu0 %v9307_v31  ;;  %v3919_v22 = vpop.f32.mrb[30].mxu0 }
 0x245   : > { %12984 = vst [vmem:[#allocation14_spill] sm:$0xff] %v11575_v35  ;;  %6059 = vmatprep.subr.bf16.mxu0 %v12926_v29  ;;  %v11581_v39 = vadd.f32 %v8892_v24, %v3919_v22  ;;  %v3921_v5 = vpop.f32.mrb[31].mxu0  ;;  %v11616_v35 = vld [vmem:[#allocation3 + $0x130] sm:$0xff] }
 0x247   : > { %12985 = vst [vmem:[#allocation21_spill] sm:$0xff] %v11581_v39 }
 0x248   : > { %6060 = vmatpush1.bf16.msra.mxu0 %v9308_v43 }
 0x249   : > { %6061 = vmatprep.subr.bf16.mxu0 %v12926_v29 }
 0x24a   : > { %8966 = vmatmul.mubr.bf16.gmra.mrb[132].mxu0 %v11586_v41  ;;  %4906 = vmatmul.mubr.bf16.gmra.mrb[176].mxu1 %v11218_v37  ;;  %v11594_v24 = vpop.f32.mrb[76].mxu1 }
 0x24b   : > { %8969 = vmatprep.mubr.bf16.mxu0 %v11590_v34  ;;  %4913 = vmatprep.mubr.bf16.mxu1 %v11213_v15  ;;  %v11597_v31 = vpop.f32.mrb[77].mxu1  ;;  %v9311_v15 = vld [vmem:[%s12856_s8 + $0x1c0] sm:$0xff]  }
 0x24c   : > { %6062 = vmatpush1.bf16.msra.mxu0 %v9309_v14  ;;  %v11602_v27 = vpop.f32.mrb[78].mxu1  ;;  %v11612_v14 = vld [vmem:[#allocation3 + $0x118] sm:$0xff] }
 0x24d   : > { %6063 = vmatprep.subr.bf16.mxu0 %v12926_v29  ;;  %v11605_v43 = vpop.f32.mrb[79].mxu1 }
 0x24e   : > { %v3924_v37 = vpop.f32.mrb[32].mxu0 }
 0x24f   : > { %v11607_v22 = vadd.f32 %v4181_v18, %v3924_v37  ;;  %v3926_v5 = vpop.f32.mrb[33].mxu0 }
 0x250   : > { %6064 = vmatpush1.bf16.msra.mxu0 %v9310_v3  ;;  %v3927_v39 = vpop.f32.mrb[34].mxu0  ;;  %v9312_v3 = vld [vmem:[%s12856_s8 + $0x1c8] sm:$0xff]  }
 0x251   : > { %12986 = vst [vmem:[#allocation19_spill] sm:$0xff] %v11607_v22  ;;  %6065 = vmatprep.subr.bf16.mxu0 %v12926_v29  ;;  %v11619_v62 = vadd.f32 %v11537_v63, %v3927_v39  ;;  %v3929_v18 = vpop.f32.mrb[35].mxu0 }
 0x252   : > { %8970 = vmatmul.mubr.bf16.gmra.mrb[136].mxu0 %v11612_v14  ;;  %4914 = vmatmul.mubr.bf16.gmra.mrb[180].mxu1 %v11238_v6  ;;  %v9313_v6 = vld [vmem:[%s12856_s8 + $0x1d0] sm:$0xff]   ;;  %v11643_v18 = vld [vmem:[#allocation3 + $0x160] sm:$0xff] }
 0x253   : > { %12987 = vst [vmem:[#allocation20_spill] sm:$0xff] %v11619_v62  ;;  %8973 = vmatprep.mubr.bf16.mxu0 %v11616_v35  ;;  %4921 = vmatprep.mubr.bf16.mxu1 %v11225_v60  ;;  %v11639_v60 = vld [vmem:[#allocation3 + $0x148] sm:$0xff] }
 0x254   : > { %6066 = vmatpush1.bf16.msra.mxu0 %v9311_v15 }
 0x255   : > { %6067 = vmatprep.subr.bf16.mxu0 %v12926_v29  ;;  %v11628_v37 = vpop.f32.mrb[80].mxu1 }
 0x256   : > { %v11630_v5 = vpop.f32.mrb[81].mxu1 }
 0x257   : > { %v11632_v63 = vpop.f32.mrb[82].mxu1 }
 0x258   : > { %6068 = vmatpush1.bf16.msra.mxu0 %v9312_v3  ;;  %v11637_v39 = vpop.f32.mrb[83].mxu1  ;;  %v3932_v15 = vpop.f32.mrb[36].mxu0 }
 0x259   : > { %6069 = vmatprep.subr.bf16.mxu0 %v12926_v29  ;;  %v11646_v62 = vadd.f32 %v11529_v50, %v3932_v15  ;;  %v3934_v22 = vpop.f32.mrb[37].mxu0 }
 0x25a   : > { %8974 = vmatmul.mubr.bf16.gmra.mrb[140].mxu0 %v11639_v60  ;;  %4922 = vmatmul.mubr.bf16.gmra.mrb[184].mxu1 %v11253_v9  ;;  %v3935_v3 = vpop.f32.mrb[38].mxu0  ;;  %v9316_v9 = vld [vmem:[%s12856_s8 + $0x1e0] sm:$0xff]  }
 0x25b   : > { %12988 = vst [vmem:[#allocation18_spill] sm:$0xff] %v11646_v62  ;;  %8977 = vmatprep.mubr.bf16.mxu0 %v11643_v18  ;;  %4929 = vmatprep.mubr.bf16.mxu1 %v11244_v58  ;;  %v11652_v19 = vadd.f32 %v11531_v36, %v3935_v3  ;;  %v3937_v54 = vpop.f32.mrb[39].mxu0  ;;  %v11663_v22 = vld [vmem:[#allocation3 + $0x178] sm:$0xff] }
 0x25c   : > { %6070 = vmatpush1.bf16.msra.mxu0 %v9313_v6  ;;  %v11669_v54 = vld [vmem:[#allocation3 + $0x190] sm:$0xff]  ;;  %v9319_v6 = vld [vmem:[%s12856_s8 + $0x1e8] sm:$0xff]  }
 0x25d   : > { %12989 = vst [vmem:[#allocation24_spill] sm:$0xff] %v11652_v19  ;;  %6071 = vmatprep.subr.bf16.mxu0 %v12926_v29 }
 0x260   : > { %6072 = vmatpush1.bf16.msra.mxu0 %v9314_v55  ;;  %v11661_v50 = vpop.f32.mrb[84].mxu1 }
 0x261   : > { %6073 = vmatprep.subr.bf16.mxu0 %v12926_v29  ;;  %v11666_v58 = vpop.f32.mrb[85].mxu1 }
 0x262   : > { %8978 = vmatmul.mubr.bf16.gmra.mrb[144].mxu0 %v11663_v22  ;;  %4930 = vmatmul.mubr.bf16.gmra.mrb[188].mxu1 %v11269_v4  ;;  %v11672_v36 = vpop.f32.mrb[86].mxu1 }
 0x263   : > { %8981 = vmatprep.mubr.bf16.mxu0 %v11669_v54  ;;  %4937 = vmatprep.mubr.bf16.mxu1 %v11260_v30  ;;  %v11676_v55 = vpop.f32.mrb[87].mxu1  ;;  %v9322_v30 = vld [vmem:[%s12856_s8 + $0x1f0] sm:$0xff]  }
 0x264   : > { %6074 = vmatpush1.bf16.msra.mxu0 %v9316_v9  ;;  %v3940_v15 = vpop.f32.mrb[40].mxu0  ;;  %v11691_v9 = vld [vmem:[#allocation3 + $0x1a8] sm:$0xff] }
 0x265   : > { %6075 = vmatprep.subr.bf16.mxu0 %v12926_v29  ;;  %v11683_v3 = vadd.f32 %v11562_v16, %v3940_v15  ;;  %v3942_v4 = vpop.f32.mrb[41].mxu0 }
 0x266   : > { %v3943_v19 = vpop.f32.mrb[42].mxu0 }
 0x267   : > { %12990 = vst [vmem:[#allocation22_spill] sm:$0xff] %v11683_v3  ;;  %v11686_v62 = vadd.f32 %v11572_v57, %v3943_v19  ;;  %v3945_v20 = vpop.f32.mrb[43].mxu0  ;;  %v9324_v19 = vld [vmem:[%s12856_s8 + $0x1f8] sm:$0xff]   ;;  %v11718_v3 = vld [vmem:[#allocation3 + $0x1d8] sm:$0xff] }
 0x268   : > { %6076 = vmatpush1.bf16.msra.mxu0 %v9319_v6 }
 0x269   : > { %12991 = vst [vmem:[#allocation25_spill] sm:$0xff] %v11686_v62  ;;  %6077 = vmatprep.subr.bf16.mxu0 %v12926_v29 }
 0x26a   : > { %8982 = vmatmul.mubr.bf16.gmra.mrb[148].mxu0 %v11691_v9  ;;  %4938 = vmatmul.mubr.bf16.gmra.mrb[192].mxu1 %v11277_v45  ;;  %v11700_v20 = vpop.f32.mrb[88].mxu1 }
 0x26b   : > { %8985 = vmatprep.mubr.bf16.mxu0 %v11695_v25  ;;  %4945 = vmatprep.mubr.bf16.mxu1 %v11264_v23  ;;  %v11705_v16 = vpop.f32.mrb[89].mxu1 }
 0x26c   : > { %6078 = vmatpush1.bf16.msra.mxu0 %v9322_v30  ;;  %v11708_v6 = vpop.f32.mrb[90].mxu1 }
 0x26d   : > { %v3948_v57 = vpop.f32.mrb[44].mxu0  ;;  %6079 = vmatprep.subr.bf16.mxu0 %v12926_v29  ;;  %v11713_v4 = vpop.f32.mrb[91].mxu1  ;;  %v11722_v29 = vld [vmem:[#allocation3 + $0x1f0] sm:$0xff] }
 0x26e   : > { %v11711_v45 = vadd.f32 %v11555_v7, %v3948_v57  ;;  %v3950_v15 = vpop.f32.mrb[45].mxu0 }
 0x26f   : > { %v3951_v23 = vpop.f32.mrb[46].mxu0 }
 0x270   : > { %12992 = vst [vmem:[#allocation23_spill] sm:$0xff] %v11711_v45  ;;  %v11716_v30 = vadd.f32 %v11568_v32, %v3951_v23  ;;  %v3953_v62 = vpop.f32.mrb[47].mxu0  ;;  %6080 = vmatpush1.bf16.msra.mxu0 %v9324_v19 }
 0x271   : > { %9009 = vmatprep.subr.bf16.mxu0 %v11430_v0 }
 0x272   : > { %12993 = vst [vmem:[#allocation28_spill] sm:$0xff] %v11716_v30  ;;  %8986 = vmatmul.mubr.bf16.gmra.mrb[152].mxu0 %v11718_v3  ;;  %4946 = vmatmul.mubr.bf16.gmra.mrb[196].mxu1 %v11289_v47 }
 0x273   : > { %8989 = vmatprep.mubr.bf16.mxu0 %v11722_v29  ;;  %4953 = vmatprep.mubr.bf16.mxu1 %v11284_v8  ;;  %v11744_v8 = vld [vmem:[#allocation3 + $0x220] sm:$0xff] }
 0x274   : > { %v11727_v7 = vpop.f32.mrb[92].mxu1  ;;  %12996 = vst [vmem:[#allocation27_spill] sm:$0xff] %v11744_v8 }
 0x275   : > { %v3956_v32 = vpop.f32.mrb[48].mxu0  ;;  %v11729_v57 = vpop.f32.mrb[93].mxu1 }
 0x276   : > { %v11732_v62 = vadd.f32 %v11597_v31, %v3956_v32  ;;  %v3958_v19 = vpop.f32.mrb[49].mxu0  ;;  %v11734_v15 = vpop.f32.mrb[94].mxu1 }
 0x277   : > { %v3959_v23 = vpop.f32.mrb[50].mxu0  ;;  %v11736_v30 = vpop.f32.mrb[95].mxu1 }
 0x278   : > { %12994 = vst [vmem:[#allocation26_spill] sm:$0xff] %v11732_v62  ;;  %v11739_v47 = vadd.f32 %v11605_v43, %v3959_v23  ;;  %v3961_v45 = vpop.f32.mrb[51].mxu0 }
 0x27a   : > { %12995 = vst [vmem:[#allocation29_spill] sm:$0xff] %v11739_v47  ;;  %8990 = vmatmul.mubr.bf16.gmra.mrb[156].mxu0 %v11741_v38  ;;  %4954 = vmatmul.mubr.bf16.gmra.mrb[200].mxu1 %v11306_v48 }
 0x27b   : > { %8993 = vmatprep.mubr.bf16.mxu0 %v11744_v8  ;;  %4961 = vmatprep.mubr.bf16.mxu1 %v11297_v12  ;;  %v11763_v8 = vld [vmem:[#allocation3 + $0x238] sm:$0xff]  ;;  %v11766_v12 = vld [vmem:[#allocation3 + $0x250] sm:$0xff] }
 0x27c   : > { %v11749_v31 = vpop.f32.mrb[96].mxu1  ;;  %12999 = vst [vmem:[#allocation32_spill] sm:$0xff] %v11763_v8  ;;  %13000 = vst [vmem:[#allocation33_spill] sm:$0xff] %v11766_v12 }
 0x27d   : > { %v3964_v32 = vpop.f32.mrb[52].mxu0  ;;  %v11751_v19 = vpop.f32.mrb[97].mxu1 }
 0x27e   : > { %v11754_v43 = vadd.f32 %v11594_v24, %v3964_v32  ;;  %v3966_v45 = vpop.f32.mrb[53].mxu0  ;;  %v11756_v23 = vpop.f32.mrb[98].mxu1 }
 0x27f   : > { %v3967_v47 = vpop.f32.mrb[54].mxu0  ;;  %v11758_v62 = vpop.f32.mrb[99].mxu1 }
 0x280   : > { %12997 = vst [vmem:[#allocation30_spill] sm:$0xff] %v11754_v43  ;;  %v11761_v48 = vadd.f32 %v11602_v27, %v3967_v47  ;;  %v3969_v13 = vpop.f32.mrb[55].mxu0 }
 0x282   : > { %12998 = vst [vmem:[#allocation31_spill] sm:$0xff] %v11761_v48  ;;  %8994 = vmatmul.mubr.bf16.gmra.mrb[160].mxu0 %v11763_v8  ;;  %4962 = vmatmul.mubr.bf16.gmra.mrb[204].mxu1 %v11320_v10  ;;  %v11785_v8 = vld [vmem:[#allocation3 + $0x268] sm:$0xff] }
 0x283   : > { %8997 = vmatprep.mubr.bf16.mxu0 %v11766_v12  ;;  %4969 = vmatprep.mubr.bf16.mxu1 %v11316_v33  ;;  %13003 = vst [vmem:[#allocation36_spill] sm:$0xff] %v11785_v8  ;;  %v11788_v33 = vld [vmem:[#allocation3 + $0x280] sm:$0xff] }
 0x284   : > { %v11771_v24 = vpop.f32.mrb[100].mxu1  ;;  %13004 = vst [vmem:[#allocation37_spill] sm:$0xff] %v11788_v33 }
 0x285   : > { %v3972_v32 = vpop.f32.mrb[56].mxu0  ;;  %v11773_v45 = vpop.f32.mrb[101].mxu1 }
 0x286   : > { %v11776_v27 = vadd.f32 %v11630_v5, %v3972_v32  ;;  %v3974_v13 = vpop.f32.mrb[57].mxu0  ;;  %v11778_v47 = vpop.f32.mrb[102].mxu1 }
 0x287   : > { %v3975_v48 = vpop.f32.mrb[58].mxu0  ;;  %v11780_v43 = vpop.f32.mrb[103].mxu1 }
 0x288   : > { %13001 = vst [vmem:[#allocation34_spill] sm:$0xff] %v11776_v27  ;;  %v11783_v10 = vadd.f32 %v11637_v39, %v3975_v48  ;;  %v3977_v12 = vpop.f32.mrb[59].mxu0 }
 0x28a   : > { %13002 = vst [vmem:[#allocation35_spill] sm:$0xff] %v11783_v10  ;;  %8998 = vmatmul.mubr.bf16.gmra.mrb[164].mxu0 %v11785_v8  ;;  %4970 = vmatmul.mubr.bf16.gmra.mrb[208].mxu1 %v11335_v49  ;;  %v11807_v8 = vld [vmem:[#allocation3 + $0x298] sm:$0xff] }
 0x28b   : > { %9001 = vmatprep.mubr.bf16.mxu0 %v11788_v33  ;;  %4977 = vmatprep.mubr.bf16.mxu1 %v11328_v59  ;;  %13010 = vst [vmem:[#allocation43_spill] sm:$0xff] %v11807_v8  ;;  %v11810_v59 = vld [vmem:[#allocation3 + $0x2b0] sm:$0xff] }
 0x28c   : > { %v11793_v5 = vpop.f32.mrb[104].mxu1  ;;  %13011 = vst [vmem:[#allocation44_spill] sm:$0xff] %v11810_v59 }
 0x28d   : > { %13005 = vst [vmem:[#allocation38_spill] sm:$0xff] %v11793_v5  ;;  %v3980_v32 = vpop.f32.mrb[60].mxu0  ;;  %v11795_v13 = vpop.f32.mrb[105].mxu1 }
 0x28e   : > { %v11798_v39 = vadd.f32 %v11628_v37, %v3980_v32  ;;  %v3982_v48 = vpop.f32.mrb[61].mxu0  ;;  %v11800_v12 = vpop.f32.mrb[106].mxu1  ;;  %v5428_v37 = vld [vmem:[#allocation3 + $0x50] sm:$0xf0]  ;;  %v5431_v32 = vld [vmem:[#allocation3 + $0x68] sm:$0xff] }
 0x28f   : > { %13007 = vst [vmem:[#allocation40_spill] sm:$0xff] %v11800_v12  ;;  %v3983_v10 = vpop.f32.mrb[62].mxu0  ;;  %v11802_v27 = vpop.f32.mrb[107].mxu1 }
 0x290   : > { %13006 = vst [vmem:[#allocation39_spill] sm:$0xff] %v11798_v39  ;;  %13008 = vst [vmem:[#allocation41_spill] sm:$0xff] %v11802_v27  ;;  %v11805_v49 = vadd.f32 %v11632_v63, %v3983_v10  ;;  %v3985_v33 = vpop.f32.mrb[63].mxu0 }
 0x291   : > { %v5653_v33 = vrot.slane %v5428_v37, 4  ;;  %v5434_v37 = vld [vmem:[#allocation3 + $0x80] sm:$0xff] }
 0x292   : > { %13009 = vst [vmem:[#allocation42_spill] sm:$0xff] %v11805_v49  ;;  %9002 = vmatmul.mubr.bf16.gmra.mrb[168].mxu0 %v11807_v8  ;;  %4978 = vmatmul.mubr.bf16.gmra.mrb[212].mxu1 %v11354_v2  ;;  %v5654_v49 = vrot.slane %v5431_v32, 4 }
 0x293   : > { %9005 = vmatprep.mubr.bf16.mxu0 %v11810_v59  ;;  %4985 = vmatprep.mubr.bf16.mxu1 %v11347_v46 }
 0x294   : > { %v5655_v46 = vsel %vm878_vm0, %v5653_v33, %v5654_v49  ;;  %v12894_v33 = vrot.slane %v11539_v40, 4 }
 0x295   : > { %v3988_v48 = vpop.f32.mrb[64].mxu0  ;;  %v11815_v39 = vpop.f32.mrb[108].mxu1 }
 0x296   : > { %v11818_v63 = vadd.f32 %v11666_v58, %v3988_v48  ;;  %v3990_v10 = vpop.f32.mrb[65].mxu0  ;;  %v11820_v8 = vpop.f32.mrb[109].mxu1  ;;  %v5427_v58 = vld [vmem:[#allocation3 + $0x48] sm:$0xf0]  ;;  %v5430_v48 = vld [vmem:[#allocation3 + $0x60] sm:$0xff] }
 0x297   : > { %v3991_v12 = vpop.f32.mrb[66].mxu0  ;;  %v11822_v5 = vpop.f32.mrb[110].mxu1  ;;  %v5650_v10 = vrot.slane %v5427_v58, 4 }
 0x298   : > { %13012 = vst [vmem:[#allocation45_spill] sm:$0xff] %v11818_v63  ;;  %13013 = vst [vmem:[#allocation46_spill] sm:$0xff] %v11822_v5  ;;  %v11825_v2 = vadd.f32 %v11676_v55, %v3991_v12  ;;  %v3993_v59 = vpop.f32.mrb[67].mxu0  ;;  %v11827_v27 = vpop.f32.mrb[111].mxu1  ;;  %v5651_v63 = vrot.slane %v5430_v48, 4 }
 0x29a   : > { %13014 = vst [vmem:[#allocation47_spill] sm:$0xff] %v11825_v2  ;;  %9006 = vmatmul.mubr.bf16.gmra.mrb[172].mxu0 %v11379_v52  ;;  %4986 = vmatmul.mubr.bf16.gmra.mrb[216].mxu1 %v11368_v26  ;;  %v5669_v2 = vrot.slane %v11542_v56, 4  ;;  %v5661_v26 = vrot.slane %v5434_v37, 4  ;;  %v5437_v37 = vld [vmem:[#allocation3 + $0x98] sm:$0xff] }
 0x29b   : > { %6081 = vmatprep.mubr.bf16.mxu0 %v5655_v46  ;;  %4993 = vmatprep.mubr.bf16.mxu1 %v11363_v11 }
 0x29c   : > { %v5662_v56 = vsel %vm878_vm0, %v5654_v49, %v5661_v26 }
 0x29d   : > { %v3996_v32 = vpop.f32.mrb[68].mxu0  ;;  %v11833_v55 = vpop.f32.mrb[112].mxu1 }
 0x29e   : > { %13015 = vst [vmem:[#allocation48_spill] sm:$0xff] %v11833_v55  ;;  %v11836_v12 = vadd.f32 %v11661_v50, %v3996_v32  ;;  %v3998_v59 = vpop.f32.mrb[69].mxu0  ;;  %v4781_v52 = vpop.f32.mrb[113].mxu1  ;;  %v5652_v55 = vsel %vm878_vm0, %v5650_v10, %v5651_v63  ;;  %v5433_v50 = vld [vmem:[#allocation3 + $0x78] sm:$0xff]  ;;  %v13016_v32 = vld [vmem:[#allocation5_spill] sm:$0xff] }
 0x29f   : > { %v3999_v5 = vpop.f32.mrb[70].mxu0  ;;  %v11840_v46 = vpop.f32.mrb[114].mxu1  ;;  %v5670_v59 = vsel %vm878_vm0, %v12894_v33, %v5669_v2 }
 0x2a0   : > { %v11843_v11 = vadd.f32 %v11672_v36, %v3999_v5  ;;  %v4001_v58 = vpop.f32.mrb[71].mxu0  ;;  %v4784_v48 = vpop.f32.mrb[115].mxu1  ;;  %v5659_v5 = vrot.slane %v5433_v50, 4 }
 0x2a1   : > { %v5667_v48 = vrot.slane %v5437_v37, 4 }
 0x2a2   : > { %6082 = vmatmul.mubr.bf16.vlgmr.msra.gmra.mrb[176].mxu0 %v5652_v55  ;;  %4994 = vmatmul.mubr.bf16.gmra.mrb[220].mxu1 %v13016_v32  ;;  %v5675_v55 = vrot.slane %v11560_v42, 4 }
 0x2a3   : > { %9010 = vmatpush3.bf16.msra.mxu0 %v11430_v0  ;;  %9029 = vmatprep.mubr.bf16.mxu1 %v5670_v59  ;;  %v5681_v0 = vrot.slane %v11566_v28, 4  ;;  %v5668_v37 = vsel %vm878_vm0, %v5661_v26, %v5667_v48  ;;  %v5436_v28 = vld [vmem:[#allocation3 + $0x90] sm:$0xff] }
 0x2a4   : > { %6089 = vmatprep.mubr.bf16.mxu0 %v5662_v56  ;;  %9011 = vmatprep.subr.bf16.mxu0 %v11440_v51 }
 0x2a5   : > { %v4004_v36 = vpop.f32.mrb[72].mxu0  ;;  %v11853_v10 = vpop.f32.mrb[116].mxu1 }
 0x2a6   : > { %v11857_v52 = vadd.f32 %v11705_v16, %v4004_v36  ;;  %v4006_v58 = vpop.f32.mrb[73].mxu0  ;;  %v4789_v32 = vpop.f32.mrb[117].mxu1  ;;  %v5660_v16 = vsel %vm878_vm0, %v5651_v63, %v5659_v5  ;;  %v5676_v36 = vsel %vm878_vm0, %v5669_v2, %v5675_v55  ;;  %v5687_v63 = vrot.slane %v11586_v41, 4 }
 0x2a7   : > { %v4007_v49 = vpop.f32.mrb[74].mxu0  ;;  %9012 = vmatpush3.bf16.msra.mxu0 %v11440_v51  ;;  %v11861_v59 = vpop.f32.mrb[118].mxu1  ;;  %v5682_v51 = vsel %vm878_vm0, %v5675_v55, %v5681_v0  ;;  %v5440_v58 = vld [vmem:[#allocation3 + $0xb0] sm:$0xff]  ;;  %v5665_v32 = vrot.slane %v5436_v28, 4  ;;  %v5693_v55 = vrot.slane %v11590_v34, 4  ;;  %v5439_v34 = vld [vmem:[#allocation3 + $0xa8] sm:$0xff] }
 0x2a8   : > { %v11864_v50 = vadd.f32 %v11713_v4, %v4007_v49  ;;  %v4009_v56 = vpop.f32.mrb[75].mxu0  ;;  %9013 = vmatprep.subr.bf16.mxu0 %v11450_v21  ;;  %v4792_v42 = vpop.f32.mrb[119].mxu1 }
 0x2a9   : > { %v5673_v56 = vrot.slane %v5440_v58, 4  ;;  %v5666_v41 = vsel %vm878_vm0, %v5659_v5, %v5665_v32  ;;  %v5694_v58 = vsel %vm878_vm0, %v5687_v63, %v5693_v55 }
 0x2aa   : > { %6090 = vmatmul.mubr.bf16.gmra.mrb[180].mxu0 %v5660_v16  ;;  %9030 = vmatmul.mubr.bf16.vlgmr.msra.gmra.mrb[224].mxu1 %v5676_v36 }
 0x2ab   : > { %6097 = vmatprep.mubr.bf16.mxu0 %v5668_v37  ;;  %9033 = vmatprep.mubr.bf16.mxu1 %v5682_v51  ;;  %v5674_v51 = vsel %vm878_vm0, %v5667_v48, %v5673_v56 }
 0x2ac   : > { %9014 = vmatpush3.bf16.msra.mxu0 %v11450_v21 }
 0x2ad   : > { %v4012_v4 = vpop.f32.mrb[76].mxu0  ;;  %9015 = vmatprep.subr.bf16.mxu0 %v11464_v61  ;;  %v11873_v49 = vpop.f32.mrb[120].mxu1 }
 0x2ae   : > { %v11877_v2 = vadd.f32 %v11700_v20, %v4012_v4  ;;  %v4014_v26 = vpop.f32.mrb[77].mxu0  ;;  %v4797_v42 = vpop.f32.mrb[121].mxu1  ;;  %v5688_v20 = vsel %vm878_vm0, %v5681_v0, %v5687_v63  ;;  %v5671_v4 = vrot.slane %v5439_v34, 4  ;;  %v5699_v0 = vrot.slane %v11612_v14, 4 }
 0x2af   : > { %v4015_v16 = vpop.f32.mrb[78].mxu0  ;;  %v11880_v36 = vpop.f32.mrb[122].mxu1  ;;  %v5705_v63 = vrot.slane %v11616_v35, 4  ;;  %v5442_v35 = vld [vmem:[#allocation3 + $0xc0] sm:$0xff] }
 0x2b0   : > { %v11883_v21 = vadd.f32 %v11708_v6, %v4015_v16  ;;  %v4017_v37 = vpop.f32.mrb[79].mxu0  ;;  %9016 = vmatpush3.bf16.msra.mxu0 %v11464_v61  ;;  %v4800_v28 = vpop.f32.mrb[123].mxu1  ;;  %v5443_v6 = vld [vmem:[#allocation3 + $0xc8] sm:$0xff]  ;;  %v5672_v14 = vsel %vm878_vm0, %v5665_v32, %v5671_v4 }
 0x2b1   : > { %9017 = vmatprep.subr.bf16.mxu0 %v11476_v17  ;;  %v5679_v42 = vrot.slane %v5443_v6, 4  ;;  %v5706_v34 = vsel %vm878_vm0, %v5699_v0, %v5705_v63 }
 0x2b2   : > { %6098 = vmatmul.mubr.bf16.gmra.mrb[184].mxu0 %v5666_v41  ;;  %9034 = vmatmul.mubr.bf16.gmra.mrb[228].mxu1 %v5688_v20 }
 0x2b3   : > { %6105 = vmatprep.mubr.bf16.mxu0 %v5674_v51  ;;  %9037 = vmatprep.mubr.bf16.mxu1 %v5694_v58  ;;  %v5680_v51 = vsel %vm878_vm0, %v5673_v56, %v5679_v42  ;;  %v5677_v58 = vrot.slane %v5442_v35, 4 }
 0x2b4   : > { %9018 = vmatpush3.bf16.msra.mxu0 %v11476_v17 }
 0x2b5   : > { %v4020_v61 = vpop.f32.mrb[80].mxu0  ;;  %9019 = vmatprep.subr.bf16.mxu0 %v11487_v44  ;;  %v11893_v5 = vpop.f32.mrb[124].mxu1 }
 0x2b6   : > { %v11897_v26 = vadd.f32 %v11729_v57, %v4020_v61  ;;  %v4022_v48 = vpop.f32.mrb[81].mxu0  ;;  %v4805_v16 = vpop.f32.mrb[125].mxu1  ;;  %v5700_v57 = vsel %vm878_vm0, %v5693_v55, %v5699_v0  ;;  %v5711_v55 = vrot.slane %v11639_v60, 4  ;;  %v5717_v0 = vrot.slane %v11643_v18, 4 }
 0x2b7   : > { %v4023_v37 = vpop.f32.mrb[82].mxu0  ;;  %v11900_v28 = vpop.f32.mrb[126].mxu1  ;;  %v5678_v60 = vsel %vm878_vm0, %v5671_v4, %v5677_v58 }
 0x2b8   : > { %v11903_v17 = vadd.f32 %v11736_v30, %v4023_v37  ;;  %v4025_v41 = vpop.f32.mrb[83].mxu0  ;;  %9020 = vmatpush3.bf16.msra.mxu0 %v11487_v44  ;;  %v4808_v20 = vpop.f32.mrb[127].mxu1  ;;  %v5446_v30 = vld [vmem:[#allocation3 + $0xe0] sm:$0xff]  ;;  %v5718_v18 = vsel %vm878_vm0, %v5711_v55, %v5717_v0 }
 0x2b9   : > { %9021 = vmatprep.subr.bf16.mxu0 %v11497_v53  ;;  %v5685_v61 = vrot.slane %v5446_v30, 4 }
 0x2ba   : > { %6106 = vmatmul.mubr.bf16.gmra.mrb[188].mxu0 %v5672_v14  ;;  %9038 = vmatmul.mubr.bf16.gmra.mrb[232].mxu1 %v5700_v57  ;;  %v5445_v57 = vld [vmem:[#allocation3 + $0xd8] sm:$0xff] }
 0x2bb   : > { %6113 = vmatprep.mubr.bf16.mxu0 %v5680_v51  ;;  %9041 = vmatprep.mubr.bf16.mxu1 %v5706_v34  ;;  %v5686_v14 = vsel %vm878_vm0, %v5679_v42, %v5685_v61  ;;  %v5449_v51 = vld [vmem:[#allocation3 + $0xf8] sm:$0xff]  ;;  %v5683_v35 = vrot.slane %v5445_v57, 4  ;;  %v5729_v42 = vrot.slane %v11669_v54, 4  ;;  %v5452_v54 = vld [vmem:[#allocation3 + $0x110] sm:$0xff] }
 0x2bc   : > { %9022 = vmatpush3.bf16.msra.mxu0 %v11497_v53  ;;  %v5691_v30 = vrot.slane %v5449_v51, 4  ;;  %v5697_v51 = vrot.slane %v5452_v54, 4 }
 0x2bd   : > { %v4028_v44 = vpop.f32.mrb[84].mxu0  ;;  %9023 = vmatprep.subr.bf16.mxu0 %v11509_v1  ;;  %v11913_v32 = vpop.f32.mrb[128].mxu1 }
 0x2be   : > { %v11917_v6 = vadd.f32 %v11727_v7, %v4028_v44  ;;  %v4030_v56 = vpop.f32.mrb[85].mxu0  ;;  %v4813_v48 = vpop.f32.mrb[129].mxu1  ;;  %v5712_v7 = vsel %vm878_vm0, %v5705_v63, %v5711_v55 }
 0x2bf   : > { %v4031_v16 = vpop.f32.mrb[86].mxu0  ;;  %v11920_v37 = vpop.f32.mrb[130].mxu1 }
 0x2c0   : > { %v11923_v53 = vadd.f32 %v11734_v15, %v4031_v16  ;;  %v4033_v41 = vpop.f32.mrb[87].mxu0  ;;  %9024 = vmatpush3.bf16.msra.mxu0 %v11509_v1  ;;  %v4816_v20 = vpop.f32.mrb[131].mxu1  ;;  %v5723_v1 = vrot.slane %v11663_v22, 4 }
 0x2c1   : > { %v5684_v20 = vsel %vm878_vm0, %v5677_v58, %v5683_v35 }
 0x2c2   : > { %6114 = vmatmul.mubr.bf16.gmra.mrb[192].mxu0 %v5678_v60  ;;  %9042 = vmatmul.mubr.bf16.gmra.mrb[236].mxu1 %v5712_v7  ;;  %v5724_v22 = vsel %vm878_vm0, %v5717_v0, %v5723_v1  ;;  %v5448_v60 = vld [vmem:[#allocation3 + $0xf0] sm:$0xff]  ;;  %v5730_v7 = vsel %vm878_vm0, %v5723_v1, %v5729_v42 }
 0x2c3   : > { %6121 = vmatprep.mubr.bf16.mxu0 %v5686_v14  ;;  %9045 = vmatprep.mubr.bf16.mxu1 %v5718_v18  ;;  %v5689_v57 = vrot.slane %v5448_v60, 4  ;;  %v5735_v18 = vrot.slane %v11691_v9, 4 }
 0x2c5   : > { %v4036_v15 = vpop.f32.mrb[88].mxu0  ;;  %v11930_v34 = vpop.f32.mrb[132].mxu1  ;;  %v5736_v9 = vsel %vm878_vm0, %v5729_v42, %v5735_v18 }
 0x2c6   : > { %v11934_v4 = vadd.f32 %v11751_v19, %v4036_v15  ;;  %v4038_v63 = vpop.f32.mrb[89].mxu0  ;;  %v4821_v44 = vpop.f32.mrb[133].mxu1  ;;  %v5692_v19 = vsel %vm878_vm0, %v5685_v61, %v5691_v30  ;;  %v5741_v61 = vrot.slane %v11695_v25, 4  ;;  %v5455_v25 = vld [vmem:[#allocation3 + $0x128] sm:$0xff] }
 0x2c7   : > { %v4039_v56 = vpop.f32.mrb[90].mxu0  ;;  %v11937_v48 = vpop.f32.mrb[134].mxu1  ;;  %v5703_v54 = vrot.slane %v5455_v25, 4 }
 0x2c8   : > { %v11940_v55 = vadd.f32 %v11758_v62, %v4039_v56  ;;  %v4041_v16 = vpop.f32.mrb[91].mxu0  ;;  %v4824_v41 = vpop.f32.mrb[135].mxu1 }
 0x2c9   : > { %v5690_v41 = vsel %vm878_vm0, %v5683_v35, %v5689_v57 }
 0x2ca   : > { %6122 = vmatmul.mubr.bf16.gmra.mrb[196].mxu0 %v5684_v20  ;;  %9046 = vmatmul.mubr.bf16.gmra.mrb[240].mxu1 %v5724_v22  ;;  %v5451_v20 = vld [vmem:[#allocation3 + $0x108] sm:$0xff]  ;;  %v5742_v22 = vsel %vm878_vm0, %v5735_v18, %v5741_v61 }
 0x2cb   : > { %6129 = vmatprep.mubr.bf16.mxu0 %v5692_v19  ;;  %9049 = vmatprep.mubr.bf16.mxu1 %v5730_v7  ;;  %v5695_v60 = vrot.slane %v5451_v20, 4  ;;  %v5747_v7 = vrot.slane %v11718_v3, 4 }
 0x2cd   : > { %v4044_v14 = vpop.f32.mrb[92].mxu0  ;;  %v11946_v62 = vpop.f32.mrb[136].mxu1  ;;  %v5748_v3 = vsel %vm878_vm0, %v5741_v61, %v5747_v7 }
 0x2ce   : > { %v11950_v58 = vadd.f32 %v11749_v31, %v4044_v14  ;;  %v4046_v0 = vpop.f32.mrb[93].mxu0  ;;  %v4829_v15 = vpop.f32.mrb[137].mxu1  ;;  %v5698_v31 = vsel %vm878_vm0, %v5691_v30, %v5697_v51  ;;  %v5753_v30 = vrot.slane %v11722_v29, 4  ;;  %v5458_v29 = vld [vmem:[#allocation3 + $0x140] sm:$0xff] }
 0x2cf   : > { %v4047_v63 = vpop.f32.mrb[94].mxu0  ;;  %v11953_v44 = vpop.f32.mrb[138].mxu1  ;;  %v5709_v25 = vrot.slane %v5458_v29, 4 }
 0x2d0   : > { %v11956_v1 = vadd.f32 %v11756_v23, %v4047_v63  ;;  %v4049_v56 = vpop.f32.mrb[95].mxu0  ;;  %v4832_v16 = vpop.f32.mrb[139].mxu1 }
 0x2d1   : > { %v5696_v16 = vsel %vm878_vm0, %v5689_v57, %v5695_v60 }
 0x2d2   : > { %6130 = vmatmul.mubr.bf16.gmra.mrb[200].mxu0 %v5690_v41  ;;  %9050 = vmatmul.mubr.bf16.gmra.mrb[244].mxu1 %v5736_v9  ;;  %v5454_v41 = vld [vmem:[#allocation3 + $0x120] sm:$0xff]  ;;  %v5754_v9 = vsel %vm878_vm0, %v5747_v7, %v5753_v30 }
 0x2d3   : > { %6137 = vmatprep.mubr.bf16.mxu0 %v5698_v31  ;;  %9053 = vmatprep.mubr.bf16.mxu1 %v5742_v22  ;;  %v5701_v20 = vrot.slane %v5454_v41, 4  ;;  %v5759_v22 = vrot.slane %v11741_v38, 4  ;;  %v5461_v41 = vld [vmem:[#allocation3 + $0x158] sm:$0xff] }
 0x2d5   : > { %v4052_v19 = vpop.f32.mrb[96].mxu0  ;;  %v11962_v23 = vpop.f32.mrb[140].mxu1  ;;  %v5760_v38 = vsel %vm878_vm0, %v5753_v30, %v5759_v22 }
 0x2d6   : > { %v11966_v35 = vadd.f32 %v11773_v45, %v4052_v19  ;;  %v4054_v42 = vpop.f32.mrb[97].mxu0  ;;  %v4837_v14 = vpop.f32.mrb[141].mxu1  ;;  %v5704_v45 = vsel %vm878_vm0, %v5697_v51, %v5703_v54  ;;  %v13019_v51 = vld [vmem:[#allocation27_spill] sm:$0xff] }
 0x2d7   : > { %v4055_v0 = vpop.f32.mrb[98].mxu0  ;;  %v11969_v15 = vpop.f32.mrb[142].mxu1  ;;  %v5765_v42 = vrot.slane %v13019_v51, 4 }
 0x2d8   : > { %13017 = vst [vmem:[#allocation5_spill] sm:$0xff] %v11966_v35  ;;  %v11972_v18 = vadd.f32 %v11780_v43, %v4055_v0  ;;  %v4057_v63 = vpop.f32.mrb[99].mxu0  ;;  %v4840_v56 = vpop.f32.mrb[143].mxu1 }
 0x2da   : > { %13018 = vst [vmem:[#allocation49_spill] sm:$0xff] %v11972_v18  ;;  %6138 = vmatmul.mubr.bf16.gmra.mrb[204].mxu0 %v5696_v16  ;;  %9054 = vmatmul.mubr.bf16.gmra.mrb[248].mxu1 %v5748_v3  ;;  %v5702_v16 = vsel %vm878_vm0, %v5695_v60, %v5701_v20  ;;  %v5457_v3 = vld [vmem:[#allocation3 + $0x138] sm:$0xff] }
 0x2db   : > { %6145 = vmatprep.mubr.bf16.mxu0 %v5704_v45  ;;  %9057 = vmatprep.mubr.bf16.mxu1 %v5754_v9  ;;  %v5766_v45 = vsel %vm878_vm0, %v5759_v22, %v5765_v42  ;;  %v5707_v29 = vrot.slane %v5457_v3, 4  ;;  %v13024_v22 = vld [vmem:[#allocation41_spill] sm:$0xff] }
 0x2dd   : > { %v4060_v31 = vpop.f32.mrb[100].mxu0  ;;  %v11978_v43 = vpop.f32.mrb[144].mxu1  ;;  %v5708_v3 = vsel %vm878_vm0, %v5701_v20, %v5707_v29 }
 0x2de   : > { %v11982_v57 = vadd.f32 %v11771_v24, %v4060_v31  ;;  %v4062_v61 = vpop.f32.mrb[101].mxu0  ;;  %v4845_v19 = vpop.f32.mrb[145].mxu1  ;;  %v5710_v24 = vsel %vm878_vm0, %v5703_v54, %v5709_v25  ;;  %v13023_v54 = vld [vmem:[#allocation33_spill] sm:$0xff] }
 0x2df   : > { %v4063_v14 = vpop.f32.mrb[102].mxu0  ;;  %v11985_v0 = vpop.f32.mrb[146].mxu1  ;;  %v5715_v19 = vrot.slane %v5461_v41, 4 }
 0x2e0   : > { %v11988_v7 = vadd.f32 %v11778_v47, %v4063_v14  ;;  %v4065_v63 = vpop.f32.mrb[103].mxu0  ;;  %v4848_v56 = vpop.f32.mrb[147].mxu1  ;;  %v13021_v47 = vld [vmem:[#allocation32_spill] sm:$0xff]  ;;  %v5777_v14 = vrot.slane %v13023_v54, 4 }
 0x2e1   : > { %v5771_v31 = vrot.slane %v13021_v47, 4  ;;  %v5464_v47 = vld [vmem:[#allocation3 + $0x170] sm:$0xff]  ;;  %v13026_v54 = vld [vmem:[#allocation36_spill] sm:$0xff] }
 0x2e2   : > { %13020 = vst [vmem:[#allocation27_spill] sm:$0xff] %v11988_v7  ;;  %6146 = vmatmul.mubr.bf16.gmra.mrb[208].mxu0 %v5702_v16  ;;  %9058 = vmatmul.mubr.bf16.gmra.mrb[252].mxu1 %v5760_v38  ;;  %v13042_v7 = vld [vmem:[#allocation9_spill] sm:$0xff] }
 0x2e3   : > { %6153 = vmatprep.mubr.bf16.mxu0 %v5710_v24  ;;  %9061 = vmatprep.mubr.bf16.mxu1 %v5766_v45  ;;  %v5772_v45 = vsel %vm878_vm0, %v5765_v42, %v5771_v31  ;;  %v5778_v41 = vsel %vm878_vm0, %v5771_v31, %v5777_v14  ;;  %v13030_v31 = vld [vmem:[#allocation40_spill] sm:$0xff] }
 0x2e5   : > { %v4068_v9 = vpop.f32.mrb[104].mxu0  ;;  %v11995_v61 = vpop.f32.mrb[148].mxu1 }
 0x2e6   : > { %v11998_v60 = vadd.f32 %v11795_v13, %v4068_v9  ;;  %v4070_v30 = vpop.f32.mrb[105].mxu0  ;;  %v4853_v51 = vpop.f32.mrb[149].mxu1  ;;  %v5716_v13 = vsel %vm878_vm0, %v5709_v25, %v5715_v19  ;;  %v5460_v9 = vld [vmem:[#allocation3 + $0x150] sm:$0xff]  ;;  %v13029_v25 = vld [vmem:[#allocation37_spill] sm:$0xff] }
 0x2e7   : > { %v4071_v63 = vpop.f32.mrb[106].mxu0  ;;  %v12001_v56 = vpop.f32.mrb[150].mxu1  ;;  %v5713_v51 = vrot.slane %v5460_v9, 4  ;;  %v5789_v33 = vrot.slane %v13029_v25, 4 }
 0x2e8   : > { %13022 = vst [vmem:[#allocation32_spill] sm:$0xff] %v11998_v60  ;;  %v12004_v16 = vadd.f32 %v13024_v22, %v4071_v63  ;;  %v4073_v38 = vpop.f32.mrb[107].mxu0  ;;  %v4856_v24 = vpop.f32.mrb[151].mxu1  ;;  %v5783_v63 = vrot.slane %v13026_v54, 4 }
 0x2e9   : > { %v13027_v38 = vld [vmem:[#allocation38_spill] sm:$0xff]  ;;  %v5721_v24 = vrot.slane %v5464_v47, 4  ;;  %v5714_v54 = vsel %vm878_vm0, %v5707_v29, %v5713_v51 }
 0x2ea   : > { %13025 = vst [vmem:[#allocation33_spill] sm:$0xff] %v12004_v16  ;;  %6154 = vmatmul.mubr.bf16.gmra.mrb[212].mxu0 %v5708_v3  ;;  %9062 = vmatmul.mubr.bf16.gmra.mrb[0].mxu1 %v5772_v45  ;;  %v5784_v16 = vsel %vm878_vm0, %v5777_v14, %v5783_v63  ;;  %v5790_v47 = vsel %vm878_vm0, %v5783_v63, %v5789_v33 }
 0x2eb   : > { %6161 = vmatprep.mubr.bf16.mxu0 %v5716_v13  ;;  %9065 = vmatprep.mubr.bf16.mxu1 %v5778_v41 }
 0x2ed   : > { %v4076_v30 = vpop.f32.mrb[108].mxu0  ;;  %v12011_v22 = vpop.f32.mrb[152].mxu1 }
 0x2ee   : > { %v12014_v20 = vadd.f32 %v13027_v38, %v4076_v30  ;;  %v4078_v42 = vpop.f32.mrb[109].mxu0  ;;  %v4861_v3 = vpop.f32.mrb[153].mxu1  ;;  %v5722_v30 = vsel %vm878_vm0, %v5715_v19, %v5721_v24  ;;  %v5463_v38 = vld [vmem:[#allocation3 + $0x168] sm:$0xff]  ;;  %v13034_v19 = vld [vmem:[#allocation44_spill] sm:$0xff] }
 0x2ef   : > { %v4079_v45 = vpop.f32.mrb[110].mxu0  ;;  %v12017_v40 = vpop.f32.mrb[154].mxu1  ;;  %v5467_v42 = vld [vmem:[#allocation3 + $0x188] sm:$0xff]  ;;  %v5719_v25 = vrot.slane %v5463_v38, 4 }
 0x2f0   : > { %13028 = vst [vmem:[#allocation41_spill] sm:$0xff] %v12014_v20  ;;  %v12020_v13 = vadd.f32 %v13030_v31, %v4079_v45  ;;  %v4081_v41 = vpop.f32.mrb[111].mxu0  ;;  %v4864_v9 = vpop.f32.mrb[155].mxu1  ;;  %v13032_v45 = vld [vmem:[#allocation43_spill] sm:$0xff] }
 0x2f1   : > { %v5795_v31 = vrot.slane %v13032_v45, 4  ;;  %v5727_v9 = vrot.slane %v5467_v42, 4 }
 0x2f2   : > { %13031 = vst [vmem:[#allocation36_spill] sm:$0xff] %v12020_v13  ;;  %6162 = vmatmul.mubr.bf16.gmra.mrb[216].mxu0 %v5714_v54  ;;  %9066 = vmatmul.mubr.bf16.gmra.mrb[4].mxu1 %v5784_v16  ;;  %v5801_v13 = vrot.slane %v13034_v19, 4 }
 0x2f3   : > { %6169 = vmatprep.mubr.bf16.mxu0 %v5722_v30  ;;  %9069 = vmatprep.mubr.bf16.mxu1 %v5790_v47  ;;  %v5720_v47 = vsel %vm878_vm0, %v5713_v51, %v5719_v25  ;;  %v5796_v45 = vsel %vm878_vm0, %v5789_v33, %v5795_v31  ;;  %v9337_v33 = vld [vmem:[#allocation3 + $0x2c8] sm:$0xff] }
 0x2f4   : > { %v5802_v42 = vsel %vm878_vm0, %v5795_v31, %v5801_v13  ;;  %v13037_v31 = vld [vmem:[#allocation46_spill] sm:$0xff] }
 0x2f5   : > { %v4084_v3 = vpop.f32.mrb[112].mxu0  ;;  %v12027_v41 = vpop.f32.mrb[156].mxu1 }
 0x2f6   : > { %v12030_v29 = vadd.f32 %v11820_v8, %v4084_v3  ;;  %v4086_v14 = vpop.f32.mrb[113].mxu0  ;;  %v4869_v54 = vpop.f32.mrb[157].mxu1  ;;  %v5728_v8 = vsel %vm878_vm0, %v5721_v24, %v5727_v9  ;;  %v5466_v3 = vld [vmem:[#allocation3 + $0x180] sm:$0xff] }
 0x2f7   : > { %v4087_v16 = vpop.f32.mrb[114].mxu0  ;;  %v12033_v60 = vpop.f32.mrb[158].mxu1  ;;  %v5470_v14 = vld [vmem:[#allocation3 + $0x1a0] sm:$0xff]  ;;  %v5725_v19 = vrot.slane %v5466_v3, 4 }
 0x2f8   : > { %13033 = vst [vmem:[#allocation38_spill] sm:$0xff] %v12030_v29  ;;  %v12036_v63 = vadd.f32 %v11827_v27, %v4087_v16  ;;  %v4089_v30 = vpop.f32.mrb[115].mxu0  ;;  %v4872_v38 = vpop.f32.mrb[159].mxu1  ;;  %v9338_v24 = vld [vmem:[#allocation3 + $0x2e0] sm:$0xff] }
 0x2f9   : > { %v5733_v30 = vrot.slane %v5470_v14, 4  ;;  %v5807_v38 = vrot.slane %v9337_v33, 4  ;;  %v5726_v20 = vsel %vm878_vm0, %v5719_v25, %v5725_v19  ;;  %v5473_v33 = vld [vmem:[#allocation3 + $0x1b8] sm:$0xff] }
 0x2fa   : > { %13035 = vst [vmem:[#allocation37_spill] sm:$0xff] %v12036_v63  ;;  %6170 = vmatmul.mubr.bf16.gmra.mrb[220].mxu0 %v5720_v47  ;;  %9070 = vmatmul.mubr.bf16.gmra.mrb[8].mxu1 %v5796_v45  ;;  %v5813_v63 = vrot.slane %v9338_v24, 4 }
 0x2fb   : > { %6177 = vmatprep.mubr.bf16.mxu0 %v5728_v8  ;;  %9073 = vmatprep.mubr.bf16.mxu1 %v5802_v42  ;;  %v5734_v14 = vsel %vm878_vm0, %v5727_v9, %v5733_v30 }
 0x2fd   : > { %v4092_v54 = vpop.f32.mrb[116].mxu0  ;;  %v12042_v27 = vpop.f32.mrb[160].mxu1 }
 0x2fe   : > { %v12045_v16 = vadd.f32 %v11815_v39, %v4092_v54  ;;  %v4094_v51 = vpop.f32.mrb[117].mxu0  ;;  %v4877_v47 = vpop.f32.mrb[161].mxu1  ;;  %v5808_v39 = vsel %vm878_vm0, %v5801_v13, %v5807_v38  ;;  %v5469_v54 = vld [vmem:[#allocation3 + $0x198] sm:$0xff] }
 0x2ff   : > { %v4095_v45 = vpop.f32.mrb[118].mxu0  ;;  %v12047_v29 = vpop.f32.mrb[162].mxu1  ;;  %v5814_v51 = vsel %vm878_vm0, %v5807_v38, %v5813_v63  ;;  %v5513_v47 = vld [vmem:[#allocation3 + $0x2f8] sm:$0xf] }
 0x300   : > { %13036 = vst [vmem:[#allocation40_spill] sm:$0xff] %v12045_v16  ;;  %v12050_v8 = vadd.f32 %v13037_v31, %v4095_v45  ;;  %v4097_v42 = vpop.f32.mrb[119].mxu0  ;;  %v4880_v3 = vpop.f32.mrb[163].mxu1  ;;  %v5731_v45 = vrot.slane %v5469_v54, 4  ;;  %v5819_v16 = vrot.slane %v5513_v47, 4  ;;  %v13040_v38 = vld [vmem:[#allocation8_spill] sm:$0xff] }
 0x301   : > { %v5739_v3 = vrot.slane %v5473_v33, 4 }
 0x302   : > { %13038 = vst [vmem:[#allocation43_spill] sm:$0xff] %v12050_v8  ;;  %6178 = vmatmul.mubr.bf16.gmra.mrb[224].mxu0 %v5726_v20  ;;  %9074 = vmatmul.mubr.bf16.gmra.mrb[12].mxu1 %v5808_v39  ;;  %v13039_v20 = vld [vmem:[#allocation48_spill] sm:$0xff]  ;;  %v5732_v33 = vsel %vm878_vm0, %v5725_v19, %v5731_v45 }
 0x303   : > { %6185 = vmatprep.mubr.bf16.mxu0 %v5734_v14  ;;  %9077 = vmatprep.mubr.bf16.mxu1 %v5814_v51 }
 0x305   : > { %v8955_v24 = vpop.f32.mrb[120].mxu0  ;;  %v12056_v31 = vpop.f32.mrb[164].mxu1 }
 0x306   : > { %v5045_v42 = vadd.f32 %v8955_v24, %v11853_v10  ;;  %v5036_v25 = vpop.f32.mrb[121].mxu0  ;;  %v4885_v13 = vpop.f32.mrb[165].mxu1  ;;  %v5820_v24 = vsel %vm878_vm0, %v5813_v63, %v5819_v16 }
 0x307   : > { %v5037_v8 = vadd.f32 %v5036_v25, %v13039_v20  ;;  %v8956_v9 = vpop.f32.mrb[122].mxu0  ;;  %v12060_v39 = vpop.f32.mrb[166].mxu1  ;;  %v13044_v25 = vld [vmem:[#allocation6_spill] sm:$0xff]  ;;  %v5472_v13 = vld [vmem:[#allocation3 + $0x1b0] sm:$0xff] }
 0x308   : > { %v12063_v14 = vadd.f32 %v5045_v42, %v13040_v38  ;;  %v5048_v51 = vadd.f32 %v8956_v9, %v11861_v59  ;;  %v5039_v18 = vpop.f32.mrb[123].mxu0  ;;  %v4888_v54 = vpop.f32.mrb[167].mxu1  ;;  %v5740_v42 = vsel %vm878_vm0, %v5733_v30, %v5739_v3  ;;  %v13046_v59 = vld [vmem:[#allocation7_spill] sm:$0xff]  ;;  %v5737_v9 = vrot.slane %v5472_v13, 4 }
 0x309   : > { %v12067_v35 = vadd.f32 %v5037_v8, %v13042_v7  ;;  %v5040_v10 = vadd.f32 %v5039_v18, %v11840_v46  ;;  %v5476_v7 = vld [vmem:[#allocation3 + $0x1d0] sm:$0xff]  ;;  %v13048_v54 = vld [vmem:[#allocation12_spill] sm:$0xff] }
 0x30a   : > { %13041 = vst [vmem:[#allocation44_spill] sm:$0xff] %v12063_v14  ;;  %v12073_v47 = vadd.f32 %v5048_v51, %v13044_v25  ;;  %6186 = vmatmul.mubr.bf16.gmra.mrb[228].mxu0 %v5732_v33  ;;  %9078 = vmatmul.mubr.bf16.gmra.mrb[16].mxu1 %v5820_v24  ;;  %v5745_v19 = vrot.slane %v5476_v7, 4  ;;  %v13050_v7 = vld [vmem:[#allocation10_spill] sm:$0xff] }
 0x30b   : > { %13043 = vst [vmem:[#allocation46_spill] sm:$0xff] %v12067_v35  ;;  %v12077_v20 = vadd.f32 %v5040_v10, %v13046_v59  ;;  %6193 = vmatprep.mubr.bf16.mxu0 %v5740_v42  ;;  %v13049_v42 = vld [vmem:[#allocation13_spill] sm:$0xff]  ;;  %v5738_v59 = vsel %vm878_vm0, %v5731_v45, %v5737_v9 }
 0x30c   : > { %13045 = vst [vmem:[#allocation48_spill] sm:$0xff] %v12073_v47 }
 0x30d   : > { %13047 = vst [vmem:[#allocation8_spill] sm:$0xff] %v12077_v20  ;;  %v8959_v8 = vpop.f32.mrb[124].mxu0  ;;  %v12079_v46 = vpop.f32.mrb[168].mxu1 }
 0x30e   : > { %v5061_v18 = vadd.f32 %v8959_v8, %v11893_v5  ;;  %v5052_v63 = vpop.f32.mrb[125].mxu0  ;;  %v4893_v16 = vpop.f32.mrb[169].mxu1 }
 0x30f   : > { %v5053_v38 = vadd.f32 %v5052_v63, %v11873_v49  ;;  %v8960_v51 = vpop.f32.mrb[126].mxu0  ;;  %v12083_v30 = vpop.f32.mrb[170].mxu1  ;;  %v5746_v49 = vsel %vm878_vm0, %v5739_v3, %v5745_v19  ;;  %v5475_v63 = vld [vmem:[#allocation3 + $0x1c8] sm:$0xff] }
 0x310   : > { %v12086_v33 = vadd.f32 %v5061_v18, %v13048_v54  ;;  %v5064_v10 = vadd.f32 %v8960_v51, %v11900_v28  ;;  %v5055_v24 = vpop.f32.mrb[127].mxu0  ;;  %v4896_v25 = vpop.f32.mrb[171].mxu1  ;;  %v13051_v18 = vld [vmem:[#allocation11_spill] sm:$0xff]  ;;  %v5479_v28 = vld [vmem:[#allocation3 + $0x1e8] sm:$0xff]  ;;  %v5743_v54 = vrot.slane %v5475_v63, 4 }
 0x311   : > { %v12090_v13 = vadd.f32 %v5053_v38, %v13049_v42  ;;  %v5056_v5 = vadd.f32 %v5055_v24, %v11880_v36  ;;  %v5751_v45 = vrot.slane %v5479_v28, 4  ;;  %v13052_v3 = vld [vmem:[#allocation14_spill] sm:$0xff]  ;;  %v13053_v63 = vld [vmem:[#allocation15_spill] sm:$0xff] }
 0x312   : > { %v12095_v8 = vadd.f32 %v5064_v10, %v13050_v7  ;;  %6194 = vmatmul.mubr.bf16.gmra.mrb[232].mxu0 %v5738_v59  ;;  %v5744_v28 = vsel %vm878_vm0, %v5737_v9, %v5743_v54 }
 0x313   : > { %v12099_v16 = vadd.f32 %v5056_v5, %v13051_v18  ;;  %6201 = vmatprep.mubr.bf16.mxu0 %v5746_v49 }
 0x315   : > { %v8963_v51 = vpop.f32.mrb[128].mxu0  ;;  %v12101_v38 = vpop.f32.mrb[172].mxu1 }
 0x316   : > { %v5077_v36 = vadd.f32 %v8963_v51, %v11930_v34  ;;  %v5068_v24 = vpop.f32.mrb[129].mxu0  ;;  %v4901_v25 = vpop.f32.mrb[173].mxu1  ;;  %v13054_v51 = vld [vmem:[#allocation21_spill] sm:$0xff] }
 0x317   : > { %v5069_v10 = vadd.f32 %v5068_v24, %v11913_v32  ;;  %v8964_v42 = vpop.f32.mrb[130].mxu0  ;;  %v12105_v59 = vpop.f32.mrb[174].mxu1  ;;  %v5752_v32 = vsel %vm878_vm0, %v5745_v19, %v5751_v45  ;;  %v5478_v24 = vld [vmem:[#allocation3 + $0x1e0] sm:$0xff]  ;;  %v13056_v19 = vld [vmem:[#allocation18_spill] sm:$0xff] }
 0x318   : > { %v12108_v7 = vadd.f32 %v5077_v36, %v13052_v3  ;;  %v5080_v5 = vadd.f32 %v8964_v42, %v11937_v48  ;;  %v5071_v49 = vpop.f32.mrb[131].mxu0  ;;  %v4904_v18 = vpop.f32.mrb[175].mxu1  ;;  %v13055_v36 = vld [vmem:[#allocation16_spill] sm:$0xff]  ;;  %v5482_v48 = vld [vmem:[#allocation3 + $0x200] sm:$0xff] }
 0x319   : > { %v12112_v20 = vadd.f32 %v5069_v10, %v13053_v63  ;;  %v5072_v34 = vadd.f32 %v5071_v49, %v11920_v37  ;;  %v5749_v18 = vrot.slane %v5478_v24, 4  ;;  %v5757_v9 = vrot.slane %v5482_v48, 4  ;;  %v13057_v24 = vld [vmem:[#allocation19_spill] sm:$0xff] }
 0x31a   : > { %v12117_v25 = vadd.f32 %v5080_v5, %v13054_v51  ;;  %6202 = vmatmul.mubr.bf16.gmra.mrb[236].mxu0 %v5744_v28 }
 0x31b   : > { %v12121_v3 = vadd.f32 %v5072_v34, %v13055_v36  ;;  %6209 = vmatprep.mubr.bf16.mxu0 %v5752_v32  ;;  %v5750_v48 = vsel %vm878_vm0, %v5743_v54, %v5749_v18 }
 0x31d   : > { %v8967_v42 = vpop.f32.mrb[132].mxu0  ;;  %v12123_v10 = vpop.f32.mrb[176].mxu1 }
 0x31e   : > { %v5093_v37 = vadd.f32 %v8967_v42, %v11962_v23  ;;  %v5084_v49 = vpop.f32.mrb[133].mxu0  ;;  %v4909_v63 = vpop.f32.mrb[177].mxu1  ;;  %v13058_v42 = vld [vmem:[#allocation24_spill] sm:$0xff] }
 0x31f   : > { %v5085_v5 = vadd.f32 %v5084_v49, %v11946_v62  ;;  %v8968_v28 = vpop.f32.mrb[134].mxu0  ;;  %v12127_v51 = vpop.f32.mrb[178].mxu1  ;;  %v5758_v62 = vsel %vm878_vm0, %v5751_v45, %v5757_v9  ;;  %v5481_v49 = vld [vmem:[#allocation3 + $0x1f8] sm:$0xff]  ;;  %v13061_v45 = vld [vmem:[#allocation23_spill] sm:$0xff] }
 0x320   : > { %v12130_v47 = vadd.f32 %v5093_v37, %v13056_v19  ;;  %v5096_v34 = vadd.f32 %v8968_v28, %v11969_v15  ;;  %v5087_v32 = vpop.f32.mrb[135].mxu0  ;;  %v4912_v36 = vpop.f32.mrb[179].mxu1  ;;  %v13060_v37 = vld [vmem:[#allocation20_spill] sm:$0xff] }
 0x321   : > { %v12134_v35 = vadd.f32 %v5085_v5, %v13057_v24  ;;  %v5088_v23 = vadd.f32 %v5087_v32, %v11953_v44  ;;  %v5485_v15 = vld [vmem:[#allocation3 + $0x218] sm:$0xff]  ;;  %v5755_v36 = vrot.slane %v5481_v49, 4  ;;  %v13063_v49 = vld [vmem:[#allocation22_spill] sm:$0xff] }
 0x322   : > { %v12139_v63 = vadd.f32 %v5096_v34, %v13058_v42  ;;  %6210 = vmatmul.mubr.bf16.gmra.mrb[240].mxu0 %v5750_v48  ;;  %v5763_v54 = vrot.slane %v5485_v15, 4 }
 0x323   : > { %v12143_v19 = vadd.f32 %v5088_v23, %v13060_v37  ;;  %6217 = vmatprep.mubr.bf16.mxu0 %v5758_v62  ;;  %v5756_v15 = vsel %vm878_vm0, %v5749_v18, %v5755_v36 }
 0x324   : > { %13059 = vst [vmem:[#allocation9_spill] sm:$0xff] %v12139_v63 }
 0x325   : > { %v8971_v28 = vpop.f32.mrb[136].mxu0  ;;  %v12145_v5 = vpop.f32.mrb[180].mxu1 }
 0x326   : > { %v5109_v44 = vadd.f32 %v8971_v28, %v11995_v61  ;;  %v5100_v32 = vpop.f32.mrb[137].mxu0  ;;  %v4917_v24 = vpop.f32.mrb[181].mxu1  ;;  %v13064_v28 = vld [vmem:[#allocation28_spill] sm:$0xff] }
 0x327   : > { %v5101_v34 = vadd.f32 %v5100_v32, %v11978_v43  ;;  %v8972_v48 = vpop.f32.mrb[138].mxu0  ;;  %v12149_v42 = vpop.f32.mrb[182].mxu1  ;;  %v5764_v43 = vsel %vm878_vm0, %v5757_v9, %v5763_v54  ;;  %v5484_v32 = vld [vmem:[#allocation3 + $0x210] sm:$0xff]  ;;  %v13067_v9 = vld [vmem:[#allocation30_spill] sm:$0xff] }
 0x328   : > { %v12152_v14 = vadd.f32 %v5109_v44, %v13061_v45  ;;  %v5112_v23 = vadd.f32 %v8972_v48, %v12001_v56  ;;  %v5103_v62 = vpop.f32.mrb[139].mxu0  ;;  %v4920_v37 = vpop.f32.mrb[183].mxu1  ;;  %v13066_v44 = vld [vmem:[#allocation25_spill] sm:$0xff]  ;;  %v5488_v56 = vld [vmem:[#allocation3 + $0x230] sm:$0xff] }
 0x329   : > { %v12156_v63 = vadd.f32 %v5101_v34, %v13063_v49  ;;  %v5104_v61 = vadd.f32 %v5103_v62, %v11985_v0  ;;  %v5761_v37 = vrot.slane %v5484_v32, 4  ;;  %v5769_v18 = vrot.slane %v5488_v56, 4  ;;  %v13069_v32 = vld [vmem:[#allocation26_spill] sm:$0xff] }
 0x32a   : > { %13062 = vst [vmem:[#allocation6_spill] sm:$0xff] %v12152_v14  ;;  %v12161_v24 = vadd.f32 %v5112_v23, %v13064_v28  ;;  %6218 = vmatmul.mubr.bf16.gmra.mrb[244].mxu0 %v5756_v15 }
 0x32b   : > { %v12165_v45 = vadd.f32 %v5104_v61, %v13066_v44  ;;  %6225 = vmatprep.mubr.bf16.mxu0 %v5764_v43  ;;  %v5762_v56 = vsel %vm878_vm0, %v5755_v36, %v5761_v37 }
 0x32c   : > { %13065 = vst [vmem:[#allocation7_spill] sm:$0xff] %v12161_v24 }
 0x32d   : > { %v8975_v48 = vpop.f32.mrb[140].mxu0  ;;  %v12167_v34 = vpop.f32.mrb[184].mxu1 }
 0x32e   : > { %v5125_v0 = vadd.f32 %v8975_v48, %v12027_v41  ;;  %v5116_v62 = vpop.f32.mrb[141].mxu0  ;;  %v4925_v49 = vpop.f32.mrb[185].mxu1  ;;  %v13070_v48 = vld [vmem:[#allocation31_spill] sm:$0xff] }
 0x32f   : > { %v5117_v23 = vadd.f32 %v5116_v62, %v12011_v22  ;;  %v8976_v15 = vpop.f32.mrb[142].mxu0  ;;  %v12171_v28 = vpop.f32.mrb[186].mxu1  ;;  %v5770_v22 = vsel %vm878_vm0, %v5763_v54, %v5769_v18  ;;  %v5487_v62 = vld [vmem:[#allocation3 + $0x228] sm:$0xff]  ;;  %v13073_v54 = vld [vmem:[#allocation39_spill] sm:$0xff] }
 0x330   : > { %v12174_v24 = vadd.f32 %v5125_v0, %v13067_v9  ;;  %v5128_v61 = vadd.f32 %v8976_v15, %v12033_v60  ;;  %v5119_v43 = vpop.f32.mrb[143].mxu0  ;;  %v4928_v44 = vpop.f32.mrb[187].mxu1  ;;  %v13072_v0 = vld [vmem:[#allocation29_spill] sm:$0xff]  ;;  %v5491_v60 = vld [vmem:[#allocation3 + $0x248] sm:$0xff] }
 0x331   : > { %v12178_v14 = vadd.f32 %v5117_v23, %v13069_v32  ;;  %v5120_v41 = vadd.f32 %v5119_v43, %v12017_v40  ;;  %v5767_v44 = vrot.slane %v5487_v62, 4  ;;  %v5775_v36 = vrot.slane %v5491_v60, 4  ;;  %v13075_v62 = vld [vmem:[#allocation34_spill] sm:$0xff] }
 0x332   : > { %13068 = vst [vmem:[#allocation12_spill] sm:$0xff] %v12174_v24  ;;  %v12183_v49 = vadd.f32 %v5128_v61, %v13070_v48  ;;  %6226 = vmatmul.mubr.bf16.gmra.mrb[248].mxu0 %v5762_v56 }
 0x333   : > { %v12187_v9 = vadd.f32 %v5120_v41, %v13072_v0  ;;  %6233 = vmatprep.mubr.bf16.mxu0 %v5770_v22  ;;  %v5768_v60 = vsel %vm878_vm0, %v5761_v37, %v5767_v44 }
 0x334   : > { %13071 = vst [vmem:[#allocation13_spill] sm:$0xff] %v12183_v49 }
 0x335   : > { %v8979_v15 = vpop.f32.mrb[144].mxu0  ;;  %v12189_v23 = vpop.f32.mrb[188].mxu1 }
 0x336   : > { %v5141_v40 = vadd.f32 %v8979_v15, %v12056_v31  ;;  %v5132_v43 = vpop.f32.mrb[145].mxu0  ;;  %v4933_v32 = vpop.f32.mrb[189].mxu1  ;;  %v13076_v15 = vld [vmem:[#allocation42_spill] sm:$0xff] }
 0x337   : > { %v5133_v61 = vadd.f32 %v5132_v43, %v12042_v27  ;;  %v8980_v56 = vpop.f32.mrb[146].mxu0  ;;  %v12193_v48 = vpop.f32.mrb[190].mxu1  ;;  %v5490_v27 = vld [vmem:[#allocation3 + $0x240] sm:$0xff]  ;;  %v5776_v43 = vsel %vm878_vm0, %v5769_v18, %v5775_v36 }
 0x338   : > { %v12196_v49 = vadd.f32 %v5141_v40, %v13073_v54  ;;  %v5144_v41 = vadd.f32 %v8980_v56, %v12060_v39  ;;  %v5135_v22 = vpop.f32.mrb[147].mxu0  ;;  %v4936_v0 = vpop.f32.mrb[191].mxu1  ;;  %v13078_v40 = vld [vmem:[#allocation35_spill] sm:$0xff]  ;;  %v5494_v39 = vld [vmem:[#allocation3 + $0x260] sm:$0xff]  ;;  %v5773_v56 = vrot.slane %v5490_v27, 4 }
 0x339   : > { %v12200_v24 = vadd.f32 %v5133_v61, %v13075_v62  ;;  %v5136_v31 = vadd.f32 %v5135_v22, %v12047_v29  ;;  %v5781_v37 = vrot.slane %v5494_v39, 4 }
 0x33a   : > { %13074 = vst [vmem:[#allocation10_spill] sm:$0xff] %v12196_v49  ;;  %v12205_v32 = vadd.f32 %v5144_v41, %v13076_v15  ;;  %6234 = vmatmul.mubr.bf16.gmra.mrb[252].mxu0 %v5768_v60 }
 0x33b   : > { %v12209_v54 = vadd.f32 %v5136_v31, %v13078_v40  ;;  %6241 = vmatprep.mubr.bf16.mxu0 %v5776_v43  ;;  %v5774_v40 = vsel %vm878_vm0, %v5767_v44, %v5773_v56 }
 0x33c   : > { %13077 = vst [vmem:[#allocation11_spill] sm:$0xff] %v12205_v32  ;;  %v13079_v32 = vld [vmem:[#allocation45_spill] sm:$0xff] }
 0x33d   : > { %v8983_v0 = vpop.f32.mrb[148].mxu0  ;;  %v12211_v61 = vpop.f32.mrb[192].mxu1 }
 0x33e   : > { %v5157_v29 = vadd.f32 %v8983_v0, %v12101_v38  ;;  %v5148_v22 = vpop.f32.mrb[149].mxu0  ;;  %v4941_v62 = vpop.f32.mrb[193].mxu1  ;;  %v5493_v0 = vld [vmem:[#allocation3 + $0x258] sm:$0xff] }
 0x33f   : > { %v5149_v41 = vadd.f32 %v5148_v22, %v12079_v46  ;;  %v8984_v15 = vpop.f32.mrb[150].mxu0  ;;  %v12215_v60 = vpop.f32.mrb[194].mxu1  ;;  %v5782_v46 = vsel %vm878_vm0, %v5775_v36, %v5781_v37  ;;  %v5779_v62 = vrot.slane %v5493_v0, 4 }
 0x340   : > { %v12218_v18 = vadd.f32 %v5157_v29, %v11836_v12  ;;  %v5160_v31 = vadd.f32 %v8984_v15, %v12105_v59  ;;  %v5151_v43 = vpop.f32.mrb[151].mxu0  ;;  %v4944_v27 = vpop.f32.mrb[195].mxu1  ;;  %v13080_v12 = vld [vmem:[#allocation47_spill] sm:$0xff]  ;;  %v5497_v59 = vld [vmem:[#allocation3 + $0x278] sm:$0xff] }
 0x341   : > { %v12223_v49 = vadd.f32 %v5149_v41, %v13079_v32  ;;  %v5152_v38 = vadd.f32 %v5151_v43, %v12083_v30  ;;  %v5787_v15 = vrot.slane %v5497_v59, 4  ;;  %v5496_v59 = vld [vmem:[#allocation3 + $0x270] sm:$0xff] }
 0x342   : > { %v12227_v39 = vadd.f32 %v5160_v31, %v11843_v11  ;;  %6242 = vmatmul.mubr.bf16.gmra.mrb[0].mxu0 %v5774_v40 }
 0x343   : > { %v12231_v29 = vadd.f32 %v5152_v38, %v13080_v12  ;;  %6249 = vmatprep.mubr.bf16.mxu0 %v5782_v46 }
 0x345   : > { %v8987_v22 = vpop.f32.mrb[152].mxu0  ;;  %v4947_v44 = vpop.f32.mrb[196].mxu1 }
 0x346   : > { %v5173_v32 = vadd.f32 %v8987_v22, %v12145_v5  ;;  %v5164_v41 = vpop.f32.mrb[153].mxu0  ;;  %v4949_v30 = vpop.f32.mrb[197].mxu1  ;;  %v5780_v5 = vsel %vm878_vm0, %v5773_v56, %v5779_v62 }
 0x347   : > { %v5165_v11 = vadd.f32 %v5164_v41, %v12123_v10  ;;  %v8988_v31 = vpop.f32.mrb[154].mxu0  ;;  %v4950_v43 = vpop.f32.mrb[198].mxu1  ;;  %v5788_v10 = vsel %vm878_vm0, %v5781_v37, %v5787_v15 }
 0x348   : > { %v12236_v36 = vadd.f32 %v5173_v32, %v11877_v2  ;;  %v5176_v27 = vadd.f32 %v8988_v31, %v12149_v42  ;;  %v5167_v40 = vpop.f32.mrb[155].mxu0  ;;  %v4952_v38 = vpop.f32.mrb[199].mxu1  ;;  %v5500_v42 = vld [vmem:[#allocation3 + $0x290] sm:$0xff]  ;;  %v5785_v32 = vrot.slane %v5496_v59, 4 }
 0x349   : > { %v12240_v46 = vadd.f32 %v5165_v11, %v11857_v52  ;;  %v5168_v0 = vadd.f32 %v5167_v40, %v12127_v51  ;;  %v5793_v30 = vrot.slane %v5500_v42, 4 }
 0x34a   : > { %v12245_v12 = vadd.f32 %v5176_v27, %v11883_v21  ;;  %6250 = vmatmul.mubr.bf16.gmra.mrb[4].mxu0 %v5780_v5 }
 0x34b   : > { %v12249_v2 = vadd.f32 %v5168_v0, %v11864_v50  ;;  %6257 = vmatprep.mubr.bf16.mxu0 %v5788_v10  ;;  %v5499_v10 = vld [vmem:[#allocation3 + $0x288] sm:$0xff] }
 0x34c   : > { %v5791_v42 = vrot.slane %v5499_v10, 4 }
 0x34d   : > { %v8991_v22 = vpop.f32.mrb[156].mxu0  ;;  %v4955_v52 = vpop.f32.mrb[200].mxu1 }
 0x34e   : > { %v5189_v41 = vadd.f32 %v8991_v22, %v12189_v23  ;;  %v5180_v51 = vpop.f32.mrb[157].mxu0  ;;  %v4957_v56 = vpop.f32.mrb[201].mxu1  ;;  %v5786_v23 = vsel %vm878_vm0, %v5779_v62, %v5785_v32 }
 0x34f   : > { %v5181_v21 = vadd.f32 %v5180_v51, %v12167_v34  ;;  %v8992_v11 = vpop.f32.mrb[158].mxu0  ;;  %v4958_v31 = vpop.f32.mrb[202].mxu1  ;;  %v5794_v34 = vsel %vm878_vm0, %v5787_v15, %v5793_v30 }
 0x350   : > { %v12254_v37 = vadd.f32 %v5189_v41, %v11917_v6  ;;  %v5192_v50 = vadd.f32 %v8992_v11, %v12193_v48  ;;  %v5183_v27 = vpop.f32.mrb[159].mxu0  ;;  %v4960_v40 = vpop.f32.mrb[203].mxu1  ;;  %v5503_v48 = vld [vmem:[#allocation3 + $0x2a8] sm:$0xff] }
 0x351   : > { %v12258_v38 = vadd.f32 %v5181_v21, %v11897_v26  ;;  %v5184_v0 = vadd.f32 %v5183_v27, %v12171_v28  ;;  %v5799_v28 = vrot.slane %v5503_v48, 4 }
 0x352   : > { %v12263_v5 = vadd.f32 %v5192_v50, %v11923_v53  ;;  %6258 = vmatmul.mubr.bf16.gmra.mrb[8].mxu0 %v5786_v23 }
 0x353   : > { %v12267_v6 = vadd.f32 %v5184_v0, %v11903_v17  ;;  %6265 = vmatprep.mubr.bf16.mxu0 %v5794_v34  ;;  %v5502_v0 = vld [vmem:[#allocation3 + $0x2a0] sm:$0xff] }
 0x354   : > { %v5797_v34 = vrot.slane %v5502_v0, 4 }
 0x355   : > { %v8995_v59 = vpop.f32.mrb[160].mxu0  ;;  %v4963_v26 = vpop.f32.mrb[204].mxu1 }
 0x356   : > { %v5205_v22 = vadd.f32 %v8995_v59, %v4947_v44  ;;  %v5196_v41 = vpop.f32.mrb[161].mxu0  ;;  %v4965_v51 = vpop.f32.mrb[205].mxu1  ;;  %v5792_v44 = vsel %vm878_vm0, %v5785_v32, %v5791_v42 }
 0x357   : > { %v5197_v62 = vadd.f32 %v5196_v41, %v12211_v61  ;;  %v8996_v53 = vpop.f32.mrb[162].mxu0  ;;  %v4966_v56 = vpop.f32.mrb[206].mxu1  ;;  %v5800_v61 = vsel %vm878_vm0, %v5793_v30, %v5799_v28 }
 0x358   : > { %v12271_v21 = vadd.f32 %v5205_v22, %v11950_v58  ;;  %v5208_v15 = vadd.f32 %v8996_v53, %v4950_v43  ;;  %v5199_v11 = vpop.f32.mrb[163].mxu0  ;;  %v4968_v17 = vpop.f32.mrb[207].mxu1  ;;  %v5506_v43 = vld [vmem:[#allocation3 + $0x2c0] sm:$0xff] }
 0x359   : > { %v12274_v50 = vadd.f32 %v5197_v62, %v11934_v4  ;;  %v5200_v27 = vadd.f32 %v5199_v11, %v12215_v60  ;;  %v5805_v60 = vrot.slane %v5506_v43, 4  ;;  %v5798_v11 = vsel %vm878_vm0, %v5791_v42, %v5797_v34  ;;  %v5505_v17 = vld [vmem:[#allocation3 + $0x2b8] sm:$0xff] }
 0x35a   : > { %13081 = vst [vmem:[#allocation14_spill] sm:$0xff] %v12271_v21  ;;  %v12279_v40 = vadd.f32 %v5208_v15, %v11956_v1  ;;  %6266 = vmatmul.mubr.bf16.gmra.mrb[12].mxu0 %v5792_v44  ;;  %v13088_v44 = vld [vmem:[#allocation49_spill] sm:$0xff] }
 0x35b   : > { %v12283_v58 = vadd.f32 %v5200_v27, %v11940_v55  ;;  %6273 = vmatprep.mubr.bf16.mxu0 %v5800_v61  ;;  %v13084_v55 = vld [vmem:[#allocation5_spill] sm:$0xff] }
 0x35c   : > { %13082 = vst [vmem:[#allocation15_spill] sm:$0xff] %v12279_v40 }
 0x35d   : > { %v8999_v23 = vpop.f32.mrb[164].mxu0  ;;  %v4971_v4 = vpop.f32.mrb[208].mxu1 }
 0x35e   : > { %v5221_v10 = vadd.f32 %v8999_v23, %v4963_v26  ;;  %v5212_v48 = vpop.f32.mrb[165].mxu0  ;;  %v4973_v59 = vpop.f32.mrb[209].mxu1  ;;  %v13086_v26 = vld [vmem:[#allocation27_spill] sm:$0xff] }
 0x35f   : > { %v5213_v32 = vadd.f32 %v5212_v48, %v4955_v52  ;;  %v9000_v22 = vpop.f32.mrb[166].mxu0  ;;  %v4974_v1 = vpop.f32.mrb[210].mxu1  ;;  %v5806_v52 = vsel %vm878_vm0, %v5799_v28, %v5805_v60  ;;  %v13090_v28 = vld [vmem:[#allocation41_spill] sm:$0xff] }
 0x360   : > { %v12286_v41 = vadd.f32 %v5221_v10, %v11982_v57  ;;  %v5224_v30 = vadd.f32 %v9000_v22, %v4966_v56  ;;  %v5215_v51 = vpop.f32.mrb[167].mxu0  ;;  %v4976_v62 = vpop.f32.mrb[211].mxu1  ;;  %v5803_v57 = vrot.slane %v5505_v17, 4  ;;  %v9339_v22 = vld [vmem:[#allocation3 + $0x2d8] sm:$0xff] }
 0x361   : > { %v12289_v53 = vadd.f32 %v5213_v32, %v13084_v55  ;;  %v5216_v15 = vadd.f32 %v5215_v51, %v4958_v31  ;;  %v13092_v55 = vld [vmem:[#allocation32_spill] sm:$0xff] }
 0x362   : > { %13083 = vst [vmem:[#allocation21_spill] sm:$0xff] %v12286_v41  ;;  %v12293_v27 = vadd.f32 %v5224_v30, %v13086_v26  ;;  %6274 = vmatmul.mubr.bf16.gmra.mrb[16].mxu0 %v5798_v11  ;;  %v5804_v32 = vsel %vm878_vm0, %v5797_v34, %v5803_v57  ;;  %v5811_v30 = vrot.slane %v9339_v22, 4 }
 0x363   : > { %13085 = vst [vmem:[#allocation16_spill] sm:$0xff] %v12289_v53  ;;  %v12297_v61 = vadd.f32 %v5216_v15, %v13088_v44  ;;  %6281 = vmatprep.mubr.bf16.mxu0 %v5806_v52  ;;  %v13094_v52 = vld [vmem:[#allocation36_spill] sm:$0xff] }
 0x364   : > { %13087 = vst [vmem:[#allocation18_spill] sm:$0xff] %v12293_v27  ;;  %v5812_v26 = vsel %vm878_vm0, %v5805_v60, %v5811_v30 }
 0x365   : > { %13089 = vst [vmem:[#allocation19_spill] sm:$0xff] %v12297_v61  ;;  %v9003_v56 = vpop.f32.mrb[168].mxu0  ;;  %v4979_v0 = vpop.f32.mrb[212].mxu1 }
 0x366   : > { %v5228_v43 = vpop.f32.mrb[169].mxu0  ;;  %v4981_v23 = vpop.f32.mrb[213].mxu1  ;;  %v5237_v10 = vadd.f32 %v9003_v56, %v4979_v0  ;;  %v13096_v56 = vld [vmem:[#allocation33_spill] sm:$0xff] }
 0x367   : > { %v5229_v31 = vadd.f32 %v5228_v43, %v4971_v4  ;;  %v9004_v48 = vpop.f32.mrb[170].mxu0  ;;  %v4982_v42 = vpop.f32.mrb[214].mxu1  ;;  %v5508_v4 = vld [vmem:[#allocation3 + $0x2d0] sm:$0xff] }
 0x368   : > { %v5231_v59 = vpop.f32.mrb[171].mxu0  ;;  %v4984_v51 = vpop.f32.mrb[215].mxu1  ;;  %v12301_v62 = vadd.f32 %v5237_v10, %v13090_v28  ;;  %v5240_v11 = vadd.f32 %v9004_v48, %v4982_v42  ;;  %v5809_v43 = vrot.slane %v5508_v4, 4  ;;  %v5512_v23 = vld [vmem:[#allocation3 + $0x2f0] sm:$0xf] }
 0x369   : > { %v12304_v15 = vadd.f32 %v5229_v31, %v13092_v55  ;;  %v5232_v17 = vadd.f32 %v5231_v59, %v4974_v1  ;;  %v5817_v59 = vrot.slane %v5512_v23, 4 }
 0x36a   : > { %13091 = vst [vmem:[#allocation24_spill] sm:$0xff] %v12301_v62  ;;  %6282 = vmatmul.mubr.bf16.gmra.mrb[20].mxu0 %v5804_v32  ;;  %v12308_v44 = vadd.f32 %v5240_v11, %v13094_v52  ;;  %v13098_v32 = vld [vmem:[#allocation38_spill] sm:$0xff]  ;;  %v5810_v11 = vsel %vm878_vm0, %v5803_v57, %v5809_v43  ;;  %v5429_v52 = vld [vmem:[#allocation3 + $0x58] sm:$0xf0] }
 0x36b   : > { %13093 = vst [vmem:[#allocation20_spill] sm:$0xff] %v12304_v15  ;;  %v12311_v34 = vadd.f32 %v5232_v17, %v13096_v56  ;;  %6289 = vmatprep.mubr.bf16.mxu0 %v5812_v26  ;;  %v5818_v17 = vsel %vm878_vm0, %v5811_v30, %v5817_v59  ;;  %v13100_v26 = vld [vmem:[#allocation37_spill] sm:$0xff]  ;;  %v5432_v56 = vld [vmem:[#allocation3 + $0x70] sm:$0xff]  ;;  %v13104_v59 = vld [vmem:[#allocation40_spill] sm:$0xff] }
 0x36c   : > { %13095 = vst [vmem:[#allocation23_spill] sm:$0xff] %v12308_v44 }
 0x36d   : > { %13097 = vst [vmem:[#allocation22_spill] sm:$0xff] %v12311_v34  ;;  %v9007_v0 = vpop.f32.mrb[172].mxu0  ;;  %v4987_v10 = vpop.f32.mrb[216].mxu1 }
 0x36e   : > { %v5244_v22 = vpop.f32.mrb[173].mxu0  ;;  %v4989_v31 = vpop.f32.mrb[217].mxu1 }
 0x36f   : > { %v5245_v51 = vadd.f32 %v5244_v22, %v4987_v10  ;;  %v9008_v48 = vpop.f32.mrb[174].mxu0  ;;  %v4990_v1 = vpop.f32.mrb[218].mxu1  ;;  %v5511_v10 = vld [vmem:[#allocation3 + $0x2e8] sm:$0xf] }
 0x370   : > { %v5247_v42 = vpop.f32.mrb[175].mxu0  ;;  %v4992_v60 = vpop.f32.mrb[219].mxu1  ;;  %v5815_v57 = vrot.slane %v5511_v10, 4 }
 0x371   : > { %v12314_v28 = vadd.f32 %v5245_v51, %v13098_v32  ;;  %v5248_v55 = vadd.f32 %v5247_v42, %v4990_v1  ;;  %v5656_v60 = vrot.slane %v5429_v52, 4  ;;  %v5657_v51 = vrot.slane %v5432_v56, 4 }
 0x372   : > { %6290 = vmatmul.mubr.bf16.gmra.mrb[24].mxu0 %v5810_v11 }
 0x373   : > { %13099 = vst [vmem:[#allocation28_spill] sm:$0xff] %v12314_v28  ;;  %v12319_v4 = vadd.f32 %v5248_v55, %v13100_v26  ;;  %6297 = vmatprep.mubr.bf16.mxu0 %v5818_v17 }
 0x375   : > { %13101 = vst [vmem:[#allocation25_spill] sm:$0xff] %v12319_v4  ;;  %v12321_v22 = vpop.f32.mrb[176].mxu0  ;;  %v4995_v23 = vpop.f32.mrb[220].mxu1  ;;  %v5816_v4 = vsel %vm878_vm0, %v5809_v43, %v5815_v57 }
 0x376   : > { %13102 = vst [vmem:[#allocation30_spill] sm:$0xff] %v12321_v22  ;;  %v6085_v31 = vpop.f32.mrb[177].mxu0  ;;  %v5253_v32 = vadd.f32 %v9007_v0, %v4995_v23  ;;  %v4997_v1 = vpop.f32.mrb[221].mxu1  ;;  %v5658_v22 = vsel %vm878_vm0, %v5656_v60, %v5657_v51  ;;  %v9327_v23 = vld [vmem:[%s12858_s10] sm:$0xff]   ;;  %v13110_v60 = vld [vmem:[#allocation17_spill] sm:$0xff] }
 0x377   : > { %v12323_v42 = vpop.f32.mrb[178].mxu0  ;;  %v4998_v11 = vpop.f32.mrb[222].mxu1  ;;  %v13106_v31 = vld [vmem:[#allocation43_spill] sm:$0xff]  ;;  %9081 = vmatprep.subr.bf16.mxu1 %v9327_v23  ;;  %v13111_v57 = vrot.slane %v13110_v60, 4 }
 0x378   : > { %13103 = vst [vmem:[#allocation26_spill] sm:$0xff] %v12323_v42  ;;  %v6088_v30 = vpop.f32.mrb[179].mxu0  ;;  %v12326_v55 = vadd.f32 %v5253_v32, %v13104_v59  ;;  %v5256_v17 = vadd.f32 %v9008_v48, %v4998_v11  ;;  %v5000_v26 = vpop.f32.mrb[223].mxu1  ;;  %9082 = vmatpush3.bf16.msra.mxu1 %v9327_v23 }
 0x379   : > { %v5664_v11 = vsel %vm878_vm0, %v5657_v51, %v13111_v57 }
 0x37a   : > { %13105 = vst [vmem:[#allocation31_spill] sm:$0xff] %v12326_v55  ;;  %6298 = vmatmul.mubr.bf16.gmra.mrb[28].mxu0 %v5816_v4  ;;  %v12331_v52 = vadd.f32 %v5256_v17, %v13106_v31 }
 0x37b   : > { %9025 = vmatprep.mubr.bf16.mxu0 %v5658_v22 }
 0x37c   : > { %13107 = vst [vmem:[#allocation29_spill] sm:$0xff] %v12331_v52 }
 0x37d   : > { %v12333_v0 = vpop.f32.mrb[180].mxu0  ;;  %v9031_v56 = vpop.f32.mrb[224].mxu1 }
 0x37e   : > { %13108 = vst [vmem:[#allocation39_spill] sm:$0xff] %v12333_v0  ;;  %v6093_v10 = vpop.f32.mrb[181].mxu0  ;;  %v6356_v32 = vpop.f32.mrb[225].mxu1 }
 0x37f   : > { %v12338_v48 = vpop.f32.mrb[182].mxu0  ;;  %v9032_v1 = vpop.f32.mrb[226].mxu1 }
 0x380   : > { %13109 = vst [vmem:[#allocation34_spill] sm:$0xff] %v12338_v48  ;;  %v6096_v43 = vpop.f32.mrb[183].mxu0  ;;  %v6359_v4 = vpop.f32.mrb[227].mxu1 }
 0x382   : > { %9026 = vmatmul.mubr.bf16.vlgmr.msra.gmra.mrb[32].mxu0 %v5664_v11 }
 0x385   : > { %v6099_v22 = vpop.f32.mrb[184].mxu0  ;;  %v9035_v30 = vpop.f32.mrb[228].mxu1 }
 0x386   : > { %v6357_v59 = vadd.f32 %v6356_v32, %v6099_v22  ;;  %v6101_v17 = vpop.f32.mrb[185].mxu0  ;;  %v6372_v26 = vpop.f32.mrb[229].mxu1  ;;  %v9328_v32 = vld [vmem:[%s12858_s10 + $0x8] sm:$0xff]  }
 0x387   : > { %v6102_v31 = vpop.f32.mrb[186].mxu0  ;;  %v9036_v10 = vpop.f32.mrb[230].mxu1  ;;  %9083 = vmatprep.subr.bf16.mxu1 %v9328_v32 }
 0x388   : > { %v12344_v42 = vadd.f32 %v6357_v59, %v12090_v13  ;;  %v6360_v48 = vadd.f32 %v6359_v4, %v6102_v31  ;;  %v6104_v43 = vpop.f32.mrb[187].mxu0  ;;  %v6375_v0 = vpop.f32.mrb[231].mxu1  ;;  %9084 = vmatpush3.bf16.msra.mxu1 %v9328_v32 }
 0x38a   : > { %v12347_v52 = vadd.f32 %v6360_v48, %v12099_v16  ;;  %v12360_v16 = vld [vmem:[%s12857_s9] ss:$0 sm:$0xff] }
 0x38d   : > { %v6107_v60 = vpop.f32.mrb[188].mxu0  ;;  %v12349_v51 = vpop.f32.mrb[232].mxu1 }
 0x38e   : > { %v6365_v23 = vadd.f32 %v9031_v56, %v6107_v60  ;;  %v6109_v57 = vpop.f32.mrb[189].mxu0  ;;  %v6388_v11 = vpop.f32.mrb[233].mxu1 }
 0x38f   : > { %v6110_v22 = vpop.f32.mrb[190].mxu0  ;;  %v12354_v17 = vpop.f32.mrb[234].mxu1 }
 0x390   : > { %v6569_v13 = vadd.f32 %v6365_v23, %v12086_v33  ;;  %v6368_v4 = vadd.f32 %v9032_v1, %v6110_v22  ;;  %v6112_v59 = vpop.f32.mrb[191].mxu0  ;;  %v6391_v56 = vpop.f32.mrb[235].mxu1 }
 0x392   : > { %v6744_v48 = vadd.f32 %v12360_v16, %v6569_v13  ;;  %v6570_v31 = vadd.f32 %v6368_v4, %v12095_v8 }
 0x394   : > { %v6745_v43 = vadd.f32 %v12360_v16, %v6570_v31  ;;  %v6800_v57 = vmax.f32 %v6744_v48, 0.0 }
 0x395   : > { %v6115_v60 = vpop.f32.mrb[192].mxu0  ;;  %v12365_v55 = vpop.f32.mrb[236].mxu1 }
 0x396   : > { %v6801_v33 = vmax.f32 %v6745_v43, 0.0  ;;  %v6373_v1 = vadd.f32 %v6372_v26, %v6115_v60  ;;  %v6117_v23 = vpop.f32.mrb[193].mxu0  ;;  %v6404_v22 = vpop.f32.mrb[237].mxu1  ;;  %v9329_v26 = vld [vmem:[%s12858_s10 + $0x10] sm:$0xff]  }
 0x397   : > { %v6118_v59 = vpop.f32.mrb[194].mxu0  ;;  %v12369_v44 = vpop.f32.mrb[238].mxu1  ;;  %9085 = vmatprep.subr.bf16.mxu1 %v9329_v26 }
 0x398   : > { %v12367_v28 = vpack.c.bf16 %v6801_v33, %v6800_v57  ;;  %v12372_v32 = vadd.f32 %v6373_v1, %v12112_v20  ;;  %v6376_v13 = vadd.f32 %v6375_v0, %v6118_v59  ;;  %v6120_v8 = vpop.f32.mrb[195].mxu0  ;;  %v6407_v4 = vpop.f32.mrb[239].mxu1  ;;  %9086 = vmatpush3.bf16.msra.mxu1 %v9329_v26 }
 0x39a   : > { %13112 = vst [vmem:[#allocation42_spill] sm:$0xff] %v12367_v28  ;;  %v12375_v31 = vadd.f32 %v6376_v13, %v12121_v3 }
 0x39d   : > { %v6123_v48 = vpop.f32.mrb[196].mxu0  ;;  %v12380_v43 = vpop.f32.mrb[240].mxu1 }
 0x39e   : > { %v6381_v60 = vadd.f32 %v9035_v30, %v6123_v48  ;;  %v6125_v57 = vpop.f32.mrb[197].mxu0  ;;  %v12382_v33 = vpop.f32.mrb[241].mxu1 }
 0x39f   : > { %v6126_v20 = vpop.f32.mrb[198].mxu0  ;;  %v12384_v0 = vpop.f32.mrb[242].mxu1 }
 0x3a0   : > { %v6573_v1 = vadd.f32 %v6381_v60, %v12108_v7  ;;  %v6384_v3 = vadd.f32 %v9036_v10, %v6126_v20  ;;  %v6128_v23 = vpop.f32.mrb[199].mxu0  ;;  %v12387_v59 = vpop.f32.mrb[243].mxu1 }
 0x3a2   : > { %v6748_v13 = vadd.f32 %v12360_v16, %v6573_v1  ;;  %v6574_v8 = vadd.f32 %v6384_v3, %v12117_v25  ;;  %v9330_v3 = vld [vmem:[%s12858_s10 + $0x18] sm:$0xff]  }
 0x3a3   : > { %9087 = vmatprep.subr.bf16.mxu1 %v9330_v3 }
 0x3a4   : > { %v6749_v30 = vadd.f32 %v12360_v16, %v6574_v8  ;;  %v6804_v57 = vmax.f32 %v6748_v13, 0.0  ;;  %9088 = vmatpush3.bf16.msra.mxu1 %v9330_v3 }
 0x3a5   : > { %v6131_v48 = vpop.f32.mrb[200].mxu0  ;;  %v12392_v28 = vpop.f32.mrb[244].mxu1 }
 0x3a6   : > { %v6805_v62 = vmax.f32 %v6749_v30, 0.0  ;;  %v6389_v26 = vadd.f32 %v6388_v11, %v6131_v48  ;;  %v6133_v34 = vpop.f32.mrb[201].mxu0  ;;  %v12394_v15 = vpop.f32.mrb[245].mxu1 }
 0x3a7   : > { %v6134_v7 = vpop.f32.mrb[202].mxu0  ;;  %v12398_v60 = vpop.f32.mrb[246].mxu1 }
 0x3a8   : > { %v12396_v10 = vpack.c.bf16 %v6805_v62, %v6804_v57  ;;  %v12401_v20 = vadd.f32 %v6389_v26, %v12134_v35  ;;  %v6392_v25 = vadd.f32 %v6391_v56, %v6134_v7  ;;  %v6136_v1 = vpop.f32.mrb[203].mxu0  ;;  %v12406_v23 = vpop.f32.mrb[247].mxu1 }
 0x3aa   : > { %13113 = vst [vmem:[#allocation35_spill] sm:$0xff] %v12396_v10  ;;  %v12409_v34 = vadd.f32 %v6392_v25, %v12143_v19  ;;  %v13114_v25 = vld [vmem:[#allocation9_spill] sm:$0xff] }
 0x3ad   : > { %v6139_v62 = vpop.f32.mrb[204].mxu0  ;;  %v12411_v11 = vpop.f32.mrb[248].mxu1 }
 0x3ae   : > { %v6397_v13 = vadd.f32 %v12349_v51, %v6139_v62  ;;  %v6141_v35 = vpop.f32.mrb[205].mxu0  ;;  %v12414_v8 = vpop.f32.mrb[249].mxu1 }
 0x3af   : > { %v6142_v56 = vpop.f32.mrb[206].mxu0  ;;  %v12416_v30 = vpop.f32.mrb[250].mxu1 }
 0x3b0   : > { %v6577_v48 = vadd.f32 %v6397_v13, %v12130_v47  ;;  %v6400_v57 = vadd.f32 %v12354_v17, %v6142_v56  ;;  %v6144_v26 = vpop.f32.mrb[207].mxu0  ;;  %v12420_v19 = vpop.f32.mrb[251].mxu1 }
 0x3b1   : > { %v9331_v26 = vld [vmem:[%s12858_s10 + $0x20] sm:$0xff]  }
 0x3b2   : > { %v6752_v7 = vadd.f32 %v12360_v16, %v6577_v48  ;;  %v6578_v1 = vadd.f32 %v6400_v57, %v13114_v25  ;;  %9089 = vmatprep.subr.bf16.mxu1 %v9331_v26 }
 0x3b3   : > { %9090 = vmatpush3.bf16.msra.mxu1 %v9331_v26 }
 0x3b4   : > { %v6753_v3 = vadd.f32 %v12360_v16, %v6578_v1  ;;  %v6808_v62 = vmax.f32 %v6752_v7, 0.0 }
 0x3b5   : > { %v6147_v51 = vpop.f32.mrb[208].mxu0  ;;  %v12425_v35 = vpop.f32.mrb[252].mxu1 }
 0x3b6   : > { %v6809_v10 = vmax.f32 %v6753_v3, 0.0  ;;  %v6405_v27 = vadd.f32 %v6404_v22, %v6147_v51  ;;  %v6149_v41 = vpop.f32.mrb[209].mxu0  ;;  %v12427_v61 = vpop.f32.mrb[253].mxu1  ;;  %v13116_v51 = vld [vmem:[#allocation6_spill] sm:$0xff] }
 0x3b7   : > { %v6150_v47 = vpop.f32.mrb[210].mxu0  ;;  %v12431_v13 = vpop.f32.mrb[254].mxu1 }
 0x3b8   : > { %v12429_v17 = vpack.c.bf16 %v6809_v10, %v6808_v62  ;;  %v12434_v56 = vadd.f32 %v6405_v27, %v12156_v63  ;;  %v6408_v48 = vadd.f32 %v6407_v4, %v6150_v47  ;;  %v6152_v57 = vpop.f32.mrb[211].mxu0  ;;  %v12439_v7 = vpop.f32.mrb[255].mxu1  ;;  %v9332_v27 = vld [vmem:[%s12858_s10 + $0x28] sm:$0xff]   ;;  %v6743_v4 = vadd.f32 %v12360_v16, %v12347_v52  ;;  %v13117_v52 = vld [vmem:[#allocation7_spill] sm:$0xff] }
 0x3b9   : > { %9091 = vmatprep.subr.bf16.mxu1 %v9332_v27 }
 0x3ba   : > { %13115 = vst [vmem:[#allocation45_spill] sm:$0xff] %v12429_v17  ;;  %v12442_v41 = vadd.f32 %v6408_v48, %v12165_v45  ;;  %9092 = vmatpush3.bf16.msra.mxu1 %v9332_v27 }
 0x3bd   : > { %v6155_v22 = vpop.f32.mrb[212].mxu0  ;;  %v12444_v10 = vpop.f32.mrb[0].mxu1 }
 0x3be   : > { %v6413_v25 = vadd.f32 %v12365_v55, %v6155_v22  ;;  %v6157_v63 = vpop.f32.mrb[213].mxu0  ;;  %v12452_v1 = vpop.f32.mrb[1].mxu1  ;;  %v6742_v55 = vadd.f32 %v12360_v16, %v12344_v42 }
 0x3bf   : > { %v6158_v3 = vpop.f32.mrb[214].mxu0  ;;  %v12454_v45 = vpop.f32.mrb[2].mxu1  ;;  %v6799_v63 = vmax.f32 %v6743_v4, 0.0 }
 0x3c0   : > { %v6581_v62 = vadd.f32 %v6413_v25, %v13116_v51  ;;  %v6416_v47 = vadd.f32 %v12369_v44, %v6158_v3  ;;  %v6160_v48 = vpop.f32.mrb[215].mxu0  ;;  %v12460_v57 = vpop.f32.mrb[3].mxu1  ;;  %v6798_v53 = vmax.f32 %v6742_v55, 0.0 }
 0x3c2   : > { %v6756_v26 = vadd.f32 %v12360_v16, %v6581_v62  ;;  %v6582_v22 = vadd.f32 %v6416_v47, %v13117_v52  ;;  %v12470_v27 = vpack.c.bf16 %v6799_v63, %v6798_v53  ;;  %v9333_v63 = vld [vmem:[%s12858_s10 + $0x30] sm:$0xff]  }
 0x3c3   : > { %9093 = vmatprep.subr.bf16.mxu1 %v9333_v63 }
 0x3c4   : > { %v6757_v17 = vadd.f32 %v12360_v16, %v6582_v22  ;;  %v6812_v25 = vmax.f32 %v6756_v26, 0.0  ;;  %13118 = vst [vmem:[#allocation47_spill] sm:$0xff] %v12470_v27  ;;  %9094 = vmatpush3.bf16.msra.mxu1 %v9333_v63 }
 0x3c5   : > { %v6163_v40 = vpop.f32.mrb[216].mxu0  ;;  %v12465_v51 = vpop.f32.mrb[4].mxu1 }
 0x3c6   : > { %v6813_v44 = vmax.f32 %v6757_v17, 0.0  ;;  %v6421_v3 = vadd.f32 %v12382_v33, %v6163_v40  ;;  %v6165_v48 = vpop.f32.mrb[217].mxu0  ;;  %v12468_v42 = vpop.f32.mrb[5].mxu1 }
 0x3c7   : > { %v6166_v21 = vpop.f32.mrb[218].mxu0  ;;  %v12474_v47 = vpop.f32.mrb[6].mxu1 }
 0x3c8   : > { %v12472_v62 = vpack.c.bf16 %v6813_v44, %v6812_v25  ;;  %v12477_v4 = vadd.f32 %v6421_v3, %v12178_v14  ;;  %v6424_v55 = vadd.f32 %v12387_v59, %v6166_v21  ;;  %v6168_v26 = vpop.f32.mrb[219].mxu0  ;;  %v12480_v52 = vpop.f32.mrb[7].mxu1  ;;  %v6747_v14 = vadd.f32 %v12360_v16, %v12375_v31  ;;  %v13123_v31 = vld [vmem:[#allocation13_spill] sm:$0xff] }
 0x3ca   : > { %13119 = vst [vmem:[#allocation5_spill] sm:$0xff] %v12472_v62  ;;  %v12483_v40 = vadd.f32 %v6424_v55, %v12187_v9  ;;  %v13122_v9 = vld [vmem:[#allocation12_spill] sm:$0xff] }
 0x3cd   : > { %v6171_v33 = vpop.f32.mrb[220].mxu0  ;;  %v12485_v17 = vpop.f32.mrb[8].mxu1 }
 0x3ce   : > { %13120 = vst [vmem:[#allocation27_spill] sm:$0xff] %v12485_v17  ;;  %v6429_v53 = vadd.f32 %v12380_v43, %v6171_v33  ;;  %v6173_v22 = vpop.f32.mrb[221].mxu0  ;;  %v12493_v21 = vpop.f32.mrb[9].mxu1  ;;  %v6746_v43 = vadd.f32 %v12360_v16, %v12372_v32 }
 0x3cf   : > { %v6174_v59 = vpop.f32.mrb[222].mxu0  ;;  %v12495_v25 = vpop.f32.mrb[10].mxu1  ;;  %v6803_v22 = vmax.f32 %v6747_v14, 0.0 }
 0x3d0   : > { %13121 = vst [vmem:[#allocation49_spill] sm:$0xff] %v12495_v25  ;;  %v6585_v44 = vadd.f32 %v6429_v53, %v13122_v9  ;;  %v6432_v3 = vadd.f32 %v12384_v0, %v6174_v59  ;;  %v6176_v48 = vpop.f32.mrb[223].mxu0  ;;  %v12501_v55 = vpop.f32.mrb[11].mxu1  ;;  %v6802_v27 = vmax.f32 %v6746_v43, 0.0 }
 0x3d2   : > { %v6760_v26 = vadd.f32 %v12360_v16, %v6585_v44  ;;  %v6586_v33 = vadd.f32 %v6432_v3, %v13123_v31  ;;  %v12511_v63 = vpack.c.bf16 %v6803_v22, %v6802_v27  ;;  %v9334_v27 = vld [vmem:[%s12858_s10 + $0x38] sm:$0xff]  }
 0x3d3   : > { %9095 = vmatprep.subr.bf16.mxu1 %v9334_v27 }
 0x3d4   : > { %v6761_v62 = vadd.f32 %v12360_v16, %v6586_v33  ;;  %v6816_v53 = vmax.f32 %v6760_v26, 0.0  ;;  %13124 = vst [vmem:[#allocation41_spill] sm:$0xff] %v12511_v63  ;;  %9096 = vmatpush3.bf16.msra.mxu1 %v9334_v27 }
 0x3d5   : > { %v6179_v25 = vpop.f32.mrb[224].mxu0  ;;  %v12506_v9 = vpop.f32.mrb[12].mxu1 }
 0x3d6   : > { %v6817_v0 = vmax.f32 %v6761_v62, 0.0  ;;  %v6437_v59 = vadd.f32 %v12394_v15, %v6179_v25  ;;  %v6181_v48 = vpop.f32.mrb[225].mxu0  ;;  %v12509_v32 = vpop.f32.mrb[13].mxu1 }
 0x3d7   : > { %v6182_v17 = vpop.f32.mrb[226].mxu0  ;;  %v12515_v3 = vpop.f32.mrb[14].mxu1 }
 0x3d8   : > { %v12513_v44 = vpack.c.bf16 %v6817_v0, %v6816_v53  ;;  %v12518_v14 = vadd.f32 %v6437_v59, %v12200_v24  ;;  %v6440_v43 = vadd.f32 %v12406_v23, %v6182_v17  ;;  %v6184_v26 = vpop.f32.mrb[227].mxu0  ;;  %v12521_v31 = vpop.f32.mrb[15].mxu1  ;;  %v6751_v24 = vadd.f32 %v12360_v16, %v12409_v34  ;;  %v13129_v34 = vld [vmem:[#allocation11_spill] sm:$0xff] }
 0x3da   : > { %13125 = vst [vmem:[#allocation32_spill] sm:$0xff] %v12513_v44  ;;  %v12524_v15 = vadd.f32 %v6440_v43, %v12209_v54  ;;  %v13128_v54 = vld [vmem:[#allocation10_spill] sm:$0xff]  ;;  %v6750_v43 = vadd.f32 %v12360_v16, %v12401_v20 }
 0x3dc   : > { %v6806_v63 = vmax.f32 %v6750_v43, 0.0 }
 0x3dd   : > { %v6187_v62 = vpop.f32.mrb[228].mxu0  ;;  %v12529_v25 = vpop.f32.mrb[16].mxu1 }
 0x3de   : > { %13126 = vst [vmem:[#allocation36_spill] sm:$0xff] %v12529_v25  ;;  %v6445_v33 = vadd.f32 %v12392_v28, %v6187_v62  ;;  %v6189_v22 = vpop.f32.mrb[229].mxu0  ;;  %v12534_v23 = vpop.f32.mrb[17].mxu1 }
 0x3df   : > { %v6190_v17 = vpop.f32.mrb[230].mxu0  ;;  %v12536_v53 = vpop.f32.mrb[18].mxu1  ;;  %v6807_v22 = vmax.f32 %v6751_v24, 0.0 }
 0x3e0   : > { %13127 = vst [vmem:[#allocation33_spill] sm:$0xff] %v12536_v53  ;;  %v6589_v0 = vadd.f32 %v6445_v33, %v13128_v54  ;;  %v6448_v59 = vadd.f32 %v12398_v60, %v6190_v17  ;;  %v6192_v48 = vpop.f32.mrb[231].mxu0  ;;  %v12542_v28 = vpop.f32.mrb[19].mxu1 }
 0x3e1   : > { %v12548_v54 = vpack.c.bf16 %v6807_v22, %v6806_v63 }
 0x3e2   : > { %v6764_v26 = vadd.f32 %v12360_v16, %v6589_v0  ;;  %v6590_v62 = vadd.f32 %v6448_v59, %v13129_v34 }
 0x3e4   : > { %v6765_v44 = vadd.f32 %v12360_v16, %v6590_v62  ;;  %v6820_v25 = vmax.f32 %v6764_v26, 0.0 }
 0x3e5   : > { %v6195_v53 = vpop.f32.mrb[232].mxu0 }
 0x3e6   : > { %v6821_v33 = vmax.f32 %v6765_v44, 0.0  ;;  %v6453_v60 = vadd.f32 %v12414_v8, %v6195_v53  ;;  %v6197_v17 = vpop.f32.mrb[233].mxu0  ;;  %v6755_v8 = vadd.f32 %v12360_v16, %v12442_v41 }
 0x3e7   : > { %v6198_v27 = vpop.f32.mrb[234].mxu0 }
 0x3e8   : > { %v12550_v20 = vpack.c.bf16 %v6821_v33, %v6820_v25  ;;  %v12553_v48 = vadd.f32 %v6453_v60, %v12223_v49  ;;  %v6456_v0 = vadd.f32 %v12420_v19, %v6198_v27  ;;  %v6200_v24 = vpop.f32.mrb[235].mxu0  ;;  %v6754_v49 = vadd.f32 %v12360_v16, %v12434_v56 }
 0x3e9   : > { %v6811_v62 = vmax.f32 %v6755_v8, 0.0 }
 0x3ea   : > { %v6592_v59 = vadd.f32 %v6456_v0, %v12231_v29  ;;  %v6810_v22 = vmax.f32 %v6754_v49, 0.0 }
 0x3ed   : > { %v6203_v43 = vpop.f32.mrb[236].mxu0 }
 0x3ee   : > { %v6461_v26 = vadd.f32 %v12411_v11, %v6203_v43  ;;  %v6205_v44 = vpop.f32.mrb[237].mxu0 }
 0x3ef   : > { %v6206_v53 = vpop.f32.mrb[238].mxu0 }
 0x3f0   : > { %v6593_v63 = vadd.f32 %v6461_v26, %v12218_v18  ;;  %v6464_v25 = vadd.f32 %v12416_v30, %v6206_v53  ;;  %v6208_v34 = vpop.f32.mrb[239].mxu0  ;;  %v12568_v30 = vpack.c.bf16 %v6811_v62, %v6810_v22  ;;  %v6759_v26 = vadd.f32 %v12360_v16, %v12483_v40 }
 0x3f1   : > { %v6763_v40 = vadd.f32 %v12360_v16, %v12524_v15  ;;  %v6762_v62 = vadd.f32 %v12360_v16, %v12518_v14 }
 0x3f2   : > { %v6768_v19 = vadd.f32 %v12360_v16, %v6593_v63  ;;  %v6594_v29 = vadd.f32 %v6464_v25, %v12227_v39  ;;  %v6815_v25 = vmax.f32 %v6759_v26, 0.0 }
 0x3f4   : > { %v6769_v11 = vadd.f32 %v12360_v16, %v6594_v29  ;;  %v6824_v60 = vmax.f32 %v6768_v19, 0.0 }
 0x3f5   : > { %v6211_v33 = vpop.f32.mrb[240].mxu0 }
 0x3f6   : > { %v6825_v41 = vmax.f32 %v6769_v11, 0.0  ;;  %v6469_v17 = vadd.f32 %v12427_v61, %v6211_v33  ;;  %v6213_v18 = vpop.f32.mrb[241].mxu0  ;;  %v6758_v61 = vadd.f32 %v12360_v16, %v12477_v4 }
 0x3f7   : > { %v6214_v27 = vpop.f32.mrb[242].mxu0  ;;  %v6818_v18 = vmax.f32 %v6762_v62, 0.0 }
 0x3f8   : > { %v12570_v0 = vpack.c.bf16 %v6825_v41, %v6824_v60  ;;  %v6595_v56 = vadd.f32 %v6469_v17, %v12240_v46  ;;  %v6472_v24 = vadd.f32 %v12439_v7, %v6214_v27  ;;  %v6216_v39 = vpop.f32.mrb[243].mxu0  ;;  %v6814_v49 = vmax.f32 %v6758_v61, 0.0 }
 0x3f9   : > { %v6819_v60 = vmax.f32 %v6763_v40, 0.0 }
 0x3fa   : > { %v6596_v43 = vadd.f32 %v6472_v24, %v12249_v2  ;;  %v12587_v29 = vpack.c.bf16 %v6815_v25, %v6814_v49  ;;  %v6767_v24 = vadd.f32 %v12360_v16, %v6592_v59 }
 0x3fb   : > { %v12598_v14 = vpack.c.bf16 %v6819_v60, %v6818_v18 }
 0x3fc   : > { %v6771_v25 = vadd.f32 %v12360_v16, %v6596_v43 }
 0x3fd   : > { %v6219_v44 = vpop.f32.mrb[244].mxu0 }
 0x3fe   : > { %v6477_v8 = vadd.f32 %v12425_v35, %v6219_v44  ;;  %v6221_v53 = vpop.f32.mrb[245].mxu0 }
 0x3ff   : > { %v6222_v63 = vpop.f32.mrb[246].mxu0 }
 0x400   : > { %v6597_v34 = vadd.f32 %v6477_v8, %v12236_v36  ;;  %v6480_v46 = vadd.f32 %v12431_v13, %v6222_v63  ;;  %v6224_v7 = vpop.f32.mrb[247].mxu0  ;;  %v6823_v8 = vmax.f32 %v6767_v24, 0.0  ;;  %v13131_v24 = vld [vmem:[#allocation15_spill] sm:$0xff] }
 0x402   : > { %v6772_v2 = vadd.f32 %v12360_v16, %v6597_v34  ;;  %v6598_v19 = vadd.f32 %v6480_v46, %v12245_v12  ;;  %v6770_v46 = vadd.f32 %v12360_v16, %v6595_v56 }
 0x404   : > { %v6773_v4 = vadd.f32 %v12360_v16, %v6598_v19  ;;  %v6828_v36 = vmax.f32 %v6772_v2, 0.0  ;;  %v6827_v19 = vmax.f32 %v6771_v25, 0.0 }
 0x405   : > { %v6227_v35 = vpop.f32.mrb[248].mxu0 }
 0x406   : > { %v6829_v11 = vmax.f32 %v6773_v4, 0.0  ;;  %v6485_v13 = vadd.f32 %v12452_v1, %v6227_v35  ;;  %v6229_v22 = vpop.f32.mrb[249].mxu0  ;;  %v6766_v1 = vadd.f32 %v12360_v16, %v12553_v48  ;;  %v6826_v35 = vmax.f32 %v6770_v46, 0.0 }
 0x407   : > { %v6230_v33 = vpop.f32.mrb[250].mxu0 }
 0x408   : > { %v12592_v41 = vpack.c.bf16 %v6829_v11, %v6828_v36  ;;  %v6599_v12 = vadd.f32 %v6485_v13, %v12258_v38  ;;  %v6488_v15 = vadd.f32 %v12460_v57, %v6230_v33  ;;  %v6232_v17 = vpop.f32.mrb[251].mxu0  ;;  %v6822_v63 = vmax.f32 %v6766_v1, 0.0 }
 0x409   : > { %v12619_v56 = vpack.c.bf16 %v6827_v19, %v6826_v35 }
 0x40a   : > { %v6600_v27 = vadd.f32 %v6488_v15, %v12267_v6  ;;  %v12609_v48 = vpack.c.bf16 %v6823_v8, %v6822_v63  ;;  %v13130_v15 = vld [vmem:[#allocation14_spill] sm:$0xff]  ;;  %v13132_v63 = vld [vmem:[#allocation16_spill] sm:$0xff] }
 0x40c   : > { %v6775_v36 = vadd.f32 %v12360_v16, %v6600_v27 }
 0x40d   : > { %v6235_v39 = vpop.f32.mrb[252].mxu0 }
 0x40e   : > { %v6493_v26 = vadd.f32 %v12444_v10, %v6235_v39  ;;  %v6237_v44 = vpop.f32.mrb[253].mxu0  ;;  %v6831_v60 = vmax.f32 %v6775_v36, 0.0 }
 0x40f   : > { %v6238_v61 = vpop.f32.mrb[254].mxu0 }
 0x410   : > { %v6601_v38 = vadd.f32 %v6493_v26, %v12254_v37  ;;  %v6496_v57 = vadd.f32 %v12454_v45, %v6238_v61  ;;  %v6240_v53 = vpop.f32.mrb[255].mxu0 }
 0x412   : > { %v6776_v6 = vadd.f32 %v12360_v16, %v6601_v38  ;;  %v6602_v59 = vadd.f32 %v6496_v57, %v12263_v5 }
 0x414   : > { %v6777_v34 = vadd.f32 %v12360_v16, %v6602_v59  ;;  %v6832_v7 = vmax.f32 %v6776_v6, 0.0 }
 0x415   : > { %v6243_v10 = vpop.f32.mrb[0].mxu0 }
 0x416   : > { %v6833_v49 = vmax.f32 %v6777_v34, 0.0  ;;  %v6501_v37 = vadd.f32 %v12468_v42, %v6243_v10  ;;  %v6245_v45 = vpop.f32.mrb[1].mxu0  ;;  %v6774_v42 = vadd.f32 %v12360_v16, %v6599_v12  ;;  %v13133_v10 = vld [vmem:[#allocation19_spill] sm:$0xff] }
 0x417   : > { %v6246_v2 = vpop.f32.mrb[2].mxu0  ;;  %v13134_v45 = vld [vmem:[#allocation27_spill] sm:$0xff] }
 0x418   : > { %v12613_v40 = vpack.c.bf16 %v6833_v49, %v6832_v7  ;;  %v6603_v5 = vadd.f32 %v6501_v37, %v12274_v50  ;;  %v6504_v43 = vadd.f32 %v12480_v52, %v6246_v2  ;;  %v6248_v4 = vpop.f32.mrb[3].mxu0  ;;  %v6830_v18 = vmax.f32 %v6774_v42, 0.0 }
 0x419   : > { %v13135_v4 = vld [vmem:[#allocation21_spill] sm:$0xff] }
 0x41a   : > { %v6604_v62 = vadd.f32 %v6504_v43, %v12283_v58  ;;  %v12629_v12 = vpack.c.bf16 %v6831_v60, %v6830_v18  ;;  %v6778_v26 = vadd.f32 %v12360_v16, %v6603_v5 }
 0x41c   : > { %v6779_v39 = vadd.f32 %v12360_v16, %v6604_v62  ;;  %v6834_v34 = vmax.f32 %v6778_v26, 0.0  ;;  %v13136_v62 = vld [vmem:[#allocation49_spill] sm:$0xff] }
 0x41d   : > { %v6251_v11 = vpop.f32.mrb[4].mxu0 }
 0x41e   : > { %v6509_v13 = vadd.f32 %v12465_v51, %v6251_v11  ;;  %v6253_v22 = vpop.f32.mrb[5].mxu0  ;;  %v6835_v57 = vmax.f32 %v6779_v39, 0.0 }
 0x41f   : > { %v6254_v33 = vpop.f32.mrb[6].mxu0 }
 0x420   : > { %v6605_v50 = vadd.f32 %v6509_v13, %v13130_v15  ;;  %v6512_v52 = vadd.f32 %v12474_v47, %v6254_v33  ;;  %v6256_v17 = vpop.f32.mrb[7].mxu0  ;;  %v12639_v49 = vpack.c.bf16 %v6835_v57, %v6834_v34  ;;  %v13137_v13 = vld [vmem:[#allocation18_spill] sm:$0xff] }
 0x422   : > { %v6780_v58 = vadd.f32 %v12360_v16, %v6605_v50  ;;  %v6606_v27 = vadd.f32 %v6512_v52, %v13131_v24 }
 0x424   : > { %v6781_v1 = vadd.f32 %v12360_v16, %v6606_v27  ;;  %v6836_v44 = vmax.f32 %v6780_v58, 0.0  ;;  %v13138_v27 = vld [vmem:[#allocation20_spill] sm:$0xff] }
 0x425   : > { %v6259_v51 = vpop.f32.mrb[8].mxu0 }
 0x426   : > { %v6837_v61 = vmax.f32 %v6781_v1, 0.0  ;;  %v6517_v8 = vadd.f32 %v12493_v21, %v6259_v51  ;;  %v6261_v47 = vpop.f32.mrb[9].mxu0 }
 0x427   : > { %v6262_v38 = vpop.f32.mrb[10].mxu0 }
 0x428   : > { %v12633_v53 = vpack.c.bf16 %v6837_v61, %v6836_v44  ;;  %v6607_v6 = vadd.f32 %v6517_v8, %v13132_v63  ;;  %v6520_v59 = vadd.f32 %v12501_v55, %v6262_v38  ;;  %v6264_v25 = vpop.f32.mrb[11].mxu0  ;;  %v13139_v44 = vld [vmem:[#allocation22_spill] sm:$0xff] }
 0x42a   : > { %v6608_v46 = vadd.f32 %v6520_v59, %v13133_v10  ;;  %v6782_v21 = vadd.f32 %v12360_v16, %v6607_v6  ;;  %v13140_v59 = vld [vmem:[#allocation24_spill] sm:$0xff] }
 0x42c   : > { %v6783_v7 = vadd.f32 %v12360_v16, %v6608_v46  ;;  %v6838_v11 = vmax.f32 %v6782_v21, 0.0 }
 0x42d   : > { %v6267_v37 = vpop.f32.mrb[12].mxu0 }
 0x42e   : > { %v6525_v2 = vadd.f32 %v13134_v45, %v6267_v37  ;;  %v6269_v19 = vpop.f32.mrb[13].mxu0  ;;  %v6839_v43 = vmax.f32 %v6783_v7, 0.0  ;;  %v13141_v7 = vld [vmem:[#allocation23_spill] sm:$0xff] }
 0x42f   : > { %v6270_v5 = vpop.f32.mrb[14].mxu0 }
 0x430   : > { %v6609_v35 = vadd.f32 %v6525_v2, %v13135_v4  ;;  %v6528_v55 = vadd.f32 %v13136_v62, %v6270_v5  ;;  %v6272_v36 = vpop.f32.mrb[15].mxu0  ;;  %v12648_v60 = vpack.c.bf16 %v6839_v43, %v6838_v11  ;;  %v13143_v11 = vld [vmem:[#allocation25_spill] sm:$0xff] }
 0x432   : > { %v6784_v42 = vadd.f32 %v12360_v16, %v6609_v35  ;;  %v6610_v22 = vadd.f32 %v6528_v55, %v13137_v13  ;;  %v13142_v35 = vld [vmem:[#allocation28_spill] sm:$0xff] }
 0x434   : > { %v6785_v33 = vadd.f32 %v12360_v16, %v6610_v22  ;;  %v6840_v50 = vmax.f32 %v6784_v42, 0.0 }
 0x435   : > { %v6275_v15 = vpop.f32.mrb[16].mxu0 }
 0x436   : > { %v6841_v52 = vmax.f32 %v6785_v33, 0.0  ;;  %v6533_v17 = vadd.f32 %v12509_v32, %v6275_v15  ;;  %v6277_v18 = vpop.f32.mrb[17].mxu0 }
 0x437   : > { %v6278_v58 = vpop.f32.mrb[18].mxu0  ;;  %v13145_v18 = vld [vmem:[#allocation31_spill] sm:$0xff] }
 0x438   : > { %v12651_v24 = vpack.c.bf16 %v6841_v52, %v6840_v50  ;;  %v6611_v39 = vadd.f32 %v6533_v17, %v13138_v27  ;;  %v6536_v1 = vadd.f32 %v12521_v31, %v6278_v58  ;;  %v6280_v51 = vpop.f32.mrb[19].mxu0  ;;  %v13144_v50 = vld [vmem:[#allocation36_spill] sm:$0xff]  ;;  %v13146_v27 = vld [vmem:[#allocation33_spill] sm:$0xff] }
 0x43a   : > { %v6786_v26 = vadd.f32 %v12360_v16, %v6611_v39  ;;  %v6612_v61 = vadd.f32 %v6536_v1, %v13139_v44 }
 0x43c   : > { %v6787_v8 = vadd.f32 %v12360_v16, %v6612_v61  ;;  %v6842_v38 = vmax.f32 %v6786_v26, 0.0  ;;  %v13147_v26 = vld [vmem:[#allocation29_spill] sm:$0xff] }
 0x43d   : > { %v6283_v47 = vpop.f32.mrb[20].mxu0 }
 0x43e   : > { %v6843_v57 = vmax.f32 %v6787_v8, 0.0  ;;  %v6541_v32 = vadd.f32 %v12506_v9, %v6283_v47  ;;  %v6285_v63 = vpop.f32.mrb[21].mxu0 }
 0x43f   : > { %v6286_v6 = vpop.f32.mrb[22].mxu0 }
 0x440   : > { %v6613_v25 = vadd.f32 %v6541_v32, %v13140_v59  ;;  %v6544_v34 = vadd.f32 %v12515_v3, %v6286_v6  ;;  %v6288_v10 = vpop.f32.mrb[23].mxu0  ;;  %v12661_v31 = vpack.c.bf16 %v6843_v57, %v6842_v38  ;;  %v13148_v57 = vld [vmem:[#allocation39_spill] sm:$0xff]  ;;  %v13149_v6 = vld [vmem:[#allocation30_spill] sm:$0xff] }
 0x441   : > { %v13150_v10 = vld [vmem:[#allocation44_spill] sm:$0xff] }
 0x442   : > { %v6788_v46 = vadd.f32 %v12360_v16, %v6613_v25  ;;  %v6614_v37 = vadd.f32 %v6544_v34, %v13141_v7  ;;  %v13151_v7 = vld [vmem:[#allocation34_spill] sm:$0xff] }
 0x444   : > { %v6789_v21 = vadd.f32 %v12360_v16, %v6614_v37  ;;  %v6844_v2 = vmax.f32 %v6788_v46, 0.0 }
 0x445   : > { %v6291_v45 = vpop.f32.mrb[24].mxu0 }
 0x446   : > { %v6845_v19 = vmax.f32 %v6789_v21, 0.0  ;;  %v6549_v9 = vadd.f32 %v12534_v23, %v6291_v45  ;;  %v6293_v5 = vpop.f32.mrb[25].mxu0  ;;  %v13152_v45 = vld [vmem:[#allocation46_spill] sm:$0xff] }
 0x447   : > { %v6294_v43 = vpop.f32.mrb[26].mxu0 }
 0x448   : > { %v12667_v4 = vpack.c.bf16 %v6845_v19, %v6844_v2  ;;  %v6615_v3 = vadd.f32 %v6549_v9, %v13142_v35  ;;  %v6552_v62 = vadd.f32 %v12542_v28, %v6294_v43  ;;  %v6296_v55 = vpop.f32.mrb[27].mxu0  ;;  %v13153_v19 = vld [vmem:[#allocation26_spill] sm:$0xff]  ;;  %v13154_v43 = vld [vmem:[#allocation48_spill] sm:$0xff] }
 0x44a   : > { %v6790_v36 = vadd.f32 %v12360_v16, %v6615_v3  ;;  %v6616_v42 = vadd.f32 %v6552_v62, %v13143_v11  ;;  %v13155_v62 = vld [vmem:[#allocation8_spill] sm:$0xff] }
 0x44c   : > { %v6791_v13 = vadd.f32 %v12360_v16, %v6616_v42  ;;  %v6846_v33 = vmax.f32 %v6790_v36, 0.0 }
 0x44d   : > { %v6299_v22 = vpop.f32.mrb[28].mxu0 }
 0x44e   : > { %v6847_v15 = vmax.f32 %v6791_v13, 0.0  ;;  %v6557_v23 = vadd.f32 %v13144_v50, %v6299_v22  ;;  %v6301_v52 = vpop.f32.mrb[29].mxu0 }
 0x44f   : > { %v6302_v17 = vpop.f32.mrb[30].mxu0  ;;  %v13157_v52 = vld [vmem:[#allocation42_spill] sm:$0xff] }
 0x450   : > { %v6617_v58 = vadd.f32 %v6557_v23, %v13145_v18  ;;  %v6560_v39 = vadd.f32 %v13146_v27, %v6302_v17  ;;  %v6304_v1 = vpop.f32.mrb[31].mxu0  ;;  %v6876_v28 = vpack.c.bf16 %v6847_v15, %v6846_v33  ;;  %v13156_v23 = vld [vmem:[#allocation47_spill] sm:$0xff]  ;;  %v13158_v17 = vld [vmem:[#allocation41_spill] sm:$0xff]  ;;  %v13162_v27 = vld [vmem:[#allocation32_spill] sm:$0xff] }
 0x451   : > { %v13159_v18 = vld [vmem:[#allocation35_spill] sm:$0xff] }
 0x452   : > { %v6792_v51 = vadd.f32 %v12360_v16, %v6617_v58  ;;  %v6618_v44 = vadd.f32 %v6560_v39, %v13147_v26  ;;  %v13160_v58 = vld [vmem:[#allocation45_spill] sm:$0xff]  ;;  %v8501_v39 = vld [vmem:[%s9539_s18 + $0x18] sm:$0xff]  }
 0x454   : > { %v6793_v61 = vadd.f32 %v12360_v16, %v6618_v44  ;;  %v6848_v47 = vmax.f32 %v6792_v51, 0.0 }
 0x455   : > { %v9027_v8 = vpop.f32.mrb[32].mxu0 }
 0x456   : > { %v6849_v38 = vmax.f32 %v6793_v61, 0.0  ;;  %v6349_v32 = vadd.f32 %v9027_v8, %v13148_v57  ;;  %v6340_v63 = vpop.f32.mrb[33].mxu0  ;;  %v8261_v61 = vunpack.c.l.bf16 %v8501_v39 }
 0x457   : > { %v6341_v59 = vadd.f32 %v6340_v63, %v13149_v6  ;;  %v9028_v25 = vpop.f32.mrb[34].mxu0 }
 0x458   : > { %v6877_v34 = vpack.c.bf16 %v6849_v38, %v6848_v47  ;;  %v6565_v46 = vadd.f32 %v6349_v32, %v13150_v10  ;;  %v6352_v37 = vadd.f32 %v9028_v25, %v13151_v7  ;;  %v6343_v21 = vpop.f32.mrb[35].mxu0 }
 0x459   : > { %v6563_v2 = vadd.f32 %v6341_v59, %v13152_v45  ;;  %v6344_v9 = vadd.f32 %v6343_v21, %v13153_v19  ;;  %v8262_v59 = vunpack.c.h.bf16 %v8501_v39  ;;  %v8503_v19 = vld [vmem:[%s9539_s18 + $0x28] sm:$0xff]  }
 0x45a   : > { %v6740_v5 = vadd.f32 %v12360_v16, %v6565_v46  ;;  %v6566_v35 = vadd.f32 %v6352_v37, %v13154_v43 }
 0x45b   : > { %v6738_v3 = vadd.f32 %v12360_v16, %v6563_v2  ;;  %v6564_v55 = vadd.f32 %v6344_v9, %v13155_v62  ;;  %v8269_v62 = vunpack.c.l.bf16 %v8503_v19 }
 0x45c   : > { %v6741_v36 = vadd.f32 %v12360_v16, %v6566_v35  ;;  %v6796_v42 = vmax.f32 %v6740_v5, 0.0  ;;  %v8502_v5 = vld [vmem:[%s9539_s18 + $0x20] sm:$0xff]  }
 0x45d   : > { %v6739_v11 = vadd.f32 %v12360_v16, %v6564_v55  ;;  %v6794_v22 = vmax.f32 %v6738_v3, 0.0  ;;  %v13161_v16 = vld [vmem:[#allocation5_spill] sm:$0xff] }
 0x45e   : > { %v6797_v13 = vmax.f32 %v6741_v36, 0.0 }
 0x45f   : > { %v6795_v33 = vmax.f32 %v6739_v11, 0.0 }
 0x460   : > { %v6851_v15 = vpack.c.bf16 %v6797_v13, %v6796_v42  ;;  %v8265_v42 = vunpack.c.l.bf16 %v8502_v5 }
 0x461   : > { %v6850_v50 = vpack.c.bf16 %v6795_v33, %v6794_v22 }
 0x463   : > { %9097 = vmatprep.mubr.bf16.mxu1 %v6850_v50 }
 0x464   : > { %9098 = vmatmul.mubr.bf16.vlgmr.msra.gmra.mrb[20].mxu1 %v6851_v15  ;;  %v8270_v15 = vunpack.c.h.bf16 %v8503_v19 }
 0x465   : > { %9101 = vmatprep.mubr.bf16.mxu1 %v13156_v23 }
 0x46c   : > { %9102 = vmatmul.mubr.bf16.gmra.mrb[24].mxu1 %v13157_v52 }
 0x46d   : > { %9105 = vmatprep.mubr.bf16.mxu1 %v13158_v17  ;;  %v8266_v17 = vunpack.c.h.bf16 %v8502_v5 }
 0x474   : > { %9106 = vmatmul.mubr.bf16.gmra.mrb[28].mxu1 %v13159_v18 }
 0x475   : > { %9109 = vmatprep.mubr.bf16.mxu1 %v12548_v54  ;;  %v8499_v54 = vld [vmem:[%s9539_s18 + $0x8] sm:$0xff]  }
 0x47c   : > { %9110 = vmatmul.mubr.bf16.gmra.mrb[32].mxu1 %v13160_v58 }
 0x47d   : > { %9113 = vmatprep.mubr.bf16.mxu1 %v12568_v30  ;;  %v12721_v30 = vld [vmem:[%s12859_s11] ss:$0 sm:$0xff] }
 0x484   : > { %9114 = vmatmul.mubr.bf16.gmra.mrb[36].mxu1 %v13161_v16 }
 0x485   : > { %9117 = vmatprep.mubr.bf16.mxu1 %v12587_v29 }
 0x48c   : > { %9118 = vmatmul.mubr.bf16.gmra.mrb[40].mxu1 %v13162_v27 }
 0x48d   : > { %9121 = vmatprep.mubr.bf16.mxu1 %v12598_v14 }
 0x494   : > { %9122 = vmatmul.mubr.bf16.gmra.mrb[44].mxu1 %v12550_v20  ;;  %v8248_v20 = vld [vmem:[%s9539_s18] sm:$0xff]  }
 0x495   : > { %9125 = vmatprep.mubr.bf16.mxu1 %v12609_v48 }
 0x49c   : > { %9126 = vmatmul.mubr.bf16.gmra.mrb[48].mxu1 %v12570_v0  ;;  %v8253_v0 = vunpack.c.l.bf16 %v8499_v54 }
 0x49d   : > { %9129 = vmatprep.mubr.bf16.mxu1 %v12619_v56 }
 0x4a4   : > { %9130 = vmatmul.mubr.bf16.gmra.mrb[52].mxu1 %v12592_v41  ;;  %v8249_v41 = vunpack.c.l.bf16 %v8248_v20 }
 0x4a5   : > { %9133 = vmatprep.mubr.bf16.mxu1 %v12629_v12 }
 0x4ac   : > { %9134 = vmatmul.mubr.bf16.gmra.mrb[56].mxu1 %v12613_v40  ;;  %v8254_v40 = vunpack.c.h.bf16 %v8499_v54 }
 0x4ad   : > { %9137 = vmatprep.mubr.bf16.mxu1 %v12639_v49 }
 0x4b4   : > { %9138 = vmatmul.mubr.bf16.gmra.mrb[60].mxu1 %v12633_v53  ;;  %v8250_v53 = vunpack.c.h.bf16 %v8248_v20  ;;  %v8505_v20 = vld [vmem:[%s9539_s18 + $0x38] sm:$0xff]  }
 0x4b5   : > { %9141 = vmatprep.mubr.bf16.mxu1 %v12648_v60 }
 0x4bc   : > { %9142 = vmatmul.mubr.bf16.gmra.mrb[64].mxu1 %v12651_v24 }
 0x4bd   : > { %9145 = vmatprep.mubr.bf16.mxu1 %v12661_v31 }
 0x4c4   : > { %9146 = vmatmul.mubr.bf16.gmra.mrb[68].mxu1 %v12667_v4 }
 0x4c5   : > { %9149 = vmatprep.mubr.bf16.mxu1 %v6876_v28  ;;  %v8500_v28 = vld [vmem:[%s9539_s18 + $0x10] sm:$0xff]  }
 0x4c6   : > { %v8257_v57 = vunpack.c.l.bf16 %v8500_v28  ;;  %v8258_v46 = vunpack.c.h.bf16 %v8500_v28 }
 0x4cc   : > { %9150 = vmatmul.mubr.bf16.gmra.mrb[72].mxu1 %v6877_v34 }
 0x537   : > { %v9099_v29 = vpop.f32.mrb[20].mxu1 }
 0x538   : > { %v6992_v14 = vadd.f32 %v9099_v29, %v12721_v30  ;;  %v6983_v48 = vpop.f32.mrb[21].mxu1  ;;  %v8504_v29 = vld [vmem:[%s9539_s18 + $0x30] sm:$0xff]  }
 0x539   : > { %v6984_v56 = vadd.f32 %v12721_v30, %v6983_v48  ;;  %v9100_v12 = vpop.f32.mrb[22].mxu1 }
 0x53a   : > { %v7320_v49 = vadd.f32 %v8253_v0, %v6992_v14  ;;  %v6995_v60 = vadd.f32 %v9100_v12, %v12721_v30  ;;  %v6986_v24 = vpop.f32.mrb[23].mxu1 }
 0x53b   : > { %v7318_v31 = vadd.f32 %v8249_v41, %v6984_v56  ;;  %v6987_v4 = vadd.f32 %v12721_v30, %v6986_v24 }
 0x53c   : > { %v7321_v1 = vadd.f32 %v8254_v40, %v6995_v60  ;;  %v7376_v26 = vmax.f32 %v7320_v49, 0.0  ;;  %v8277_v40 = vunpack.c.l.bf16 %v8505_v20  ;;  %v8273_v49 = vunpack.c.l.bf16 %v8504_v29 }
 0x53d   : > { %v7319_v51 = vadd.f32 %v8250_v53, %v6987_v4  ;;  %v7374_v8 = vmax.f32 %v7318_v31, 0.0  ;;  %v8278_v4 = vunpack.c.h.bf16 %v8505_v20 }
 0x53e   : > { %v7377_v44 = vmax.f32 %v7321_v1, 0.0 }
 0x53f   : > { %v7375_v47 = vmax.f32 %v7319_v51, 0.0  ;;  %v9103_v38 = vpop.f32.mrb[24].mxu1  ;;  %v8274_v51 = vunpack.c.h.bf16 %v8504_v29 }
 0x540   : > { %v8367_v32 = vpack.c.bf16 %v7377_v44, %v7376_v26  ;;  %v7008_v63 = vadd.f32 %v9103_v38, %v12721_v30  ;;  %v6999_v6 = vpop.f32.mrb[25].mxu1  ;;  %v8507_v38 = vld [vmem:[%s9539_s18 + $0x48] sm:$0xff]  }
 0x541   : > { %v8362_v25 = vpack.c.bf16 %v7375_v47, %v7374_v8  ;;  %v7000_v34 = vadd.f32 %v12721_v30, %v6999_v6  ;;  %v9104_v10 = vpop.f32.mrb[26].mxu1 }
 0x542   : > { %8526 = vst [vmem:[%s12733_s21 + $0x8] sm:$0xff] %v8367_v32   ;;  %v7324_v7 = vadd.f32 %v8261_v61, %v7008_v63  ;;  %v7011_v37 = vadd.f32 %v9104_v10, %v12721_v30  ;;  %v7002_v21 = vpop.f32.mrb[27].mxu1  ;;  %v8506_v32 = vld [vmem:[%s9539_s18 + $0x40] sm:$0xff]  }
 0x543   : > { %8363 = vst [vmem:[%s12733_s21] sm:$0xff] %v8362_v25   ;;  %v7322_v45 = vadd.f32 %v8257_v57, %v7000_v34  ;;  %v7003_v2 = vadd.f32 %v12721_v30, %v7002_v21  ;;  %v8285_v25 = vunpack.c.l.bf16 %v8507_v38 }
 0x544   : > { %v7325_v9 = vadd.f32 %v8262_v59, %v7011_v37  ;;  %v7380_v35 = vmax.f32 %v7324_v7, 0.0  ;;  %v8281_v7 = vunpack.c.l.bf16 %v8506_v32 }
 0x545   : > { %v7323_v43 = vadd.f32 %v8258_v46, %v7003_v2  ;;  %v7378_v55 = vmax.f32 %v7322_v45, 0.0  ;;  %v8286_v2 = vunpack.c.h.bf16 %v8507_v38 }
 0x546   : > { %v7381_v3 = vmax.f32 %v7325_v9, 0.0 }
 0x547   : > { %v7379_v36 = vmax.f32 %v7323_v43, 0.0  ;;  %v9107_v11 = vpop.f32.mrb[28].mxu1  ;;  %v8282_v43 = vunpack.c.h.bf16 %v8506_v32 }
 0x548   : > { %v8377_v13 = vpack.c.bf16 %v7381_v3, %v7380_v35  ;;  %v7024_v22 = vadd.f32 %v9107_v11, %v12721_v30  ;;  %v7015_v33 = vpop.f32.mrb[29].mxu1  ;;  %v8509_v11 = vld [vmem:[%s9539_s18 + $0x58] sm:$0xff]  }
 0x549   : > { %v8372_v50 = vpack.c.bf16 %v7379_v36, %v7378_v55  ;;  %v7016_v23 = vadd.f32 %v12721_v30, %v7015_v33  ;;  %v9108_v52 = vpop.f32.mrb[30].mxu1 }
 0x54a   : > { %8528 = vst [vmem:[%s12733_s21 + $0x18] sm:$0xff] %v8377_v13   ;;  %v7328_v18 = vadd.f32 %v8269_v62, %v7024_v22  ;;  %v7027_v58 = vadd.f32 %v9108_v52, %v12721_v30  ;;  %v7018_v16 = vpop.f32.mrb[31].mxu1  ;;  %v8508_v13 = vld [vmem:[%s9539_s18 + $0x50] sm:$0xff]  }
 0x54b   : > { %8527 = vst [vmem:[%s12733_s21 + $0x10] sm:$0xff] %v8372_v50   ;;  %v7326_v27 = vadd.f32 %v8265_v42, %v7016_v23  ;;  %v7019_v54 = vadd.f32 %v12721_v30, %v7018_v16  ;;  %v8293_v50 = vunpack.c.l.bf16 %v8509_v11 }
 0x54c   : > { %v7329_v0 = vadd.f32 %v8270_v15, %v7027_v58  ;;  %v7384_v14 = vmax.f32 %v7328_v18, 0.0  ;;  %v8289_v18 = vunpack.c.l.bf16 %v8508_v13 }
 0x54d   : > { %v7327_v41 = vadd.f32 %v8266_v17, %v7019_v54  ;;  %v7382_v56 = vmax.f32 %v7326_v27, 0.0  ;;  %v8294_v54 = vunpack.c.h.bf16 %v8509_v11 }
 0x54e   : > { %v7385_v48 = vmax.f32 %v7329_v0, 0.0 }
 0x54f   : > { %v7383_v12 = vmax.f32 %v7327_v41, 0.0  ;;  %v9111_v53 = vpop.f32.mrb[32].mxu1  ;;  %v8290_v41 = vunpack.c.h.bf16 %v8508_v13 }
 0x550   : > { %v8387_v60 = vpack.c.bf16 %v7385_v48, %v7384_v14  ;;  %v7040_v24 = vadd.f32 %v9111_v53, %v12721_v30  ;;  %v7031_v31 = vpop.f32.mrb[33].mxu1  ;;  %v8511_v53 = vld [vmem:[%s9539_s18 + $0x68] sm:$0xff]  }
 0x551   : > { %v8382_v39 = vpack.c.bf16 %v7383_v12, %v7382_v56  ;;  %v7032_v1 = vadd.f32 %v12721_v30, %v7031_v31  ;;  %v9112_v28 = vpop.f32.mrb[34].mxu1 }
 0x552   : > { %8530 = vst [vmem:[%s12733_s21 + $0x28] sm:$0xff] %v8387_v60   ;;  %v7332_v26 = vadd.f32 %v8277_v40, %v7040_v24  ;;  %v7043_v44 = vadd.f32 %v9112_v28, %v12721_v30  ;;  %v7034_v61 = vpop.f32.mrb[35].mxu1  ;;  %v8510_v60 = vld [vmem:[%s9539_s18 + $0x60] sm:$0xff]  }
 0x553   : > { %8529 = vst [vmem:[%s12733_s21 + $0x20] sm:$0xff] %v8382_v39   ;;  %v7330_v8 = vadd.f32 %v8273_v49, %v7032_v1  ;;  %v7035_v47 = vadd.f32 %v12721_v30, %v7034_v61  ;;  %v8301_v39 = vunpack.c.l.bf16 %v8511_v53 }
 0x554   : > { %v7333_v57 = vadd.f32 %v8278_v4, %v7043_v44  ;;  %v7388_v6 = vmax.f32 %v7332_v26, 0.0  ;;  %v8297_v26 = vunpack.c.l.bf16 %v8510_v60 }
 0x555   : > { %v7331_v63 = vadd.f32 %v8274_v51, %v7035_v47  ;;  %v7386_v34 = vmax.f32 %v7330_v8, 0.0  ;;  %v8302_v47 = vunpack.c.h.bf16 %v8511_v53 }
 0x556   : > { %v7389_v59 = vmax.f32 %v7333_v57, 0.0 }
 0x557   : > { %v7387_v10 = vmax.f32 %v7331_v63, 0.0  ;;  %v9115_v46 = vpop.f32.mrb[36].mxu1  ;;  %v8298_v63 = vunpack.c.h.bf16 %v8510_v60 }
 0x558   : > { %v8397_v37 = vpack.c.bf16 %v7389_v59, %v7388_v6  ;;  %v7056_v21 = vadd.f32 %v9115_v46, %v12721_v30  ;;  %v7047_v45 = vpop.f32.mrb[37].mxu1  ;;  %v8513_v46 = vld [vmem:[%s9539_s18 + $0x78] sm:$0xff]  }
 0x559   : > { %v8392_v19 = vpack.c.bf16 %v7387_v10, %v7386_v34  ;;  %v7048_v9 = vadd.f32 %v12721_v30, %v7047_v45  ;;  %v9116_v5 = vpop.f32.mrb[38].mxu1 }
 0x55a   : > { %8532 = vst [vmem:[%s12733_s21 + $0x38] sm:$0xff] %v8397_v37   ;;  %v7336_v35 = vadd.f32 %v8285_v25, %v7056_v21  ;;  %v7059_v3 = vadd.f32 %v9116_v5, %v12721_v30  ;;  %v7050_v62 = vpop.f32.mrb[39].mxu1  ;;  %v8512_v37 = vld [vmem:[%s9539_s18 + $0x70] sm:$0xff]  }
 0x55b   : > { %8531 = vst [vmem:[%s12733_s21 + $0x30] sm:$0xff] %v8392_v19   ;;  %v7334_v55 = vadd.f32 %v8281_v7, %v7048_v9  ;;  %v7051_v36 = vadd.f32 %v12721_v30, %v7050_v62  ;;  %v8309_v19 = vunpack.c.l.bf16 %v8513_v46 }
 0x55c   : > { %v7337_v42 = vadd.f32 %v8286_v2, %v7059_v3  ;;  %v7392_v33 = vmax.f32 %v7336_v35, 0.0  ;;  %v8305_v35 = vunpack.c.l.bf16 %v8512_v37 }
 0x55d   : > { %v7335_v22 = vadd.f32 %v8282_v43, %v7051_v36  ;;  %v7390_v23 = vmax.f32 %v7334_v55, 0.0  ;;  %v8310_v36 = vunpack.c.h.bf16 %v8513_v46 }
 0x55e   : > { %v7393_v15 = vmax.f32 %v7337_v42, 0.0 }
 0x55f   : > { %v7391_v52 = vmax.f32 %v7335_v22, 0.0  ;;  %v9119_v17 = vpop.f32.mrb[40].mxu1  ;;  %v8306_v22 = vunpack.c.h.bf16 %v8512_v37 }
 0x560   : > { %v8407_v58 = vpack.c.bf16 %v7393_v15, %v7392_v33  ;;  %v7072_v16 = vadd.f32 %v9119_v17, %v12721_v30  ;;  %v7063_v27 = vpop.f32.mrb[41].mxu1  ;;  %v8515_v17 = vld [vmem:[%s9539_s18 + $0x88] sm:$0xff]  }
 0x561   : > { %v8402_v20 = vpack.c.bf16 %v7391_v52, %v7390_v23  ;;  %v7064_v0 = vadd.f32 %v12721_v30, %v7063_v27  ;;  %v9120_v29 = vpop.f32.mrb[42].mxu1 }
 0x562   : > { %8534 = vst [vmem:[%s12733_s21 + $0x48] sm:$0xff] %v8407_v58   ;;  %v7340_v14 = vadd.f32 %v8293_v50, %v7072_v16  ;;  %v7075_v48 = vadd.f32 %v9120_v29, %v12721_v30  ;;  %v7066_v40 = vpop.f32.mrb[43].mxu1  ;;  %v8514_v58 = vld [vmem:[%s9539_s18 + $0x80] sm:$0xff]  }
 0x563   : > { %8533 = vst [vmem:[%s12733_s21 + $0x40] sm:$0xff] %v8402_v20   ;;  %v7338_v56 = vadd.f32 %v8289_v18, %v7064_v0  ;;  %v7067_v12 = vadd.f32 %v12721_v30, %v7066_v40  ;;  %v8317_v20 = vunpack.c.l.bf16 %v8515_v17 }
 0x564   : > { %v7341_v49 = vadd.f32 %v8294_v54, %v7075_v48  ;;  %v7396_v31 = vmax.f32 %v7340_v14, 0.0  ;;  %v8313_v14 = vunpack.c.l.bf16 %v8514_v58 }
 0x565   : > { %v7339_v24 = vadd.f32 %v8290_v41, %v7067_v12  ;;  %v7394_v1 = vmax.f32 %v7338_v56, 0.0  ;;  %v8318_v12 = vunpack.c.h.bf16 %v8515_v17 }
 0x566   : > { %v7397_v4 = vmax.f32 %v7341_v49, 0.0 }
 0x567   : > { %v7395_v28 = vmax.f32 %v7339_v24, 0.0  ;;  %v9123_v51 = vpop.f32.mrb[44].mxu1  ;;  %v8314_v24 = vunpack.c.h.bf16 %v8514_v58 }
 0x568   : > { %v8417_v44 = vpack.c.bf16 %v7397_v4, %v7396_v31  ;;  %v7088_v61 = vadd.f32 %v9123_v51, %v12721_v30  ;;  %v7079_v8 = vpop.f32.mrb[45].mxu1  ;;  %v8517_v51 = vld [vmem:[%s9539_s18 + $0x98] sm:$0xff]  }
 0x569   : > { %v8412_v38 = vpack.c.bf16 %v7395_v28, %v7394_v1  ;;  %v7080_v57 = vadd.f32 %v12721_v30, %v7079_v8  ;;  %v9124_v32 = vpop.f32.mrb[46].mxu1 }
 0x56a   : > { %8536 = vst [vmem:[%s12733_s21 + $0x58] sm:$0xff] %v8417_v44   ;;  %v7344_v6 = vadd.f32 %v8301_v39, %v7088_v61  ;;  %v7091_v59 = vadd.f32 %v9124_v32, %v12721_v30  ;;  %v7082_v25 = vpop.f32.mrb[47].mxu1  ;;  %v8516_v44 = vld [vmem:[%s9539_s18 + $0x90] sm:$0xff]  }
 0x56b   : > { %8535 = vst [vmem:[%s12733_s21 + $0x50] sm:$0xff] %v8412_v38   ;;  %v7342_v34 = vadd.f32 %v8297_v26, %v7080_v57  ;;  %v7083_v10 = vadd.f32 %v12721_v30, %v7082_v25  ;;  %v8325_v38 = vunpack.c.l.bf16 %v8517_v51 }
 0x56c   : > { %v7345_v7 = vadd.f32 %v8302_v47, %v7091_v59  ;;  %v7400_v45 = vmax.f32 %v7344_v6, 0.0  ;;  %v8321_v6 = vunpack.c.l.bf16 %v8516_v44 }
 0x56d   : > { %v7343_v21 = vadd.f32 %v8298_v63, %v7083_v10  ;;  %v7398_v9 = vmax.f32 %v7342_v34, 0.0  ;;  %v8326_v10 = vunpack.c.h.bf16 %v8517_v51 }
 0x56e   : > { %v7401_v2 = vmax.f32 %v7345_v7, 0.0 }
 0x56f   : > { %v7399_v5 = vmax.f32 %v7343_v21, 0.0  ;;  %v9127_v43 = vpop.f32.mrb[48].mxu1  ;;  %v8322_v21 = vunpack.c.h.bf16 %v8516_v44 }
 0x570   : > { %v8427_v3 = vpack.c.bf16 %v7401_v2, %v7400_v45  ;;  %v7104_v62 = vadd.f32 %v9127_v43, %v12721_v30  ;;  %v7095_v55 = vpop.f32.mrb[49].mxu1  ;;  %v8519_v43 = vld [vmem:[%s9539_s18 + $0xa8] sm:$0xff]  }
 0x571   : > { %v8422_v11 = vpack.c.bf16 %v7399_v5, %v7398_v9  ;;  %v7096_v42 = vadd.f32 %v12721_v30, %v7095_v55  ;;  %v9128_v13 = vpop.f32.mrb[50].mxu1 }
 0x572   : > { %8538 = vst [vmem:[%s12733_s21 + $0x68] sm:$0xff] %v8427_v3   ;;  %v7348_v33 = vadd.f32 %v8309_v19, %v7104_v62  ;;  %v7107_v15 = vadd.f32 %v9128_v13, %v12721_v30  ;;  %v7098_v50 = vpop.f32.mrb[51].mxu1  ;;  %v8518_v3 = vld [vmem:[%s9539_s18 + $0xa0] sm:$0xff]  }
 0x573   : > { %8537 = vst [vmem:[%s12733_s21 + $0x60] sm:$0xff] %v8422_v11   ;;  %v7346_v23 = vadd.f32 %v8305_v35, %v7096_v42  ;;  %v7099_v52 = vadd.f32 %v12721_v30, %v7098_v50  ;;  %v8333_v11 = vunpack.c.l.bf16 %v8519_v43 }
 0x574   : > { %v7349_v18 = vadd.f32 %v8310_v36, %v7107_v15  ;;  %v7404_v27 = vmax.f32 %v7348_v33, 0.0  ;;  %v8329_v33 = vunpack.c.l.bf16 %v8518_v3 }
 0x575   : > { %v7347_v16 = vadd.f32 %v8306_v22, %v7099_v52  ;;  %v7402_v0 = vmax.f32 %v7346_v23, 0.0  ;;  %v8334_v52 = vunpack.c.h.bf16 %v8519_v43 }
 0x576   : > { %v7405_v54 = vmax.f32 %v7349_v18, 0.0 }
 0x577   : > { %v7403_v29 = vmax.f32 %v7347_v16, 0.0  ;;  %v9131_v41 = vpop.f32.mrb[52].mxu1  ;;  %v8330_v16 = vunpack.c.h.bf16 %v8518_v3 }
 0x578   : > { %v8437_v48 = vpack.c.bf16 %v7405_v54, %v7404_v27  ;;  %v7120_v40 = vadd.f32 %v9131_v41, %v12721_v30  ;;  %v7111_v56 = vpop.f32.mrb[53].mxu1  ;;  %v8521_v41 = vld [vmem:[%s9539_s18 + $0xb8] sm:$0xff]  }
 0x579   : > { %v8432_v53 = vpack.c.bf16 %v7403_v29, %v7402_v0  ;;  %v7112_v49 = vadd.f32 %v12721_v30, %v7111_v56  ;;  %v9132_v60 = vpop.f32.mrb[54].mxu1 }
 0x57a   : > { %8540 = vst [vmem:[%s12733_s21 + $0x78] sm:$0xff] %v8437_v48   ;;  %v7352_v31 = vadd.f32 %v8317_v20, %v7120_v40  ;;  %v7123_v4 = vadd.f32 %v9132_v60, %v12721_v30  ;;  %v7114_v39 = vpop.f32.mrb[55].mxu1  ;;  %v8520_v48 = vld [vmem:[%s9539_s18 + $0xb0] sm:$0xff]  }
 0x57b   : > { %8539 = vst [vmem:[%s12733_s21 + $0x70] sm:$0xff] %v8432_v53   ;;  %v7350_v1 = vadd.f32 %v8313_v14, %v7112_v49  ;;  %v7115_v28 = vadd.f32 %v12721_v30, %v7114_v39  ;;  %v8341_v53 = vunpack.c.l.bf16 %v8521_v41 }
 0x57c   : > { %v7353_v26 = vadd.f32 %v8318_v12, %v7123_v4  ;;  %v7408_v8 = vmax.f32 %v7352_v31, 0.0  ;;  %v8337_v31 = vunpack.c.l.bf16 %v8520_v48 }
 0x57d   : > { %v7351_v61 = vadd.f32 %v8314_v24, %v7115_v28  ;;  %v7406_v57 = vmax.f32 %v7350_v1, 0.0  ;;  %v8342_v28 = vunpack.c.h.bf16 %v8521_v41 }
 0x57e   : > { %v7409_v47 = vmax.f32 %v7353_v26, 0.0 }
 0x57f   : > { %v7407_v32 = vmax.f32 %v7351_v61, 0.0  ;;  %v9135_v63 = vpop.f32.mrb[56].mxu1  ;;  %v8338_v61 = vunpack.c.h.bf16 %v8520_v48 }
 0x580   : > { %v8447_v59 = vpack.c.bf16 %v7409_v47, %v7408_v8  ;;  %v7136_v25 = vadd.f32 %v9135_v63, %v12721_v30  ;;  %v7127_v34 = vpop.f32.mrb[57].mxu1  ;;  %v8523_v63 = vld [vmem:[%s9539_s18 + $0xc8] sm:$0xff]  }
 0x581   : > { %v8442_v46 = vpack.c.bf16 %v7407_v32, %v7406_v57  ;;  %v7128_v7 = vadd.f32 %v12721_v30, %v7127_v34  ;;  %v9136_v37 = vpop.f32.mrb[58].mxu1 }
 0x582   : > { %8542 = vst [vmem:[%s12733_s21 + $0x88] sm:$0xff] %v8447_v59   ;;  %v7356_v45 = vadd.f32 %v8325_v38, %v7136_v25  ;;  %v7139_v2 = vadd.f32 %v9136_v37, %v12721_v30  ;;  %v7130_v19 = vpop.f32.mrb[59].mxu1  ;;  %v8522_v59 = vld [vmem:[%s9539_s18 + $0xc0] sm:$0xff]  }
 0x583   : > { %8541 = vst [vmem:[%s12733_s21 + $0x80] sm:$0xff] %v8442_v46   ;;  %v7354_v9 = vadd.f32 %v8321_v6, %v7128_v7  ;;  %v7131_v5 = vadd.f32 %v12721_v30, %v7130_v19  ;;  %v8349_v46 = vunpack.c.l.bf16 %v8523_v63 }
 0x584   : > { %v7357_v35 = vadd.f32 %v8326_v10, %v7139_v2  ;;  %v7412_v55 = vmax.f32 %v7356_v45, 0.0  ;;  %v8345_v45 = vunpack.c.l.bf16 %v8522_v59 }
 0x585   : > { %v7355_v62 = vadd.f32 %v8322_v21, %v7131_v5  ;;  %v7410_v42 = vmax.f32 %v7354_v9, 0.0  ;;  %v8350_v5 = vunpack.c.h.bf16 %v8523_v63 }
 0x586   : > { %v7413_v36 = vmax.f32 %v7357_v35, 0.0 }
 0x587   : > { %v7411_v13 = vmax.f32 %v7355_v62, 0.0  ;;  %v9139_v22 = vpop.f32.mrb[60].mxu1  ;;  %v8346_v62 = vunpack.c.h.bf16 %v8522_v59 }
 0x588   : > { %v8457_v15 = vpack.c.bf16 %v7413_v36, %v7412_v55  ;;  %v7152_v50 = vadd.f32 %v9139_v22, %v12721_v30  ;;  %v7143_v23 = vpop.f32.mrb[61].mxu1  ;;  %v8525_v22 = vld [vmem:[%s9539_s18 + $0xd8] sm:$0xff]  }
 0x589   : > { %v8452_v17 = vpack.c.bf16 %v7411_v13, %v7410_v42  ;;  %v7144_v18 = vadd.f32 %v12721_v30, %v7143_v23  ;;  %v9140_v58 = vpop.f32.mrb[62].mxu1 }
 0x58a   : > { %8544 = vst [vmem:[%s12733_s21 + $0x98] sm:$0xff] %v8457_v15   ;;  %v7360_v27 = vadd.f32 %v8333_v11, %v7152_v50  ;;  %v7155_v54 = vadd.f32 %v9140_v58, %v12721_v30  ;;  %v7146_v20 = vpop.f32.mrb[63].mxu1  ;;  %v8524_v15 = vld [vmem:[%s9539_s18 + $0xd0] sm:$0xff]  }
 0x58b   : > { %8543 = vst [vmem:[%s12733_s21 + $0x90] sm:$0xff] %v8452_v17   ;;  %v7358_v0 = vadd.f32 %v8329_v33, %v7144_v18  ;;  %v7147_v29 = vadd.f32 %v12721_v30, %v7146_v20  ;;  %v8357_v17 = vunpack.c.l.bf16 %v8525_v22 }
 0x58c   : > { %v7361_v14 = vadd.f32 %v8334_v52, %v7155_v54  ;;  %v7416_v56 = vmax.f32 %v7360_v27, 0.0  ;;  %v8353_v27 = vunpack.c.l.bf16 %v8524_v15 }
 0x58d   : > { %v7359_v40 = vadd.f32 %v8330_v16, %v7147_v29  ;;  %v7414_v49 = vmax.f32 %v7358_v0, 0.0  ;;  %v8358_v29 = vunpack.c.h.bf16 %v8525_v22 }
 0x58e   : > { %v7417_v12 = vmax.f32 %v7361_v14, 0.0 }
 0x58f   : > { %v7415_v60 = vmax.f32 %v7359_v40, 0.0  ;;  %v9143_v24 = vpop.f32.mrb[64].mxu1  ;;  %v8354_v40 = vunpack.c.h.bf16 %v8524_v15 }
 0x590   : > { %v8467_v4 = vpack.c.bf16 %v7417_v12, %v7416_v56  ;;  %v7168_v39 = vadd.f32 %v9143_v24, %v12721_v30  ;;  %v7159_v1 = vpop.f32.mrb[65].mxu1 }
 0x591   : > { %v8462_v51 = vpack.c.bf16 %v7415_v60, %v7414_v49  ;;  %v7160_v26 = vadd.f32 %v12721_v30, %v7159_v1  ;;  %v9144_v44 = vpop.f32.mrb[66].mxu1 }
 0x592   : > { %8546 = vst [vmem:[%s12733_s21 + $0xa8] sm:$0xff] %v8467_v4   ;;  %v7364_v8 = vadd.f32 %v8341_v53, %v7168_v39  ;;  %v7171_v47 = vadd.f32 %v9144_v44, %v12721_v30  ;;  %v7162_v38 = vpop.f32.mrb[67].mxu1 }
 0x593   : > { %8545 = vst [vmem:[%s12733_s21 + $0xa0] sm:$0xff] %v8462_v51   ;;  %v7362_v57 = vadd.f32 %v8337_v31, %v7160_v26  ;;  %v7163_v32 = vadd.f32 %v12721_v30, %v7162_v38 }
 0x594   : > { %v7365_v6 = vadd.f32 %v8342_v28, %v7171_v47  ;;  %v7420_v34 = vmax.f32 %v7364_v8, 0.0 }
 0x595   : > { %v7363_v25 = vadd.f32 %v8338_v61, %v7163_v32  ;;  %v7418_v7 = vmax.f32 %v7362_v57, 0.0 }
 0x596   : > { %v7421_v10 = vmax.f32 %v7365_v6, 0.0 }
 0x597   : > { %v7419_v37 = vmax.f32 %v7363_v25, 0.0  ;;  %v9147_v21 = vpop.f32.mrb[68].mxu1 }
 0x598   : > { %v8477_v2 = vpack.c.bf16 %v7421_v10, %v7420_v34  ;;  %v7184_v19 = vadd.f32 %v9147_v21, %v12721_v30  ;;  %v7175_v9 = vpop.f32.mrb[69].mxu1 }
 0x599   : > { %v8472_v43 = vpack.c.bf16 %v7419_v37, %v7418_v7  ;;  %v7176_v35 = vadd.f32 %v12721_v30, %v7175_v9  ;;  %v9148_v3 = vpop.f32.mrb[70].mxu1 }
 0x59a   : > { %8548 = vst [vmem:[%s12733_s21 + $0xb8] sm:$0xff] %v8477_v2   ;;  %v7368_v55 = vadd.f32 %v8349_v46, %v7184_v19  ;;  %v7187_v36 = vadd.f32 %v9148_v3, %v12721_v30  ;;  %v7178_v11 = vpop.f32.mrb[71].mxu1 }
 0x59b   : > { %8547 = vst [vmem:[%s12733_s21 + $0xb0] sm:$0xff] %v8472_v43   ;;  %v7366_v42 = vadd.f32 %v8345_v45, %v7176_v35  ;;  %v7179_v13 = vadd.f32 %v12721_v30, %v7178_v11 }
 0x59c   : > { %v7369_v33 = vadd.f32 %v8350_v5, %v7187_v36  ;;  %v7424_v23 = vmax.f32 %v7368_v55, 0.0 }
 0x59d   : > { %v7367_v50 = vadd.f32 %v8346_v62, %v7179_v13  ;;  %v7422_v18 = vmax.f32 %v7366_v42, 0.0 }
 0x59e   : > { %v7425_v52 = vmax.f32 %v7369_v33, 0.0 }
 0x59f   : > { %v7423_v58 = vmax.f32 %v7367_v50, 0.0  ;;  %v9151_v16 = vpop.f32.mrb[72].mxu1 }
 0x5a0   : > { %v8487_v54 = vpack.c.bf16 %v7425_v52, %v7424_v23  ;;  %v7200_v20 = vadd.f32 %v9151_v16, %v12721_v30  ;;  %v7191_v0 = vpop.f32.mrb[73].mxu1 }
 0x5a1   : > { %v8482_v41 = vpack.c.bf16 %v7423_v58, %v7422_v18  ;;  %v7192_v14 = vadd.f32 %v12721_v30, %v7191_v0  ;;  %v9152_v48 = vpop.f32.mrb[74].mxu1 }
 0x5a2   : > { %8550 = vst [vmem:[%s12733_s21 + $0xc8] sm:$0xff] %v8487_v54   ;;  %v7372_v56 = vadd.f32 %v8357_v17, %v7200_v20  ;;  %v7203_v12 = vadd.f32 %v9152_v48, %v12721_v30  ;;  %v7194_v53 = vpop.f32.mrb[75].mxu1 }
 0x5a3   : > { %8549 = vst [vmem:[%s12733_s21 + $0xc0] sm:$0xff] %v8482_v41   ;;  %v7370_v49 = vadd.f32 %v8353_v27, %v7192_v14  ;;  %v7195_v60 = vadd.f32 %v12721_v30, %v7194_v53 }
 0x5a4   : > { %v7373_v24 = vadd.f32 %v8358_v29, %v7203_v12  ;;  %v7428_v4 = vmax.f32 %v7372_v56, 0.0 }
 0x5a5   : > { %v7371_v31 = vadd.f32 %v8354_v40, %v7195_v60  ;;  %v7426_v1 = vmax.f32 %v7370_v49, 0.0 }
 0x5a6   : > { %v7429_v39 = vmax.f32 %v7373_v24, 0.0 }
 0x5a7   : > { %v7427_v28 = vmax.f32 %v7371_v31, 0.0 }
 0x5a8   : > { %v8497_v51 = vpack.c.bf16 %v7429_v39, %v7428_v4 }
 0x5a9   : > { %v8492_v26 = vpack.c.bf16 %v7427_v28, %v7426_v1 }
 0x5aa   : > { %8552 = vst [vmem:[%s12733_s21 + $0xd8] sm:$0xff] %v8497_v51  }
 0x5ab   : > { %8551 = vst [vmem:[%s12733_s21 + $0xd0] sm:$0xff] %v8492_v26  }
 0x5ac PF: > { %s22_s23 = sadd.s32 1, %s9362_s23   ;;  %s13163_s21 = smov %s9358_s22 }
 0x5ad   : > { %p19_p5 = scmp.ge.s32.totalorder %s22_s23, 4   ;;  %s13164_s22 = smov %s13166_s24 }
 0x5af   :  { %21 = sbr.rel (!%p19_p5) target bundleno = 2 (0x2), region = 115 }

</bundles_post_ra>
